<compile_context>
chip_gen: v5e
topology: v5e:2x2
jax: 0.10.0
libtpu: 0.0.40
codegen_flags: <defaults>
</compile_context>

<pallas_src>
import functools
import math

import jax
import jax.numpy as jnp
from jax import lax
from jax.experimental import pallas as pl
from jax.experimental.pallas import tpu as pltpu


# MXU operand dtype. Kept f32 here so the tight self-test tolerance holds; set
# to jnp.bfloat16 in production for full MXU rate and halved weight/activation
# DMA bytes (accumulation stays f32 via preferred_element_type, and all
# element-wise epilogue math stays f32 -- v5e's VPU/EUP have no bf16 path).
_MXU_DTYPE = jnp.float32

_ROW_BLOCK_CAP = 512  # rows per grid step for the row-tiled matmul kernels


def _vmem_limit_bytes() -> int:
    # Explicit scoped-VMEM limit (defaults are only 16 MiB on v5e / 32 MiB on
    # v6e & v7x). Use half the physical per-core VMEM (headroom for
    # Mosaic-internal scratch), capped at 64 MiB.
    try:
        cap = int(pltpu.get_tpu_info().vmem_capacity_bytes)
    except Exception:
        cap = 64 * 1024 * 1024  # conservative fallback if the query is unavailable
    return max(16 * 1024 * 1024, min(64 * 1024 * 1024, cap // 2))


_VMEM_LIMIT = _vmem_limit_bytes()


def _compiler_params(num_axes: int) -> pltpu.CompilerParams:
    return pltpu.CompilerParams(
        dimension_semantics=("parallel",) * num_axes,
        vmem_limit_bytes=_VMEM_LIMIT)


def _row_block(m: int) -> int:
    """Row-tile size: blocks as large as reasonable, but >=2 grid steps when
    possible so v7x's two TensorCores both get work."""
    if m <= 8:
        return m                       # block == full array (always legal)
    if m > 2 * _ROW_BLOCK_CAP:
        return _ROW_BLOCK_CAP
    half = ((m + 15) // 16) * 8        # ceil(m/2) rounded up to a multiple of 8
    return min(half, _ROW_BLOCK_CAP)


# ---------------------------------------------------------------------------
# In-kernel helpers.
# ---------------------------------------------------------------------------
def _gauss_matmul(xr, xi, wr_ref, wi_ref, ws_ref):
    """Complex matmul via the 3-matmul Gauss trick (ws = wr + wi precomputed):
       t1 = xr@wr, t2 = xi@wi, t3 = (xr+xi)@ws
       real = t1 - t2,   imag = t3 - t1 - t2        (25% fewer MXU FLOPs)."""
    t1 = jnp.dot(xr.astype(_MXU_DTYPE), wr_ref[...],
                 preferred_element_type=jnp.float32)
    t2 = jnp.dot(xi.astype(_MXU_DTYPE), wi_ref[...],
                 preferred_element_type=jnp.float32)
    t3 = jnp.dot((xr + xi).astype(_MXU_DTYPE), ws_ref[...],
                 preferred_element_type=jnp.float32)
    return t1 - t2, t3 - t1 - t2


def _complex_layernorm(zr, zi, grr, gii, gri, br, bi, *, eps, feat_dim):
    """ComplexLayerNorm: per-part mean over features, shared unbiased (N-1)
    variance of real+imag, gamma mixing, beta.  rsqrt goes to the EUP."""
    mu_r = jnp.mean(zr, axis=-1, keepdims=True)
    mu_i = jnp.mean(zi, axis=-1, keepdims=True)
    cr = zr - mu_r
    ci = zi - mu_i
    var = (jnp.sum(cr * cr, axis=-1, keepdims=True)
           + jnp.sum(ci * ci, axis=-1, keepdims=True)) * (1.0 / float(feat_dim - 1))
    inv = lax.rsqrt(var + eps)
    nr = cr * inv
    ni = ci * inv
    return nr * grr + ni * gri + br, nr * gri + ni * gii + bi


# ---------------------------------------------------------------------------
# Kernel 1: complex positional encoding  complex_mul(X * sqrt(D), pcode).
# ---------------------------------------------------------------------------
def _posenc_kernel(xr_ref, xi_ref, pr_ref, pi_ref, or_ref, oi_ref, *, scale):
    xr = xr_ref[0] * scale
    xi = xi_ref[0] * scale
    pr = pr_ref[...]
    pi = pi_ref[...]
    or_ref[0] = (xr * pr - xi * pi).astype(or_ref.dtype)
    oi_ref[0] = (xr * pi + xi * pr).astype(oi_ref.dtype)


def complex_pos_encoding(x_r, x_i, pc_r, pc_i, *, scale):
    b, s, d = x_r.shape
    bs = s if s <= _ROW_BLOCK_CAP else _ROW_BLOCK_CAP
    xspec = pl.BlockSpec((1, bs, d), lambda i, j: (i, j, 0))
    pspec = pl.BlockSpec((bs, d), lambda i, j: (j, 0))
    return pl.pallas_call(
        functools.partial(_posenc_kernel, scale=scale),
        out_shape=(jax.ShapeDtypeStruct((b, s, d), x_r.dtype),) * 2,
        grid=(b, pl.cdiv(s, bs)),
        in_specs=[xspec, xspec, pspec, pspec],
        out_specs=(xspec, xspec),
        compiler_params=_compiler_params(2),
    )(x_r, x_i, pc_r, pc_i)


# ---------------------------------------------------------------------------
# Kernel 2: fused QKV complex projection (W_q|W_k|W_v concatenated along N).
# ---------------------------------------------------------------------------
def _qkv_proj_kernel(xr_ref, xi_ref, wr_ref, wi_ref, ws_ref, or_ref, oi_ref):
    out_r, out_i = _gauss_matmul(xr_ref[...], xi_ref[...], wr_ref, wi_ref, ws_ref)
    or_ref[...] = out_r.astype(or_ref.dtype)
    oi_ref[...] = out_i.astype(oi_ref.dtype)


def complex_qkv_proj(x_r, x_i, w_r, w_i, w_s):
    m, k = x_r.shape
    n = w_r.shape[1]
    bm = _row_block(m)
    row_in = pl.BlockSpec((bm, k), lambda i: (i, 0))
    row_out = pl.BlockSpec((bm, n), lambda i: (i, 0))
    # Constant block index -> weights are DMA'd once and stay VMEM-resident.
    w_spec = pl.BlockSpec((k, n), lambda i: (0, 0))
    return pl.pallas_call(
        _qkv_proj_kernel,
        out_shape=(jax.ShapeDtypeStruct((m, n), x_r.dtype),) * 2,
        grid=(pl.cdiv(m, bm),),
        in_specs=[row_in, row_in, w_spec, w_spec, w_spec],
        out_specs=(row_out, row_out),
        compiler_params=_compiler_params(1),
    )(x_r, x_i, w_r, w_i, w_s)


# ---------------------------------------------------------------------------
# Kernel 3: complex multi-head attention, all heads per (batch) grid step.
# ---------------------------------------------------------------------------
def _mha_kernel(qkvr_ref, qkvi_ref, or_ref, oi_ref, *, num_heads, scale):
    qkv_r = qkvr_ref[0]                         # (S, 3*D)
    qkv_i = qkvi_ref[0]
    d = qkv_r.shape[1] // 3
    dh = d // num_heads

    def _softmax(x):
        mx = jnp.max(x, axis=-1, keepdims=True)
        e = jnp.exp(x - mx)
        return e * pl.reciprocal(jnp.sum(e, axis=-1, keepdims=True), approx=True)

    o_r_parts = []
    o_i_parts = []
    for h in range(num_heads):                  # static unroll over heads
        a = h * dh
        qr = qkv_r[:, a:a + dh]
        qi = qkv_i[:, a:a + dh]
        kr = qkv_r[:, d + a:d + a + dh]
        ki = qkv_i[:, d + a:d + a + dh]
        vr = qkv_r[:, 2 * d + a:2 * d + a + dh]
        vi = qkv_i[:, 2 * d + a:2 * d + a + dh]

        # Pack real/imag along the contraction axis: 2 score matmuls (depth
        # 2*dh) instead of 4 (depth dh).  1/sqrt(dh) folded into q: one
        # (S, 2*dh) multiply instead of two (S, S) multiplies.
        q_pack = jnp.concatenate([qr, qi], axis=-1) * scale
        k_pack_r = jnp.concatenate([kr, -ki], axis=-1)
        k_pack_i = jnp.concatenate([ki, kr], axis=-1)

        dn = (((1,), (1,)), ((), ()))           # contract last dims -> (S, S)
        s_r = lax.dot_general(q_pack.astype(_MXU_DTYPE),
                              k_pack_r.astype(_MXU_DTYPE), dn,
                              preferred_element_type=jnp.float32)
        s_i = lax.dot_general(q_pack.astype(_MXU_DTYPE),
                              k_pack_i.astype(_MXU_DTYPE), dn,
                              preferred_element_type=jnp.float32)

        p_r = _softmax(s_r)
        p_i = _softmax(s_i)

        # Pack probabilities / values along the key axis: 2 PV matmuls
        # (contraction 2*S) instead of 4.
        p_pack = jnp.concatenate([p_r, p_i], axis=-1)          # (S, 2S)
        v_pack_r = jnp.concatenate([vr, -vi], axis=0)          # (2S, dh)
        v_pack_i = jnp.concatenate([vi, vr], axis=0)
        o_r = jnp.dot(p_pack.astype(_MXU_DTYPE), v_pack_r.astype(_MXU_DTYPE),
                      preferred_element_type=jnp.float32)
        o_i = jnp.dot(p_pack.astype(_MXU_DTYPE), v_pack_i.astype(_MXU_DTYPE),
                      preferred_element_type=jnp.float32)
        o_r_parts.append(o_r)
        o_i_parts.append(o_i)

    # One lane-dense (S, H*dh) store per part (no masked sub-width stores).
    or_ref[0] = jnp.concatenate(o_r_parts, axis=-1).astype(or_ref.dtype)
    oi_ref[0] = jnp.concatenate(o_i_parts, axis=-1).astype(oi_ref.dtype)


def complex_attention(qkv_r, qkv_i, *, num_heads):
    b, s, n3 = qkv_r.shape
    d = n3 // 3
    dh = d // num_heads
    qkv_spec = pl.BlockSpec((1, s, n3), lambda i: (i, 0, 0))
    out_spec = pl.BlockSpec((1, s, d), lambda i: (i, 0, 0))
    return pl.pallas_call(
        functools.partial(_mha_kernel, num_heads=num_heads,
                          scale=1.0 / math.sqrt(dh)),
        out_shape=(jax.ShapeDtypeStruct((b, s, d), qkv_r.dtype),) * 2,
        grid=(b,),
        in_specs=[qkv_spec, qkv_spec],
        out_specs=(out_spec, out_spec),
        compiler_params=_compiler_params(1),
    )(qkv_r, qkv_i)


# ---------------------------------------------------------------------------
# Kernel 4: w_o projection + residual add + ComplexLayerNorm (AddNorm1).
# ---------------------------------------------------------------------------
def _proj_addnorm_kernel(ar_ref, ai_ref, rr_ref, ri_ref,
                         wr_ref, wi_ref, ws_ref,
                         grr_ref, gii_ref, gri_ref, br_ref, bi_ref,
                         or_ref, oi_ref, *, eps, feat_dim):
    yr, yi = _gauss_matmul(ar_ref[...], ai_ref[...], wr_ref, wi_ref, ws_ref)
    out_r, out_i = _complex_layernorm(
        rr_ref[...] + yr, ri_ref[...] + yi,
        grr_ref[...], gii_ref[...], gri_ref[...], br_ref[...], bi_ref[...],
        eps=eps, feat_dim=feat_dim)
    or_ref[...] = out_r.astype(or_ref.dtype)
    oi_ref[...] = out_i.astype(oi_ref.dtype)


def complex_proj_addnorm(a_r, a_i, res_r, res_i, w_pack, ln_params, eps=1e-9):
    w_r, w_i, w_s = w_pack
    m, k = a_r.shape
    n = w_r.shape[1]
    bm = _row_block(m)
    row_in = pl.BlockSpec((bm, k), lambda i: (i, 0))
    row_res = pl.BlockSpec((bm, n), lambda i: (i, 0))
    row_out = pl.BlockSpec((bm, n), lambda i: (i, 0))
    w_spec = pl.BlockSpec((k, n), lambda i: (0, 0))
    vec = pl.BlockSpec((1, n), lambda i: (0, 0))
    return pl.pallas_call(
        functools.partial(_proj_addnorm_kernel, eps=eps, feat_dim=n),
        out_shape=(jax.ShapeDtypeStruct((m, n), a_r.dtype),) * 2,
        grid=(pl.cdiv(m, bm),),
        in_specs=[row_in, row_in, row_res, row_res,
                  w_spec, w_spec, w_spec, vec, vec, vec, vec, vec],
        out_specs=(row_out, row_out),
        compiler_params=_compiler_params(1),
    )(a_r, a_i, res_r, res_i, w_r, w_i, w_s, *ln_params)


# ---------------------------------------------------------------------------
# Kernel 5: full FFN (linear1 + ComplexReLU + linear2) + residual + LayerNorm.
# ---------------------------------------------------------------------------
def _ffn_addnorm_kernel(zr_ref, zi_ref,
                        w1r_ref, w1i_ref, w1s_ref, b1m_ref, b1p_ref,
                        w2r_ref, w2i_ref, w2s_ref, b2m_ref, b2p_ref,
                        grr_ref, gii_ref, gri_ref, br_ref, bi_ref,
                        or_ref, oi_ref, *, eps, feat_dim):
    zr = zr_ref[...]
    zi = zi_ref[...]
    # linear1 + precombined bias, ComplexReLU fused; hidden stays in VMEM.
    h1r, h1i = _gauss_matmul(zr, zi, w1r_ref, w1i_ref, w1s_ref)
    hr = jnp.maximum(h1r + b1m_ref[...], 0.0)
    hi = jnp.maximum(h1i + b1p_ref[...], 0.0)
    # linear2 + precombined bias.
    fr, fi = _gauss_matmul(hr, hi, w2r_ref, w2i_ref, w2s_ref)
    fr = fr + b2m_ref[...]
    fi = fi + b2p_ref[...]
    # residual + ComplexLayerNorm epilogue.
    out_r, out_i = _complex_layernorm(
        zr + fr, zi + fi,
        grr_ref[...], gii_ref[...], gri_ref[...], br_ref[...], bi_ref[...],
        eps=eps, feat_dim=feat_dim)
    or_ref[...] = out_r.astype(or_ref.dtype)
    oi_ref[...] = out_i.astype(oi_ref.dtype)


def complex_ffn_addnorm(z_r, z_i, ffn1, ffn2, ln_params, eps=1e-9):
    w1r, w1i, w1s, b1m, b1p = ffn1
    w2r, w2i, w2s, b2m, b2p = ffn2
    m, d_in = z_r.shape
    f = w1r.shape[1]
    d_out = w2r.shape[1]
    bm = _row_block(m)
    row_in = pl.BlockSpec((bm, d_in), lambda i: (i, 0))
    row_out = pl.BlockSpec((bm, d_out), lambda i: (i, 0))
    w1_spec = pl.BlockSpec((d_in, f), lambda i: (0, 0))
    w2_spec = pl.BlockSpec((f, d_out), lambda i: (0, 0))
    vec_f = pl.BlockSpec((1, f), lambda i: (0, 0))
    vec_d = pl.BlockSpec((1, d_out), lambda i: (0, 0))
    return pl.pallas_call(
        functools.partial(_ffn_addnorm_kernel, eps=eps, feat_dim=d_out),
        out_shape=(jax.ShapeDtypeStruct((m, d_out), z_r.dtype),) * 2,
        grid=(pl.cdiv(m, bm),),
        in_specs=[row_in, row_in,
                  w1_spec, w1_spec, w1_spec, vec_f, vec_f,
                  w2_spec, w2_spec, w2_spec, vec_d, vec_d,
                  vec_d, vec_d, vec_d, vec_d, vec_d],
        out_specs=(row_out, row_out),
        compiler_params=_compiler_params(1),
    )(z_r, z_i, w1r, w1i, w1s, b1m, b1p, w2r, w2i, w2s, b2m, b2p, *ln_params)


# ---------------------------------------------------------------------------
# Host-side parameter fusion (done once, outside the jitted forward).
# ---------------------------------------------------------------------------
def prepare_params(params, *, mxu_dtype=None):
    """Fuse/precompute parameters:
       * W_q|W_k|W_v concatenated along N -> one QKV projection kernel.
       * (W_r + W_i) precomputed for the Gauss 3-matmul complex product.
       * (b_r - b_i) / (b_r + b_i) precombined -> one bias add per part.
       * layernorm / bias vectors reshaped to lane-dense (1, D) rows."""
    mxu_dtype = mxu_dtype or _MXU_DTYPE

    def pack_w(w_r, w_i):
        return (w_r.astype(mxu_dtype), w_i.astype(mxu_dtype),
                (w_r + w_i).astype(mxu_dtype))

    def pack_b(b_r, b_i):
        n = b_r.shape[0]
        return ((b_r - b_i).reshape(1, n), (b_r + b_i).reshape(1, n))

    layers = []
    for lp in params["layers"]:
        wq_r, wq_i, _, _ = lp["w_q"]
        wk_r, wk_i, _, _ = lp["w_k"]
        wv_r, wv_i, _, _ = lp["w_v"]
        qkv_r = jnp.concatenate([wq_r, wk_r, wv_r], axis=1)
        qkv_i = jnp.concatenate([wq_i, wk_i, wv_i], axis=1)
        w1r, w1i, b1r, b1i = lp["ffn1"]
        w2r, w2i, b2r, b2i = lp["ffn2"]
        layers.append({
            "qkv": pack_w(qkv_r, qkv_i),
            "w_o": pack_w(lp["w_o"][0], lp["w_o"][1]),
            "ffn1": pack_w(w1r, w1i) + pack_b(b1r, b1i),
            "ffn2": pack_w(w2r, w2i) + pack_b(b2r, b2i),
            "ln1": tuple(p.reshape(1, -1) for p in lp["ln1"]),
            "ln2": tuple(p.reshape(1, -1) for p in lp["ln2"]),
        })
    return {"layers": layers}


def _pos_code(s, d, dtype=jnp.float32):
    pos = (jnp.arange(s, dtype=jnp.float32)[:, None]
           / jnp.power(10000.0, jnp.arange(d, dtype=jnp.float32) / d))
    return jnp.cos(pos).astype(dtype), jnp.sin(pos).astype(dtype)


# ---------------------------------------------------------------------------
# Full encoder forward (Pallas).
# ---------------------------------------------------------------------------
def pallas_forward(X, prepared, *, num_heads):
    b, s, d, _ = X.shape
    x_r = X[..., 0]
    x_i = X[..., 1]

    pc_r, pc_i = _pos_code(s, d, x_r.dtype)
    x_r, x_i = complex_pos_encoding(x_r, x_i, pc_r, pc_i, scale=math.sqrt(d))

    m = b * s
    x_r = x_r.reshape(m, d)            # metadata-only
    x_i = x_i.reshape(m, d)

    for lp in prepared["layers"]:
        # Fused QKV complex projection: x is read from HBM once.
        qkv_r, qkv_i = complex_qkv_proj(x_r, x_i, *lp["qkv"])
        # Complex MHA; head split handled by in-kernel static slices of the
        # (S, 3D) slab (no materialized HBM transposes); lane-dense output.
        a_r, a_i = complex_attention(qkv_r.reshape(b, s, 3 * d),
                                     qkv_i.reshape(b, s, 3 * d),
                                     num_heads=num_heads)
        # w_o projection + residual + ComplexLayerNorm (AddNorm1) fused.
        z_r, z_i = complex_proj_addnorm(a_r.reshape(m, d), a_i.reshape(m, d),
                                        x_r, x_i, lp["w_o"], lp["ln1"])
        # FFN + residual + ComplexLayerNorm (AddNorm2) fused.
        x_r, x_i = complex_ffn_addnorm(z_r, z_i, lp["ffn1"], lp["ffn2"],
                                       lp["ln2"])

    return jnp.stack((x_r.reshape(b, s, d), x_i.reshape(b, s, d)), axis=-1)


# ---------------------------------------------------------------------------
# Pure-JAX reference mirroring the PyTorch module math ((..., 2) layout).
# ---------------------------------------------------------------------------
def _ref_complex_linear(X, p):
    wr, wi, br, bi = p
    xr, xi = X[..., 0], X[..., 1]
    f_r = lambda t: t @ wr + br
    f_i = lambda t: t @ wi + bi
    return jnp.stack((f_r(xr) - f_i(xi), f_r(xi) + f_i(xr)), axis=-1)


def _ref_mha(X, lp, h):
    b, s, d, _ = X.shape

    def tqkv(x):
        dh = x.shape[2] // h
        return (x.reshape(b, s, h, dh, 2).transpose(0, 2, 1, 3, 4)
                .reshape(b * h, s, dh, 2))

    q = tqkv(_ref_complex_linear(X, lp["w_q"]))
    k = tqkv(_ref_complex_linear(X, lp["w_k"]))
    v = tqkv(_ref_complex_linear(X, lp["w_v"]))
    dh = q.shape[-2]
    qr, qi = q[..., 0], q[..., 1]
    kr, ki = k[..., 0], k[..., 1]
    vr, vi = v[..., 0], v[..., 1]
    bmm = lambda a, c: jnp.einsum("bij,bjk->bik", a, c)
    krt, kit = jnp.swapaxes(kr, 1, 2), jnp.swapaxes(ki, 1, 2)
    scale = 1.0 / math.sqrt(dh)
    p_r = jax.nn.softmax((bmm(qr, krt) - bmm(qi, kit)) * scale, axis=-1)
    p_i = jax.nn.softmax((bmm(qr, kit) + bmm(qi, krt)) * scale, axis=-1)
    o_r = bmm(p_r, vr) - bmm(p_i, vi)
    o_i = bmm(p_r, vi) + bmm(p_i, vr)
    o = jnp.stack((o_r, o_i), axis=-1)
    o = (o.reshape(b, h, s, dh, 2).transpose(0, 2, 1, 3, 4)
         .reshape(b, s, h * dh, 2))
    return _ref_complex_linear(o, lp["w_o"])


def _ref_addnorm(X, Y, ln_params, eps=1e-9):
    grr, gii, gri, beta_r, beta_i = ln_params
    z = X + Y
    zr, zi = z[..., 0], z[..., 1]
    mu = jnp.mean(z, axis=-2, keepdims=True)
    var = jnp.var(zr, axis=-1, ddof=1) + jnp.var(zi, axis=-1, ddof=1)
    div = jnp.sqrt(var + eps)[..., None, None]
    zn = (z - mu) / div
    nr, ni = zn[..., 0], zn[..., 1]
    out = jnp.stack((nr * grr + ni * gri, nr * gri + ni * gii), axis=-1)
    return out + jnp.stack((beta_r, beta_i), axis=-1)


def _ref_ffn(X, lp):
    hid = _ref_complex_linear(X, lp["ffn1"])
    hid = jnp.stack((jax.nn.relu(hid[..., 0]), jax.nn.relu(hid[..., 1])), axis=-1)
    return _ref_complex_linear(hid, lp["ffn2"])


def ref_forward(X, params, num_heads):
    b, s, d, _ = X.shape
    pc_r, pc_i = _pos_code(s, d)
    Xs = X * math.sqrt(d)
    xr, xi = Xs[..., 0], Xs[..., 1]
    X = jnp.stack((xr * pc_r - xi * pc_i, xr * pc_i + xi * pc_r), axis=-1)
    for lp in params["layers"]:
        Y = _ref_mha(X, lp, num_heads)
        Z = _ref_addnorm(X, Y, lp["ln1"])
        X = _ref_addnorm(Z, _ref_ffn(Z, lp), lp["ln2"])
    return X


# ---------------------------------------------------------------------------
# Deterministic parameter construction.
# ---------------------------------------------------------------------------
def init_params(key, d, f, num_layers):
    def linear(k, fan_in, fan_out, bias):
        k1, k2, k3, k4 = jax.random.split(k, 4)
        s = 1.0 / math.sqrt(fan_in)
        wr = jax.random.uniform(k1, (fan_in, fan_out), jnp.float32, -s, s)
        wi = jax.random.uniform(k2, (fan_in, fan_out), jnp.float32, -s, s)
        if bias:
            br = jax.random.uniform(k3, (fan_out,), jnp.float32, -s, s)
            bi = jax.random.uniform(k4, (fan_out,), jnp.float32, -s, s)
        else:
            br = jnp.zeros((fan_out,), jnp.float32)
            bi = jnp.zeros((fan_out,), jnp.float32)
        return (wr, wi, br, bi)

    def layernorm(k, dim):
        k1, k2, k3, k4 = jax.random.split(k, 4)
        grr = jnp.full((dim,), 1.0 / math.sqrt(2), jnp.float32) \
            + 0.05 * jax.random.normal(k1, (dim,), jnp.float32)
        gii = jnp.full((dim,), 1.0 / math.sqrt(2), jnp.float32) \
            + 0.05 * jax.random.normal(k2, (dim,), jnp.float32)
        gri = 0.05 * jax.random.normal(k3, (dim,), jnp.float32)
        beta = 0.05 * jax.random.normal(k4, (dim, 2), jnp.float32)
        return (grr, gii, gri, beta[:, 0], beta[:, 1])

    layers = []
    for lk in jax.random.split(key, num_layers):
        ks = jax.random.split(lk, 8)
        layers.append({
            "w_q": linear(ks[0], d, d, bias=False),
            "w_k": linear(ks[1], d, d, bias=False),
            "w_v": linear(ks[2], d, d, bias=False),
            "w_o": linear(ks[3], d, d, bias=False),
            "ffn1": linear(ks[4], d, f, bias=True),
            "ffn2": linear(ks[5], f, d, bias=True),
            "ln1": layernorm(ks[6], d),
            "ln2": layernorm(ks[7], d),
        })
    return {"layers": layers}


if __name__ == "__main__":
    B, S, D, H, FFN, LAYERS = 2, 8, 32, 4, 32, 2  # residual requires FFN == D

    key = jax.random.PRNGKey(0)
    kx, kp = jax.random.split(key)
    X = jax.random.normal(kx, (B, S, D, 2), dtype=jnp.float32)
    params = init_params(kp, D, FFN, LAYERS)
    prepared = prepare_params(params)        # weight fusion done once, host-side

    fwd = jax.jit(functools.partial(pallas_forward, num_heads=H))
    out = jax.block_until_ready(fwd(X, prepared))

    ref = ref_forward(X, params, H)
    assert out.shape == ref.shape == (B, S, D, 2)
    max_err = float(jnp.max(jnp.abs(out - ref)))
    # Tolerance covers the EUP approximate-reciprocal softmax denominator.
    assert jnp.allclose(out, ref, atol=5e-3, rtol=5e-3), f"mismatch: {max_err}"
    print("KERNEL_OK")
</pallas_src>

<mosaic_0001>
module attributes {stable_mosaic.version = 11 : i64} {
  func.func @_posenc_kernel(%arg0: i32, %arg1: i32, %arg2: memref<1x8x32xf32, #tpu.memory_space<vmem>>, %arg3: memref<1x8x32xf32, #tpu.memory_space<vmem>>, %arg4: memref<8x32xf32, #tpu.memory_space<vmem>>, %arg5: memref<8x32xf32, #tpu.memory_space<vmem>>, %arg6: memref<1x8x32xf32, #tpu.memory_space<vmem>>, %arg7: memref<1x8x32xf32, #tpu.memory_space<vmem>>) attributes {dimension_semantics = [#tpu.dimension_semantics<parallel>, #tpu.dimension_semantics<parallel>], iteration_bounds = array<i64: 2, 1>, scalar_prefetch = 0 : i64, scratch_operands = 0 : i64, tpu.core_type = #tpu.core_type<tc>, window_params = [{transform_indices = @transform_0, window_bounds = array<i64: 1, 8, 32>}, {transform_indices = @transform_1, window_bounds = array<i64: 1, 8, 32>}, {transform_indices = @transform_2, window_bounds = array<i64: 8, 32>}, {transform_indices = @transform_3, window_bounds = array<i64: 8, 32>}, {transform_indices = @transform_4, window_bounds = array<i64: 1, 8, 32>}, {transform_indices = @transform_5, window_bounds = array<i64: 1, 8, 32>}]} {
    %c0 = arith.constant 0 : index
    %c0_0 = arith.constant 0 : index
    %c0_1 = arith.constant 0 : index
    %0 = vector.load %arg2[%c0, %c0_0, %c0_1] : memref<1x8x32xf32, #tpu.memory_space<vmem>>, vector<1x8x32xf32>
    %1 = vector.shape_cast %0 : vector<1x8x32xf32> to vector<8x32xf32>
    %cst = arith.constant 5.65685415 : f32
    %2 = vector.broadcast %cst : f32 to vector<8x32xf32>
    %3 = arith.mulf %1, %2 : vector<8x32xf32>
    %c0_2 = arith.constant 0 : index
    %c0_3 = arith.constant 0 : index
    %c0_4 = arith.constant 0 : index
    %4 = vector.load %arg3[%c0_2, %c0_3, %c0_4] : memref<1x8x32xf32, #tpu.memory_space<vmem>>, vector<1x8x32xf32>
    %5 = vector.shape_cast %4 : vector<1x8x32xf32> to vector<8x32xf32>
    %cst_5 = arith.constant 5.65685415 : f32
    %6 = vector.broadcast %cst_5 : f32 to vector<8x32xf32>
    %7 = arith.mulf %5, %6 : vector<8x32xf32>
    %c0_6 = arith.constant 0 : index
    %c0_7 = arith.constant 0 : index
    %8 = vector.load %arg4[%c0_6, %c0_7] : memref<8x32xf32, #tpu.memory_space<vmem>>, vector<8x32xf32>
    %c0_8 = arith.constant 0 : index
    %c0_9 = arith.constant 0 : index
    %9 = vector.load %arg5[%c0_8, %c0_9] : memref<8x32xf32, #tpu.memory_space<vmem>>, vector<8x32xf32>
    %10 = arith.mulf %3, %8 : vector<8x32xf32>
    %11 = arith.mulf %7, %9 : vector<8x32xf32>
    %12 = arith.subf %10, %11 : vector<8x32xf32>
    %c0_10 = arith.constant 0 : index
    %c0_11 = arith.constant 0 : index
    %c0_12 = arith.constant 0 : index
    %13 = vector.load %arg6[%c0_10, %c0_11, %c0_12] : memref<1x8x32xf32, #tpu.memory_space<vmem>>, vector<1x8x32xf32>
    %14 = vector.shape_cast %13 : vector<1x8x32xf32> to vector<8x32xf32>
    %15 = vector.shape_cast %12 : vector<8x32xf32> to vector<1x8x32xf32>
    tpu.vector_store %arg6[%c0_10, %c0_11, %c0_12], %15 {strides = array<i32>} : memref<1x8x32xf32, #tpu.memory_space<vmem>>, vector<1x8x32xf32>,
    %16 = arith.mulf %3, %9 : vector<8x32xf32>
    %17 = arith.mulf %7, %8 : vector<8x32xf32>
    %18 = arith.addf %16, %17 : vector<8x32xf32>
    %c0_13 = arith.constant 0 : index
    %c0_14 = arith.constant 0 : index
    %c0_15 = arith.constant 0 : index
    %19 = vector.load %arg7[%c0_13, %c0_14, %c0_15] : memref<1x8x32xf32, #tpu.memory_space<vmem>>, vector<1x8x32xf32>
    %20 = vector.shape_cast %19 : vector<1x8x32xf32> to vector<8x32xf32>
    %21 = vector.shape_cast %18 : vector<8x32xf32> to vector<1x8x32xf32>
    tpu.vector_store %arg7[%c0_13, %c0_14, %c0_15], %21 {strides = array<i32>} : memref<1x8x32xf32, #tpu.memory_space<vmem>>, vector<1x8x32xf32>,
    return
  }
  func.func @transform_0(%arg0: i32, %arg1: i32) -> (i32, i32, i32) {
    %c0_i32 = arith.constant 0 : i32
    %c0_i32_0 = arith.constant 0 : i32
    return %arg0, %arg1, %c0_i32 : i32, i32, i32
  }
  func.func @transform_1(%arg0: i32, %arg1: i32) -> (i32, i32, i32) {
    %c0_i32 = arith.constant 0 : i32
    %c0_i32_0 = arith.constant 0 : i32
    return %arg0, %arg1, %c0_i32 : i32, i32, i32
  }
  func.func @transform_2(%arg0: i32, %arg1: i32) -> (i32, i32) {
    %c0_i32 = arith.constant 0 : i32
    %c0_i32_0 = arith.constant 0 : i32
    return %arg1, %c0_i32 : i32, i32
  }
  func.func @transform_3(%arg0: i32, %arg1: i32) -> (i32, i32) {
    %c0_i32 = arith.constant 0 : i32
    %c0_i32_0 = arith.constant 0 : i32
    return %arg1, %c0_i32 : i32, i32
  }
  func.func @transform_4(%arg0: i32, %arg1: i32) -> (i32, i32, i32) {
    %c0_i32 = arith.constant 0 : i32
    %c0_i32_0 = arith.constant 0 : i32
    return %arg0, %arg1, %c0_i32 : i32, i32, i32
  }
  func.func @transform_5(%arg0: i32, %arg1: i32) -> (i32, i32, i32) {
    %c0_i32 = arith.constant 0 : i32
    %c0_i32_0 = arith.constant 0 : i32
    return %arg0, %arg1, %c0_i32 : i32, i32, i32
  }
}

module attributes {stable_mosaic.version = 11 : i64} {
  func.func @_qkv_proj_kernel(%arg0: i32, %arg1: memref<8x32xf32, #tpu.memory_space<vmem>>, %arg2: memref<8x32xf32, #tpu.memory_space<vmem>>, %arg3: memref<32x96xf32, #tpu.memory_space<vmem>>, %arg4: memref<32x96xf32, #tpu.memory_space<vmem>>, %arg5: memref<32x96xf32, #tpu.memory_space<vmem>>, %arg6: memref<8x96xf32, #tpu.memory_space<vmem>>, %arg7: memref<8x96xf32, #tpu.memory_space<vmem>>) attributes {dimension_semantics = [#tpu.dimension_semantics<parallel>], iteration_bounds = array<i64: 2>, scalar_prefetch = 0 : i64, scratch_operands = 0 : i64, tpu.core_type = #tpu.core_type<tc>, window_params = [{transform_indices = @transform_0, window_bounds = array<i64: 8, 32>}, {transform_indices = @transform_1, window_bounds = array<i64: 8, 32>}, {pipeline_mode = #tpu.pipeline_mode<synchronous>, transform_indices = @transform_2, window_bounds = array<i64: 32, 96>}, {pipeline_mode = #tpu.pipeline_mode<synchronous>, transform_indices = @transform_3, window_bounds = array<i64: 32, 96>}, {pipeline_mode = #tpu.pipeline_mode<synchronous>, transform_indices = @transform_4, window_bounds = array<i64: 32, 96>}, {transform_indices = @transform_5, window_bounds = array<i64: 8, 96>}, {transform_indices = @transform_6, window_bounds = array<i64: 8, 96>}]} {
    %c0 = arith.constant 0 : index
    %c0_0 = arith.constant 0 : index
    %0 = vector.load %arg1[%c0, %c0_0] : memref<8x32xf32, #tpu.memory_space<vmem>>, vector<8x32xf32>
    %c0_1 = arith.constant 0 : index
    %c0_2 = arith.constant 0 : index
    %1 = vector.load %arg2[%c0_1, %c0_2] : memref<8x32xf32, #tpu.memory_space<vmem>>, vector<8x32xf32>
    %c0_3 = arith.constant 0 : index
    %c0_4 = arith.constant 0 : index
    %2 = vector.load %arg3[%c0_3, %c0_4] : memref<32x96xf32, #tpu.memory_space<vmem>>, vector<32x96xf32>
    %cst = arith.constant dense<0.000000e+00> : vector<8x96xf32>
    %3 = tpu.matmul %0, %2, %cst {dimension_numbers = #tpu.dot_dimension_numbers<[1], [0], [0], [1], [0, 0, 1, 1], [], []>} : vector<8x32xf32>, vector<32x96xf32>, vector<8x96xf32> -> vector<8x96xf32>
    %c0_5 = arith.constant 0 : index
    %c0_6 = arith.constant 0 : index
    %4 = vector.load %arg4[%c0_5, %c0_6] : memref<32x96xf32, #tpu.memory_space<vmem>>, vector<32x96xf32>
    %cst_7 = arith.constant dense<0.000000e+00> : vector<8x96xf32>
    %5 = tpu.matmul %1, %4, %cst_7 {dimension_numbers = #tpu.dot_dimension_numbers<[1], [0], [0], [1], [0, 0, 1, 1], [], []>} : vector<8x32xf32>, vector<32x96xf32>, vector<8x96xf32> -> vector<8x96xf32>
    %6 = arith.addf %0, %1 : vector<8x32xf32>
    %c0_8 = arith.constant 0 : index
    %c0_9 = arith.constant 0 : index
    %7 = vector.load %arg5[%c0_8, %c0_9] : memref<32x96xf32, #tpu.memory_space<vmem>>, vector<32x96xf32>
    %cst_10 = arith.constant dense<0.000000e+00> : vector<8x96xf32>
    %8 = tpu.matmul %6, %7, %cst_10 {dimension_numbers = #tpu.dot_dimension_numbers<[1], [0], [0], [1], [0, 0, 1, 1], [], []>} : vector<8x32xf32>, vector<32x96xf32>, vector<8x96xf32> -> vector<8x96xf32>
    %9 = arith.subf %3, %5 : vector<8x96xf32>
    %10 = arith.subf %8, %3 : vector<8x96xf32>
    %11 = arith.subf %10, %5 : vector<8x96xf32>
    %c0_11 = arith.constant 0 : index
    %c0_12 = arith.constant 0 : index
    %12 = vector.load %arg6[%c0_11, %c0_12] : memref<8x96xf32, #tpu.memory_space<vmem>>, vector<8x96xf32>
    tpu.vector_store %arg6[%c0_11, %c0_12], %9 {strides = array<i32>} : memref<8x96xf32, #tpu.memory_space<vmem>>, vector<8x96xf32>,
    %c0_13 = arith.constant 0 : index
    %c0_14 = arith.constant 0 : index
    %13 = vector.load %arg7[%c0_13, %c0_14] : memref<8x96xf32, #tpu.memory_space<vmem>>, vector<8x96xf32>
    tpu.vector_store %arg7[%c0_13, %c0_14], %11 {strides = array<i32>} : memref<8x96xf32, #tpu.memory_space<vmem>>, vector<8x96xf32>,
    return
  }
  func.func @transform_0(%arg0: i32) -> (i32, i32) {
    %c0_i32 = arith.constant 0 : i32
    %c0_i32_0 = arith.constant 0 : i32
    return %arg0, %c0_i32 : i32, i32
  }
  func.func @transform_1(%arg0: i32) -> (i32, i32) {
    %c0_i32 = arith.constant 0 : i32
    %c0_i32_0 = arith.constant 0 : i32
    return %arg0, %c0_i32 : i32, i32
  }
  func.func @transform_2(%arg0: i32) -> (i32, i32) {
    %c0_i32 = arith.constant 0 : i32
    %c0_i32_0 = arith.constant 0 : i32
    %c0_i32_1 = arith.constant 0 : i32
    return %c0_i32, %c0_i32_0 : i32, i32
  }
  func.func @transform_3(%arg0: i32) -> (i32, i32) {
    %c0_i32 = arith.constant 0 : i32
    %c0_i32_0 = arith.constant 0 : i32
    %c0_i32_1 = arith.constant 0 : i32
    return %c0_i32, %c0_i32_0 : i32, i32
  }
  func.func @transform_4(%arg0: i32) -> (i32, i32) {
    %c0_i32 = arith.constant 0 : i32
    %c0_i32_0 = arith.constant 0 : i32
    %c0_i32_1 = arith.constant 0 : i32
    return %c0_i32, %c0_i32_0 : i32, i32
  }
  func.func @transform_5(%arg0: i32) -> (i32, i32) {
    %c0_i32 = arith.constant 0 : i32
    %c0_i32_0 = arith.constant 0 : i32
    return %arg0, %c0_i32 : i32, i32
  }
  func.func @transform_6(%arg0: i32) -> (i32, i32) {
    %c0_i32 = arith.constant 0 : i32
    %c0_i32_0 = arith.constant 0 : i32
    return %arg0, %c0_i32 : i32, i32
  }
}

module attributes {stable_mosaic.version = 11 : i64} {
  func.func @_proj_addnorm_kernel(%arg0: i32, %arg1: memref<8x32xf32, #tpu.memory_space<vmem>>, %arg2: memref<8x32xf32, #tpu.memory_space<vmem>>, %arg3: memref<8x32xf32, #tpu.memory_space<vmem>>, %arg4: memref<8x32xf32, #tpu.memory_space<vmem>>, %arg5: memref<32x32xf32, #tpu.memory_space<vmem>>, %arg6: memref<32x32xf32, #tpu.memory_space<vmem>>, %arg7: memref<32x32xf32, #tpu.memory_space<vmem>>, %arg8: memref<1x32xf32, #tpu.memory_space<vmem>>, %arg9: memref<1x32xf32, #tpu.memory_space<vmem>>, %arg10: memref<1x32xf32, #tpu.memory_space<vmem>>, %arg11: memref<1x32xf32, #tpu.memory_space<vmem>>, %arg12: memref<1x32xf32, #tpu.memory_space<vmem>>, %arg13: memref<8x32xf32, #tpu.memory_space<vmem>>, %arg14: memref<8x32xf32, #tpu.memory_space<vmem>>) attributes {dimension_semantics = [#tpu.dimension_semantics<parallel>], iteration_bounds = array<i64: 2>, scalar_prefetch = 0 : i64, scratch_operands = 0 : i64, tpu.core_type = #tpu.core_type<tc>, window_params = [{transform_indices = @transform_0, window_bounds = array<i64: 8, 32>}, {transform_indices = @transform_1, window_bounds = array<i64: 8, 32>}, {transform_indices = @transform_2, window_bounds = array<i64: 8, 32>}, {transform_indices = @transform_3, window_bounds = array<i64: 8, 32>}, {pipeline_mode = #tpu.pipeline_mode<synchronous>, transform_indices = @transform_4, window_bounds = array<i64: 32, 32>}, {pipeline_mode = #tpu.pipeline_mode<synchronous>, transform_indices = @transform_5, window_bounds = array<i64: 32, 32>}, {pipeline_mode = #tpu.pipeline_mode<synchronous>, transform_indices = @transform_6, window_bounds = array<i64: 32, 32>}, {pipeline_mode = #tpu.pipeline_mode<synchronous>, transform_indices = @transform_7, window_bounds = array<i64: 1, 32>}, {pipeline_mode = #tpu.pipeline_mode<synchronous>, transform_indices = @transform_8, window_bounds = array<i64: 1, 32>}, {pipeline_mode = #tpu.pipeline_mode<synchronous>, transform_indices = @transform_9, window_bounds = array<i64: 1, 32>}, {pipeline_mode = #tpu.pipeline_mode<synchronous>, transform_indices = @transform_10, window_bounds = array<i64: 1, 32>}, {pipeline_mode = #tpu.pipeline_mode<synchronous>, transform_indices = @transform_11, window_bounds = array<i64: 1, 32>}, {transform_indices = @transform_12, window_bounds = array<i64: 8, 32>}, {transform_indices = @transform_13, window_bounds = array<i64: 8, 32>}]} {
    %c0 = arith.constant 0 : index
    %c0_0 = arith.constant 0 : index
    %0 = vector.load %arg1[%c0, %c0_0] : memref<8x32xf32, #tpu.memory_space<vmem>>, vector<8x32xf32>
    %c0_1 = arith.constant 0 : index
    %c0_2 = arith.constant 0 : index
    %1 = vector.load %arg2[%c0_1, %c0_2] : memref<8x32xf32, #tpu.memory_space<vmem>>, vector<8x32xf32>
    %c0_3 = arith.constant 0 : index
    %c0_4 = arith.constant 0 : index
    %2 = vector.load %arg5[%c0_3, %c0_4] : memref<32x32xf32, #tpu.memory_space<vmem>>, vector<32x32xf32>
    %cst = arith.constant dense<0.000000e+00> : vector<8x32xf32>
    %3 = tpu.matmul %0, %2, %cst {dimension_numbers = #tpu.dot_dimension_numbers<[1], [0], [0], [1], [0, 0, 1, 1], [], []>} : vector<8x32xf32>, vector<32x32xf32>, vector<8x32xf32> -> vector<8x32xf32>
    %c0_5 = arith.constant 0 : index
    %c0_6 = arith.constant 0 : index
    %4 = vector.load %arg6[%c0_5, %c0_6] : memref<32x32xf32, #tpu.memory_space<vmem>>, vector<32x32xf32>
    %cst_7 = arith.constant dense<0.000000e+00> : vector<8x32xf32>
    %5 = tpu.matmul %1, %4, %cst_7 {dimension_numbers = #tpu.dot_dimension_numbers<[1], [0], [0], [1], [0, 0, 1, 1], [], []>} : vector<8x32xf32>, vector<32x32xf32>, vector<8x32xf32> -> vector<8x32xf32>
    %6 = arith.addf %0, %1 : vector<8x32xf32>
    %c0_8 = arith.constant 0 : index
    %c0_9 = arith.constant 0 : index
    %7 = vector.load %arg7[%c0_8, %c0_9] : memref<32x32xf32, #tpu.memory_space<vmem>>, vector<32x32xf32>
    %cst_10 = arith.constant dense<0.000000e+00> : vector<8x32xf32>
    %8 = tpu.matmul %6, %7, %cst_10 {dimension_numbers = #tpu.dot_dimension_numbers<[1], [0], [0], [1], [0, 0, 1, 1], [], []>} : vector<8x32xf32>, vector<32x32xf32>, vector<8x32xf32> -> vector<8x32xf32>
    %9 = arith.subf %3, %5 : vector<8x32xf32>
    %10 = arith.subf %8, %3 : vector<8x32xf32>
    %11 = arith.subf %10, %5 : vector<8x32xf32>
    %c0_11 = arith.constant 0 : index
    %c0_12 = arith.constant 0 : index
    %12 = vector.load %arg3[%c0_11, %c0_12] : memref<8x32xf32, #tpu.memory_space<vmem>>, vector<8x32xf32>
    %13 = arith.addf %12, %9 : vector<8x32xf32>
    %c0_13 = arith.constant 0 : index
    %c0_14 = arith.constant 0 : index
    %14 = vector.load %arg4[%c0_13, %c0_14] : memref<8x32xf32, #tpu.memory_space<vmem>>, vector<8x32xf32>
    %15 = arith.addf %14, %11 : vector<8x32xf32>
    %c0_15 = arith.constant 0 : index
    %c0_16 = arith.constant 0 : index
    %16 = vector.load %arg8[%c0_15, %c0_16] : memref<1x32xf32, #tpu.memory_space<vmem>>, vector<1x32xf32>
    %c0_17 = arith.constant 0 : index
    %c0_18 = arith.constant 0 : index
    %17 = vector.load %arg9[%c0_17, %c0_18] : memref<1x32xf32, #tpu.memory_space<vmem>>, vector<1x32xf32>
    %c0_19 = arith.constant 0 : index
    %c0_20 = arith.constant 0 : index
    %18 = vector.load %arg10[%c0_19, %c0_20] : memref<1x32xf32, #tpu.memory_space<vmem>>, vector<1x32xf32>
    %c0_21 = arith.constant 0 : index
    %c0_22 = arith.constant 0 : index
    %19 = vector.load %arg11[%c0_21, %c0_22] : memref<1x32xf32, #tpu.memory_space<vmem>>, vector<1x32xf32>
    %c0_23 = arith.constant 0 : index
    %c0_24 = arith.constant 0 : index
    %20 = vector.load %arg12[%c0_23, %c0_24] : memref<1x32xf32, #tpu.memory_space<vmem>>, vector<1x32xf32>
    %cst_25 = arith.constant dense<0.000000e+00> : vector<8xf32>
    %21 = vector.multi_reduction <add>, %13, %cst_25 [1] : vector<8x32xf32> to vector<8xf32>
    %22 = vector.shape_cast %21 : vector<8xf32> to vector<8x1xf32>
    %cst_26 = arith.constant 3.200000e+01 : f32
    %23 = vector.broadcast %cst_26 : f32 to vector<8x1xf32>
    %24 = arith.divf %22, %23 : vector<8x1xf32>
    %cst_27 = arith.constant dense<0.000000e+00> : vector<8xf32>
    %25 = vector.multi_reduction <add>, %15, %cst_27 [1] : vector<8x32xf32> to vector<8xf32>
    %26 = vector.shape_cast %25 : vector<8xf32> to vector<8x1xf32>
    %cst_28 = arith.constant 3.200000e+01 : f32
    %27 = vector.broadcast %cst_28 : f32 to vector<8x1xf32>
    %28 = arith.divf %26, %27 : vector<8x1xf32>
    %29 = vector.broadcast %24 : vector<8x1xf32> to vector<8x32xf32>
    %30 = arith.subf %13, %29 : vector<8x32xf32>
    %31 = vector.broadcast %28 : vector<8x1xf32> to vector<8x32xf32>
    %32 = arith.subf %15, %31 : vector<8x32xf32>
    %33 = arith.mulf %30, %30 : vector<8x32xf32>
    %cst_29 = arith.constant dense<0.000000e+00> : vector<8xf32>
    %34 = vector.multi_reduction <add>, %33, %cst_29 [1] : vector<8x32xf32> to vector<8xf32>
    %35 = vector.shape_cast %34 : vector<8xf32> to vector<8x1xf32>
    %36 = arith.mulf %32, %32 : vector<8x32xf32>
    %cst_30 = arith.constant dense<0.000000e+00> : vector<8xf32>
    %37 = vector.multi_reduction <add>, %36, %cst_30 [1] : vector<8x32xf32> to vector<8xf32>
    %38 = vector.shape_cast %37 : vector<8xf32> to vector<8x1xf32>
    %39 = arith.addf %35, %38 : vector<8x1xf32>
    %cst_31 = arith.constant 0.0322580636 : f32
    %40 = vector.broadcast %cst_31 : f32 to vector<8x1xf32>
    %41 = arith.mulf %39, %40 : vector<8x1xf32>
    %cst_32 = arith.constant 9.99999971E-10 : f32
    %42 = vector.broadcast %cst_32 : f32 to vector<8x1xf32>
    %43 = arith.addf %41, %42 : vector<8x1xf32>
    %44 = math.rsqrt %43 : vector<8x1xf32>
    %45 = vector.broadcast %44 : vector<8x1xf32> to vector<8x32xf32>
    %46 = arith.mulf %30, %45 : vector<8x32xf32>
    %47 = vector.broadcast %44 : vector<8x1xf32> to vector<8x32xf32>
    %48 = arith.mulf %32, %47 : vector<8x32xf32>
    %49 = vector.broadcast %16 : vector<1x32xf32> to vector<8x32xf32>
    %50 = arith.mulf %46, %49 : vector<8x32xf32>
    %51 = vector.broadcast %18 : vector<1x32xf32> to vector<8x32xf32>
    %52 = arith.mulf %48, %51 : vector<8x32xf32>
    %53 = arith.addf %50, %52 : vector<8x32xf32>
    %54 = vector.broadcast %19 : vector<1x32xf32> to vector<8x32xf32>
    %55 = arith.addf %53, %54 : vector<8x32xf32>
    %56 = vector.broadcast %18 : vector<1x32xf32> to vector<8x32xf32>
    %57 = arith.mulf %46, %56 : vector<8x32xf32>
    %58 = vector.broadcast %17 : vector<1x32xf32> to vector<8x32xf32>
    %59 = arith.mulf %48, %58 : vector<8x32xf32>
    %60 = arith.addf %57, %59 : vector<8x32xf32>
    %61 = vector.broadcast %20 : vector<1x32xf32> to vector<8x32xf32>
    %62 = arith.addf %60, %61 : vector<8x32xf32>
    %c0_33 = arith.constant 0 : index
    %c0_34 = arith.constant 0 : index
    %63 = vector.load %arg13[%c0_33, %c0_34] : memref<8x32xf32, #tpu.memory_space<vmem>>, vector<8x32xf32>
    tpu.vector_store %arg13[%c0_33, %c0_34], %55 {strides = array<i32>} : memref<8x32xf32, #tpu.memory_space<vmem>>, vector<8x32xf32>,
    %c0_35 = arith.constant 0 : index
    %c0_36 = arith.constant 0 : index
    %64 = vector.load %arg14[%c0_35, %c0_36] : memref<8x32xf32, #tpu.memory_space<vmem>>, vector<8x32xf32>
    tpu.vector_store %arg14[%c0_35, %c0_36], %62 {strides = array<i32>} : memref<8x32xf32, #tpu.memory_space<vmem>>, vector<8x32xf32>,
    return
  }
  func.func @transform_0(%arg0: i32) -> (i32, i32) {
    %c0_i32 = arith.constant 0 : i32
    %c0_i32_0 = arith.constant 0 : i32
    return %arg0, %c0_i32 : i32, i32
  }
  func.func @transform_1(%arg0: i32) -> (i32, i32) {
    %c0_i32 = arith.constant 0 : i32
    %c0_i32_0 = arith.constant 0 : i32
    return %arg0, %c0_i32 : i32, i32
  }
  func.func @transform_2(%arg0: i32) -> (i32, i32) {
    %c0_i32 = arith.constant 0 : i32
    %c0_i32_0 = arith.constant 0 : i32
    return %arg0, %c0_i32 : i32, i32
  }
  func.func @transform_3(%arg0: i32) -> (i32, i32) {
    %c0_i32 = arith.constant 0 : i32
    %c0_i32_0 = arith.constant 0 : i32
    return %arg0, %c0_i32 : i32, i32
  }
  func.func @transform_4(%arg0: i32) -> (i32, i32) {
    %c0_i32 = arith.constant 0 : i32
    %c0_i32_0 = arith.constant 0 : i32
    %c0_i32_1 = arith.constant 0 : i32
    return %c0_i32, %c0_i32_0 : i32, i32
  }
  func.func @transform_5(%arg0: i32) -> (i32, i32) {
    %c0_i32 = arith.constant 0 : i32
    %c0_i32_0 = arith.constant 0 : i32
    %c0_i32_1 = arith.constant 0 : i32
    return %c0_i32, %c0_i32_0 : i32, i32
  }
  func.func @transform_6(%arg0: i32) -> (i32, i32) {
    %c0_i32 = arith.constant 0 : i32
    %c0_i32_0 = arith.constant 0 : i32
    %c0_i32_1 = arith.constant 0 : i32
    return %c0_i32, %c0_i32_0 : i32, i32
  }
  func.func @transform_7(%arg0: i32) -> (i32, i32) {
    %c0_i32 = arith.constant 0 : i32
    %c0_i32_0 = arith.constant 0 : i32
    %c0_i32_1 = arith.constant 0 : i32
    return %c0_i32, %c0_i32_0 : i32, i32
  }
  func.func @transform_8(%arg0: i32) -> (i32, i32) {
    %c0_i32 = arith.constant 0 : i32
    %c0_i32_0 = arith.constant 0 : i32
    %c0_i32_1 = arith.constant 0 : i32
    return %c0_i32, %c0_i32_0 : i32, i32
  }
  func.func @transform_9(%arg0: i32) -> (i32, i32) {
    %c0_i32 = arith.constant 0 : i32
    %c0_i32_0 = arith.constant 0 : i32
    %c0_i32_1 = arith.constant 0 : i32
    return %c0_i32, %c0_i32_0 : i32, i32
  }
  func.func @transform_10(%arg0: i32) -> (i32, i32) {
    %c0_i32 = arith.constant 0 : i32
    %c0_i32_0 = arith.constant 0 : i32
    %c0_i32_1 = arith.constant 0 : i32
    return %c0_i32, %c0_i32_0 : i32, i32
  }
  func.func @transform_11(%arg0: i32) -> (i32, i32) {
    %c0_i32 = arith.constant 0 : i32
    %c0_i32_0 = arith.constant 0 : i32
    %c0_i32_1 = arith.constant 0 : i32
    return %c0_i32, %c0_i32_0 : i32, i32
  }
  func.func @transform_12(%arg0: i32) -> (i32, i32) {
    %c0_i32 = arith.constant 0 : i32
    %c0_i32_0 = arith.constant 0 : i32
    return %arg0, %c0_i32 : i32, i32
  }
  func.func @transform_13(%arg0: i32) -> (i32, i32) {
    %c0_i32 = arith.constant 0 : i32
    %c0_i32_0 = arith.constant 0 : i32
    return %arg0, %c0_i32 : i32, i32
  }
}

module attributes {stable_mosaic.version = 11 : i64} {
  func.func @_mha_kernel(%arg0: i32, %arg1: memref<1x8x96xf32, #tpu.memory_space<vmem>>, %arg2: memref<1x8x96xf32, #tpu.memory_space<vmem>>, %arg3: memref<1x8x32xf32, #tpu.memory_space<vmem>>, %arg4: memref<1x8x32xf32, #tpu.memory_space<vmem>>) attributes {dimension_semantics = [#tpu.dimension_semantics<parallel>], iteration_bounds = array<i64: 2>, scalar_prefetch = 0 : i64, scratch_operands = 0 : i64, tpu.core_type = #tpu.core_type<tc>, window_params = [{transform_indices = @transform_0, window_bounds = array<i64: 1, 8, 96>}, {transform_indices = @transform_1, window_bounds = array<i64: 1, 8, 96>}, {transform_indices = @transform_2, window_bounds = array<i64: 1, 8, 32>}, {transform_indices = @transform_3, window_bounds = array<i64: 1, 8, 32>}]} {
    %c0 = arith.constant 0 : index
    %c0_0 = arith.constant 0 : index
    %c0_1 = arith.constant 0 : index
    %0 = vector.load %arg1[%c0, %c0_0, %c0_1] : memref<1x8x96xf32, #tpu.memory_space<vmem>>, vector<1x8x96xf32>
    %1 = vector.shape_cast %0 : vector<1x8x96xf32> to vector<8x96xf32>
    %c0_2 = arith.constant 0 : index
    %c0_3 = arith.constant 0 : index
    %c0_4 = arith.constant 0 : index
    %2 = vector.load %arg2[%c0_2, %c0_3, %c0_4] : memref<1x8x96xf32, #tpu.memory_space<vmem>>, vector<1x8x96xf32>
    %3 = vector.shape_cast %2 : vector<1x8x96xf32> to vector<8x96xf32>
    %4 = vector.extract_strided_slice %1 {offsets = [0, 0], sizes = [8, 8], strides = [1, 1]} : vector<8x96xf32> to vector<8x8xf32>
    %5 = vector.extract_strided_slice %3 {offsets = [0, 0], sizes = [8, 8], strides = [1, 1]} : vector<8x96xf32> to vector<8x8xf32>
    %6 = vector.extract_strided_slice %1 {offsets = [0, 32], sizes = [8, 8], strides = [1, 1]} : vector<8x96xf32> to vector<8x8xf32>
    %7 = vector.extract_strided_slice %3 {offsets = [0, 32], sizes = [8, 8], strides = [1, 1]} : vector<8x96xf32> to vector<8x8xf32>
    %8 = vector.extract_strided_slice %1 {offsets = [0, 64], sizes = [8, 8], strides = [1, 1]} : vector<8x96xf32> to vector<8x8xf32>
    %9 = vector.extract_strided_slice %3 {offsets = [0, 64], sizes = [8, 8], strides = [1, 1]} : vector<8x96xf32> to vector<8x8xf32>
    %10 = tpu.concatenate %4, %5 in 1 : vector<8x8xf32>, vector<8x8xf32> -> vector<8x16xf32>
    %cst = arith.constant 0.353553385 : f32
    %11 = vector.broadcast %cst : f32 to vector<8x16xf32>
    %12 = arith.mulf %10, %11 : vector<8x16xf32>
    %cst_5 = arith.constant 0.000000e+00 : f32
    %13 = vector.broadcast %cst_5 : f32 to vector<8x8xf32>
    %14 = arith.subf %13, %7 : vector<8x8xf32>
    %15 = tpu.concatenate %6, %14 in 1 : vector<8x8xf32>, vector<8x8xf32> -> vector<8x16xf32>
    %16 = tpu.concatenate %7, %6 in 1 : vector<8x8xf32>, vector<8x8xf32> -> vector<8x16xf32>
    %cst_6 = arith.constant dense<0.000000e+00> : vector<8x8xf32>
    %17 = tpu.matmul %12, %15, %cst_6 {dimension_numbers = #tpu.dot_dimension_numbers<[1], [1], [0], [0], [0, 0, 1, 0], [], []>} : vector<8x16xf32>, vector<8x16xf32>, vector<8x8xf32> -> vector<8x8xf32>
    %cst_7 = arith.constant dense<0.000000e+00> : vector<8x8xf32>
    %18 = tpu.matmul %12, %16, %cst_7 {dimension_numbers = #tpu.dot_dimension_numbers<[1], [1], [0], [0], [0, 0, 1, 0], [], []>} : vector<8x16xf32>, vector<8x16xf32>, vector<8x8xf32> -> vector<8x8xf32>
    %cst_8 = arith.constant dense<0xFF800000> : vector<8xf32>
    %19 = vector.multi_reduction <maximumf>, %17, %cst_8 [1] : vector<8x8xf32> to vector<8xf32>
    %20 = vector.shape_cast %19 : vector<8xf32> to vector<8x1xf32>
    %21 = vector.broadcast %20 : vector<8x1xf32> to vector<8x8xf32>
    %22 = arith.subf %17, %21 : vector<8x8xf32>
    %23 = math.exp %22 : vector<8x8xf32>
    %cst_9 = arith.constant dense<0.000000e+00> : vector<8xf32>
    %24 = vector.multi_reduction <add>, %23, %cst_9 [1] : vector<8x8xf32> to vector<8xf32>
    %25 = vector.shape_cast %24 : vector<8xf32> to vector<8x1xf32>
    %26 = tpu.reciprocal %25 {approx = true} : vector<8x1xf32> -> vector<8x1xf32>
    %27 = vector.broadcast %26 : vector<8x1xf32> to vector<8x8xf32>
    %28 = arith.mulf %23, %27 : vector<8x8xf32>
    %cst_10 = arith.constant dense<0xFF800000> : vector<8xf32>
    %29 = vector.multi_reduction <maximumf>, %18, %cst_10 [1] : vector<8x8xf32> to vector<8xf32>
    %30 = vector.shape_cast %29 : vector<8xf32> to vector<8x1xf32>
    %31 = vector.broadcast %30 : vector<8x1xf32> to vector<8x8xf32>
    %32 = arith.subf %18, %31 : vector<8x8xf32>
    %33 = math.exp %32 : vector<8x8xf32>
    %cst_11 = arith.constant dense<0.000000e+00> : vector<8xf32>
    %34 = vector.multi_reduction <add>, %33, %cst_11 [1] : vector<8x8xf32> to vector<8xf32>
    %35 = vector.shape_cast %34 : vector<8xf32> to vector<8x1xf32>
    %36 = tpu.reciprocal %35 {approx = true} : vector<8x1xf32> -> vector<8x1xf32>
    %37 = vector.broadcast %36 : vector<8x1xf32> to vector<8x8xf32>
    %38 = arith.mulf %33, %37 : vector<8x8xf32>
    %39 = tpu.concatenate %28, %38 in 1 : vector<8x8xf32>, vector<8x8xf32> -> vector<8x16xf32>
    %cst_12 = arith.constant 0.000000e+00 : f32
    %40 = vector.broadcast %cst_12 : f32 to vector<8x8xf32>
    %41 = arith.subf %40, %9 : vector<8x8xf32>
    %42 = tpu.concatenate %8, %41 in 0 : vector<8x8xf32>, vector<8x8xf32> -> vector<16x8xf32>
    %43 = tpu.concatenate %9, %8 in 0 : vector<8x8xf32>, vector<8x8xf32> -> vector<16x8xf32>
    %cst_13 = arith.constant dense<0.000000e+00> : vector<8x8xf32>
    %44 = tpu.matmul %39, %42, %cst_13 {dimension_numbers = #tpu.dot_dimension_numbers<[1], [0], [0], [1], [0, 0, 1, 1], [], []>} : vector<8x16xf32>, vector<16x8xf32>, vector<8x8xf32> -> vector<8x8xf32>
    %cst_14 = arith.constant dense<0.000000e+00> : vector<8x8xf32>
    %45 = tpu.matmul %39, %43, %cst_14 {dimension_numbers = #tpu.dot_dimension_numbers<[1], [0], [0], [1], [0, 0, 1, 1], [], []>} : vector<8x16xf32>, vector<16x8xf32>, vector<8x8xf32> -> vector<8x8xf32>
    %46 = vector.extract_strided_slice %1 {offsets = [0, 8], sizes = [8, 8], strides = [1, 1]} : vector<8x96xf32> to vector<8x8xf32>
    %47 = vector.extract_strided_slice %3 {offsets = [0, 8], sizes = [8, 8], strides = [1, 1]} : vector<8x96xf32> to vector<8x8xf32>
    %48 = vector.extract_strided_slice %1 {offsets = [0, 40], sizes = [8, 8], strides = [1, 1]} : vector<8x96xf32> to vector<8x8xf32>
    %49 = vector.extract_strided_slice %3 {offsets = [0, 40], sizes = [8, 8], strides = [1, 1]} : vector<8x96xf32> to vector<8x8xf32>
    %50 = vector.extract_strided_slice %1 {offsets = [0, 72], sizes = [8, 8], strides = [1, 1]} : vector<8x96xf32> to vector<8x8xf32>
    %51 = vector.extract_strided_slice %3 {offsets = [0, 72], sizes = [8, 8], strides = [1, 1]} : vector<8x96xf32> to vector<8x8xf32>
    %52 = tpu.concatenate %46, %47 in 1 : vector<8x8xf32>, vector<8x8xf32> -> vector<8x16xf32>
    %cst_15 = arith.constant 0.353553385 : f32
    %53 = vector.broadcast %cst_15 : f32 to vector<8x16xf32>
    %54 = arith.mulf %52, %53 : vector<8x16xf32>
    %cst_16 = arith.constant 0.000000e+00 : f32
    %55 = vector.broadcast %cst_16 : f32 to vector<8x8xf32>
    %56 = arith.subf %55, %49 : vector<8x8xf32>
    %57 = tpu.concatenate %48, %56 in 1 : vector<8x8xf32>, vector<8x8xf32> -> vector<8x16xf32>
    %58 = tpu.concatenate %49, %48 in 1 : vector<8x8xf32>, vector<8x8xf32> -> vector<8x16xf32>
    %cst_17 = arith.constant dense<0.000000e+00> : vector<8x8xf32>
    %59 = tpu.matmul %54, %57, %cst_17 {dimension_numbers = #tpu.dot_dimension_numbers<[1], [1], [0], [0], [0, 0, 1, 0], [], []>} : vector<8x16xf32>, vector<8x16xf32>, vector<8x8xf32> -> vector<8x8xf32>
    %cst_18 = arith.constant dense<0.000000e+00> : vector<8x8xf32>
    %60 = tpu.matmul %54, %58, %cst_18 {dimension_numbers = #tpu.dot_dimension_numbers<[1], [1], [0], [0], [0, 0, 1, 0], [], []>} : vector<8x16xf32>, vector<8x16xf32>, vector<8x8xf32> -> vector<8x8xf32>
    %cst_19 = arith.constant dense<0xFF800000> : vector<8xf32>
    %61 = vector.multi_reduction <maximumf>, %59, %cst_19 [1] : vector<8x8xf32> to vector<8xf32>
    %62 = vector.shape_cast %61 : vector<8xf32> to vector<8x1xf32>
    %63 = vector.broadcast %62 : vector<8x1xf32> to vector<8x8xf32>
    %64 = arith.subf %59, %63 : vector<8x8xf32>
    %65 = math.exp %64 : vector<8x8xf32>
    %cst_20 = arith.constant dense<0.000000e+00> : vector<8xf32>
    %66 = vector.multi_reduction <add>, %65, %cst_20 [1] : vector<8x8xf32> to vector<8xf32>
    %67 = vector.shape_cast %66 : vector<8xf32> to vector<8x1xf32>
    %68 = tpu.reciprocal %67 {approx = true} : vector<8x1xf32> -> vector<8x1xf32>
    %69 = vector.broadcast %68 : vector<8x1xf32> to vector<8x8xf32>
    %70 = arith.mulf %65, %69 : vector<8x8xf32>
    %cst_21 = arith.constant dense<0xFF800000> : vector<8xf32>
    %71 = vector.multi_reduction <maximumf>, %60, %cst_21 [1] : vector<8x8xf32> to vector<8xf32>
    %72 = vector.shape_cast %71 : vector<8xf32> to vector<8x1xf32>
    %73 = vector.broadcast %72 : vector<8x1xf32> to vector<8x8xf32>
    %74 = arith.subf %60, %73 : vector<8x8xf32>
    %75 = math.exp %74 : vector<8x8xf32>
    %cst_22 = arith.constant dense<0.000000e+00> : vector<8xf32>
    %76 = vector.multi_reduction <add>, %75, %cst_22 [1] : vector<8x8xf32> to vector<8xf32>
    %77 = vector.shape_cast %76 : vector<8xf32> to vector<8x1xf32>
    %78 = tpu.reciprocal %77 {approx = true} : vector<8x1xf32> -> vector<8x1xf32>
    %79 = vector.broadcast %78 : vector<8x1xf32> to vector<8x8xf32>
    %80 = arith.mulf %75, %79 : vector<8x8xf32>
    %81 = tpu.concatenate %70, %80 in 1 : vector<8x8xf32>, vector<8x8xf32> -> vector<8x16xf32>
    %cst_23 = arith.constant 0.000000e+00 : f32
    %82 = vector.broadcast %cst_23 : f32 to vector<8x8xf32>
    %83 = arith.subf %82, %51 : vector<8x8xf32>
    %84 = tpu.concatenate %50, %83 in 0 : vector<8x8xf32>, vector<8x8xf32> -> vector<16x8xf32>
    %85 = tpu.concatenate %51, %50 in 0 : vector<8x8xf32>, vector<8x8xf32> -> vector<16x8xf32>
    %cst_24 = arith.constant dense<0.000000e+00> : vector<8x8xf32>
    %86 = tpu.matmul %81, %84, %cst_24 {dimension_numbers = #tpu.dot_dimension_numbers<[1], [0], [0], [1], [0, 0, 1, 1], [], []>} : vector<8x16xf32>, vector<16x8xf32>, vector<8x8xf32> -> vector<8x8xf32>
    %cst_25 = arith.constant dense<0.000000e+00> : vector<8x8xf32>
    %87 = tpu.matmul %81, %85, %cst_25 {dimension_numbers = #tpu.dot_dimension_numbers<[1], [0], [0], [1], [0, 0, 1, 1], [], []>} : vector<8x16xf32>, vector<16x8xf32>, vector<8x8xf32> -> vector<8x8xf32>
    %88 = vector.extract_strided_slice %1 {offsets = [0, 16], sizes = [8, 8], strides = [1, 1]} : vector<8x96xf32> to vector<8x8xf32>
    %89 = vector.extract_strided_slice %3 {offsets = [0, 16], sizes = [8, 8], strides = [1, 1]} : vector<8x96xf32> to vector<8x8xf32>
    %90 = vector.extract_strided_slice %1 {offsets = [0, 48], sizes = [8, 8], strides = [1, 1]} : vector<8x96xf32> to vector<8x8xf32>
    %91 = vector.extract_strided_slice %3 {offsets = [0, 48], sizes = [8, 8], strides = [1, 1]} : vector<8x96xf32> to vector<8x8xf32>
    %92 = vector.extract_strided_slice %1 {offsets = [0, 80], sizes = [8, 8], strides = [1, 1]} : vector<8x96xf32> to vector<8x8xf32>
    %93 = vector.extract_strided_slice %3 {offsets = [0, 80], sizes = [8, 8], strides = [1, 1]} : vector<8x96xf32> to vector<8x8xf32>
    %94 = tpu.concatenate %88, %89 in 1 : vector<8x8xf32>, vector<8x8xf32> -> vector<8x16xf32>
    %cst_26 = arith.constant 0.353553385 : f32
    %95 = vector.broadcast %cst_26 : f32 to vector<8x16xf32>
    %96 = arith.mulf %94, %95 : vector<8x16xf32>
    %cst_27 = arith.constant 0.000000e+00 : f32
    %97 = vector.broadcast %cst_27 : f32 to vector<8x8xf32>
    %98 = arith.subf %97, %91 : vector<8x8xf32>
    %99 = tpu.concatenate %90, %98 in 1 : vector<8x8xf32>, vector<8x8xf32> -> vector<8x16xf32>
    %100 = tpu.concatenate %91, %90 in 1 : vector<8x8xf32>, vector<8x8xf32> -> vector<8x16xf32>
    %cst_28 = arith.constant dense<0.000000e+00> : vector<8x8xf32>
    %101 = tpu.matmul %96, %99, %cst_28 {dimension_numbers = #tpu.dot_dimension_numbers<[1], [1], [0], [0], [0, 0, 1, 0], [], []>} : vector<8x16xf32>, vector<8x16xf32>, vector<8x8xf32> -> vector<8x8xf32>
    %cst_29 = arith.constant dense<0.000000e+00> : vector<8x8xf32>
    %102 = tpu.matmul %96, %100, %cst_29 {dimension_numbers = #tpu.dot_dimension_numbers<[1], [1], [0], [0], [0, 0, 1, 0], [], []>} : vector<8x16xf32>, vector<8x16xf32>, vector<8x8xf32> -> vector<8x8xf32>
    %cst_30 = arith.constant dense<0xFF800000> : vector<8xf32>
    %103 = vector.multi_reduction <maximumf>, %101, %cst_30 [1] : vector<8x8xf32> to vector<8xf32>
    %104 = vector.shape_cast %103 : vector<8xf32> to vector<8x1xf32>
    %105 = vector.broadcast %104 : vector<8x1xf32> to vector<8x8xf32>
    %106 = arith.subf %101, %105 : vector<8x8xf32>
    %107 = math.exp %106 : vector<8x8xf32>
    %cst_31 = arith.constant dense<0.000000e+00> : vector<8xf32>
    %108 = vector.multi_reduction <add>, %107, %cst_31 [1] : vector<8x8xf32> to vector<8xf32>
    %109 = vector.shape_cast %108 : vector<8xf32> to vector<8x1xf32>
    %110 = tpu.reciprocal %109 {approx = true} : vector<8x1xf32> -> vector<8x1xf32>
    %111 = vector.broadcast %110 : vector<8x1xf32> to vector<8x8xf32>
    %112 = arith.mulf %107, %111 : vector<8x8xf32>
    %cst_32 = arith.constant dense<0xFF800000> : vector<8xf32>
    %113 = vector.multi_reduction <maximumf>, %102, %cst_32 [1] : vector<8x8xf32> to vector<8xf32>
    %114 = vector.shape_cast %113 : vector<8xf32> to vector<8x1xf32>
    %115 = vector.broadcast %114 : vector<8x1xf32> to vector<8x8xf32>
    %116 = arith.subf %102, %115 : vector<8x8xf32>
    %117 = math.exp %116 : vector<8x8xf32>
    %cst_33 = arith.constant dense<0.000000e+00> : vector<8xf32>
    %118 = vector.multi_reduction <add>, %117, %cst_33 [1] : vector<8x8xf32> to vector<8xf32>
    %119 = vector.shape_cast %118 : vector<8xf32> to vector<8x1xf32>
    %120 = tpu.reciprocal %119 {approx = true} : vector<8x1xf32> -> vector<8x1xf32>
    %121 = vector.broadcast %120 : vector<8x1xf32> to vector<8x8xf32>
    %122 = arith.mulf %117, %121 : vector<8x8xf32>
    %123 = tpu.concatenate %112, %122 in 1 : vector<8x8xf32>, vector<8x8xf32> -> vector<8x16xf32>
    %cst_34 = arith.constant 0.000000e+00 : f32
    %124 = vector.broadcast %cst_34 : f32 to vector<8x8xf32>
    %125 = arith.subf %124, %93 : vector<8x8xf32>
    %126 = tpu.concatenate %92, %125 in 0 : vector<8x8xf32>, vector<8x8xf32> -> vector<16x8xf32>
    %127 = tpu.concatenate %93, %92 in 0 : vector<8x8xf32>, vector<8x8xf32> -> vector<16x8xf32>
    %cst_35 = arith.constant dense<0.000000e+00> : vector<8x8xf32>
    %128 = tpu.matmul %123, %126, %cst_35 {dimension_numbers = #tpu.dot_dimension_numbers<[1], [0], [0], [1], [0, 0, 1, 1], [], []>} : vector<8x16xf32>, vector<16x8xf32>, vector<8x8xf32> -> vector<8x8xf32>
    %cst_36 = arith.constant dense<0.000000e+00> : vector<8x8xf32>
    %129 = tpu.matmul %123, %127, %cst_36 {dimension_numbers = #tpu.dot_dimension_numbers<[1], [0], [0], [1], [0, 0, 1, 1], [], []>} : vector<8x16xf32>, vector<16x8xf32>, vector<8x8xf32> -> vector<8x8xf32>
    %130 = vector.extract_strided_slice %1 {offsets = [0, 24], sizes = [8, 8], strides = [1, 1]} : vector<8x96xf32> to vector<8x8xf32>
    %131 = vector.extract_strided_slice %3 {offsets = [0, 24], sizes = [8, 8], strides = [1, 1]} : vector<8x96xf32> to vector<8x8xf32>
    %132 = vector.extract_strided_slice %1 {offsets = [0, 56], sizes = [8, 8], strides = [1, 1]} : vector<8x96xf32> to vector<8x8xf32>
    %133 = vector.extract_strided_slice %3 {offsets = [0, 56], sizes = [8, 8], strides = [1, 1]} : vector<8x96xf32> to vector<8x8xf32>
    %134 = vector.extract_strided_slice %1 {offsets = [0, 88], sizes = [8, 8], strides = [1, 1]} : vector<8x96xf32> to vector<8x8xf32>
    %135 = vector.extract_strided_slice %3 {offsets = [0, 88], sizes = [8, 8], strides = [1, 1]} : vector<8x96xf32> to vector<8x8xf32>
    %136 = tpu.concatenate %130, %131 in 1 : vector<8x8xf32>, vector<8x8xf32> -> vector<8x16xf32>
    %cst_37 = arith.constant 0.353553385 : f32
    %137 = vector.broadcast %cst_37 : f32 to vector<8x16xf32>
    %138 = arith.mulf %136, %137 : vector<8x16xf32>
    %cst_38 = arith.constant 0.000000e+00 : f32
    %139 = vector.broadcast %cst_38 : f32 to vector<8x8xf32>
    %140 = arith.subf %139, %133 : vector<8x8xf32>
    %141 = tpu.concatenate %132, %140 in 1 : vector<8x8xf32>, vector<8x8xf32> -> vector<8x16xf32>
    %142 = tpu.concatenate %133, %132 in 1 : vector<8x8xf32>, vector<8x8xf32> -> vector<8x16xf32>
    %cst_39 = arith.constant dense<0.000000e+00> : vector<8x8xf32>
    %143 = tpu.matmul %138, %141, %cst_39 {dimension_numbers = #tpu.dot_dimension_numbers<[1], [1], [0], [0], [0, 0, 1, 0], [], []>} : vector<8x16xf32>, vector<8x16xf32>, vector<8x8xf32> -> vector<8x8xf32>
    %cst_40 = arith.constant dense<0.000000e+00> : vector<8x8xf32>
    %144 = tpu.matmul %138, %142, %cst_40 {dimension_numbers = #tpu.dot_dimension_numbers<[1], [1], [0], [0], [0, 0, 1, 0], [], []>} : vector<8x16xf32>, vector<8x16xf32>, vector<8x8xf32> -> vector<8x8xf32>
    %cst_41 = arith.constant dense<0xFF800000> : vector<8xf32>
    %145 = vector.multi_reduction <maximumf>, %143, %cst_41 [1] : vector<8x8xf32> to vector<8xf32>
    %146 = vector.shape_cast %145 : vector<8xf32> to vector<8x1xf32>
    %147 = vector.broadcast %146 : vector<8x1xf32> to vector<8x8xf32>
    %148 = arith.subf %143, %147 : vector<8x8xf32>
    %149 = math.exp %148 : vector<8x8xf32>
    %cst_42 = arith.constant dense<0.000000e+00> : vector<8xf32>
    %150 = vector.multi_reduction <add>, %149, %cst_42 [1] : vector<8x8xf32> to vector<8xf32>
    %151 = vector.shape_cast %150 : vector<8xf32> to vector<8x1xf32>
    %152 = tpu.reciprocal %151 {approx = true} : vector<8x1xf32> -> vector<8x1xf32>
    %153 = vector.broadcast %152 : vector<8x1xf32> to vector<8x8xf32>
    %154 = arith.mulf %149, %153 : vector<8x8xf32>
    %cst_43 = arith.constant dense<0xFF800000> : vector<8xf32>
    %155 = vector.multi_reduction <maximumf>, %144, %cst_43 [1] : vector<8x8xf32> to vector<8xf32>
    %156 = vector.shape_cast %155 : vector<8xf32> to vector<8x1xf32>
    %157 = vector.broadcast %156 : vector<8x1xf32> to vector<8x8xf32>
    %158 = arith.subf %144, %157 : vector<8x8xf32>
    %159 = math.exp %158 : vector<8x8xf32>
    %cst_44 = arith.constant dense<0.000000e+00> : vector<8xf32>
    %160 = vector.multi_reduction <add>, %159, %cst_44 [1] : vector<8x8xf32> to vector<8xf32>
    %161 = vector.shape_cast %160 : vector<8xf32> to vector<8x1xf32>
    %162 = tpu.reciprocal %161 {approx = true} : vector<8x1xf32> -> vector<8x1xf32>
    %163 = vector.broadcast %162 : vector<8x1xf32> to vector<8x8xf32>
    %164 = arith.mulf %159, %163 : vector<8x8xf32>
    %165 = tpu.concatenate %154, %164 in 1 : vector<8x8xf32>, vector<8x8xf32> -> vector<8x16xf32>
    %cst_45 = arith.constant 0.000000e+00 : f32
    %166 = vector.broadcast %cst_45 : f32 to vector<8x8xf32>
    %167 = arith.subf %166, %135 : vector<8x8xf32>
    %168 = tpu.concatenate %134, %167 in 0 : vector<8x8xf32>, vector<8x8xf32> -> vector<16x8xf32>
    %169 = tpu.concatenate %135, %134 in 0 : vector<8x8xf32>, vector<8x8xf32> -> vector<16x8xf32>
    %cst_46 = arith.constant dense<0.000000e+00> : vector<8x8xf32>
    %170 = tpu.matmul %165, %168, %cst_46 {dimension_numbers = #tpu.dot_dimension_numbers<[1], [0], [0], [1], [0, 0, 1, 1], [], []>} : vector<8x16xf32>, vector<16x8xf32>, vector<8x8xf32> -> vector<8x8xf32>
    %cst_47 = arith.constant dense<0.000000e+00> : vector<8x8xf32>
    %171 = tpu.matmul %165, %169, %cst_47 {dimension_numbers = #tpu.dot_dimension_numbers<[1], [0], [0], [1], [0, 0, 1, 1], [], []>} : vector<8x16xf32>, vector<16x8xf32>, vector<8x8xf32> -> vector<8x8xf32>
    %172 = tpu.concatenate %44, %86, %128, %170 in 1 : vector<8x8xf32>, vector<8x8xf32>, vector<8x8xf32>, vector<8x8xf32> -> vector<8x32xf32>
    %c0_48 = arith.constant 0 : index
    %c0_49 = arith.constant 0 : index
    %c0_50 = arith.constant 0 : index
    %173 = vector.load %arg3[%c0_48, %c0_49, %c0_50] : memref<1x8x32xf32, #tpu.memory_space<vmem>>, vector<1x8x32xf32>
    %174 = vector.shape_cast %173 : vector<1x8x32xf32> to vector<8x32xf32>
    %175 = vector.shape_cast %172 : vector<8x32xf32> to vector<1x8x32xf32>
    tpu.vector_store %arg3[%c0_48, %c0_49, %c0_50], %175 {strides = array<i32>} : memref<1x8x32xf32, #tpu.memory_space<vmem>>, vector<1x8x32xf32>,
    %176 = tpu.concatenate %45, %87, %129, %171 in 1 : vector<8x8xf32>, vector<8x8xf32>, vector<8x8xf32>, vector<8x8xf32> -> vector<8x32xf32>
    %c0_51 = arith.constant 0 : index
    %c0_52 = arith.constant 0 : index
    %c0_53 = arith.constant 0 : index
    %177 = vector.load %arg4[%c0_51, %c0_52, %c0_53] : memref<1x8x32xf32, #tpu.memory_space<vmem>>, vector<1x8x32xf32>
    %178 = vector.shape_cast %177 : vector<1x8x32xf32> to vector<8x32xf32>
    %179 = vector.shape_cast %176 : vector<8x32xf32> to vector<1x8x32xf32>
    tpu.vector_store %arg4[%c0_51, %c0_52, %c0_53], %179 {strides = array<i32>} : memref<1x8x32xf32, #tpu.memory_space<vmem>>, vector<1x8x32xf32>,
    return
  }
  func.func @transform_0(%arg0: i32) -> (i32, i32, i32) {
    %c0_i32 = arith.constant 0 : i32
    %c0_i32_0 = arith.constant 0 : i32
    %c0_i32_1 = arith.constant 0 : i32
    return %arg0, %c0_i32, %c0_i32_0 : i32, i32, i32
  }
  func.func @transform_1(%arg0: i32) -> (i32, i32, i32) {
    %c0_i32 = arith.constant 0 : i32
    %c0_i32_0 = arith.constant 0 : i32
    %c0_i32_1 = arith.constant 0 : i32
    return %arg0, %c0_i32, %c0_i32_0 : i32, i32, i32
  }
  func.func @transform_2(%arg0: i32) -> (i32, i32, i32) {
    %c0_i32 = arith.constant 0 : i32
    %c0_i32_0 = arith.constant 0 : i32
    %c0_i32_1 = arith.constant 0 : i32
    return %arg0, %c0_i32, %c0_i32_0 : i32, i32, i32
  }
  func.func @transform_3(%arg0: i32) -> (i32, i32, i32) {
    %c0_i32 = arith.constant 0 : i32
    %c0_i32_0 = arith.constant 0 : i32
    %c0_i32_1 = arith.constant 0 : i32
    return %arg0, %c0_i32, %c0_i32_0 : i32, i32, i32
  }
}

module attributes {stable_mosaic.version = 11 : i64} {
  func.func @_qkv_proj_kernel(%arg0: i32, %arg1: memref<8x32xf32, #tpu.memory_space<vmem>>, %arg2: memref<8x32xf32, #tpu.memory_space<vmem>>, %arg3: memref<32x96xf32, #tpu.memory_space<vmem>>, %arg4: memref<32x96xf32, #tpu.memory_space<vmem>>, %arg5: memref<32x96xf32, #tpu.memory_space<vmem>>, %arg6: memref<8x96xf32, #tpu.memory_space<vmem>>, %arg7: memref<8x96xf32, #tpu.memory_space<vmem>>) attributes {dimension_semantics = [#tpu.dimension_semantics<parallel>], iteration_bounds = array<i64: 2>, scalar_prefetch = 0 : i64, scratch_operands = 0 : i64, tpu.core_type = #tpu.core_type<tc>, window_params = [{transform_indices = @transform_0, window_bounds = array<i64: 8, 32>}, {transform_indices = @transform_1, window_bounds = array<i64: 8, 32>}, {pipeline_mode = #tpu.pipeline_mode<synchronous>, transform_indices = @transform_2, window_bounds = array<i64: 32, 96>}, {pipeline_mode = #tpu.pipeline_mode<synchronous>, transform_indices = @transform_3, window_bounds = array<i64: 32, 96>}, {pipeline_mode = #tpu.pipeline_mode<synchronous>, transform_indices = @transform_4, window_bounds = array<i64: 32, 96>}, {transform_indices = @transform_5, window_bounds = array<i64: 8, 96>}, {transform_indices = @transform_6, window_bounds = array<i64: 8, 96>}]} {
    %c0 = arith.constant 0 : index
    %c0_0 = arith.constant 0 : index
    %0 = vector.load %arg1[%c0, %c0_0] : memref<8x32xf32, #tpu.memory_space<vmem>>, vector<8x32xf32>
    %c0_1 = arith.constant 0 : index
    %c0_2 = arith.constant 0 : index
    %1 = vector.load %arg2[%c0_1, %c0_2] : memref<8x32xf32, #tpu.memory_space<vmem>>, vector<8x32xf32>
    %c0_3 = arith.constant 0 : index
    %c0_4 = arith.constant 0 : index
    %2 = vector.load %arg3[%c0_3, %c0_4] : memref<32x96xf32, #tpu.memory_space<vmem>>, vector<32x96xf32>
    %cst = arith.constant dense<0.000000e+00> : vector<8x96xf32>
    %3 = tpu.matmul %0, %2, %cst {dimension_numbers = #tpu.dot_dimension_numbers<[1], [0], [0], [1], [0, 0, 1, 1], [], []>} : vector<8x32xf32>, vector<32x96xf32>, vector<8x96xf32> -> vector<8x96xf32>
    %c0_5 = arith.constant 0 : index
    %c0_6 = arith.constant 0 : index
    %4 = vector.load %arg4[%c0_5, %c0_6] : memref<32x96xf32, #tpu.memory_space<vmem>>, vector<32x96xf32>
    %cst_7 = arith.constant dense<0.000000e+00> : vector<8x96xf32>
    %5 = tpu.matmul %1, %4, %cst_7 {dimension_numbers = #tpu.dot_dimension_numbers<[1], [0], [0], [1], [0, 0, 1, 1], [], []>} : vector<8x32xf32>, vector<32x96xf32>, vector<8x96xf32> -> vector<8x96xf32>
    %6 = arith.addf %0, %1 : vector<8x32xf32>
    %c0_8 = arith.constant 0 : index
    %c0_9 = arith.constant 0 : index
    %7 = vector.load %arg5[%c0_8, %c0_9] : memref<32x96xf32, #tpu.memory_space<vmem>>, vector<32x96xf32>
    %cst_10 = arith.constant dense<0.000000e+00> : vector<8x96xf32>
    %8 = tpu.matmul %6, %7, %cst_10 {dimension_numbers = #tpu.dot_dimension_numbers<[1], [0], [0], [1], [0, 0, 1, 1], [], []>} : vector<8x32xf32>, vector<32x96xf32>, vector<8x96xf32> -> vector<8x96xf32>
    %9 = arith.subf %3, %5 : vector<8x96xf32>
    %10 = arith.subf %8, %3 : vector<8x96xf32>
    %11 = arith.subf %10, %5 : vector<8x96xf32>
    %c0_11 = arith.constant 0 : index
    %c0_12 = arith.constant 0 : index
    %12 = vector.load %arg6[%c0_11, %c0_12] : memref<8x96xf32, #tpu.memory_space<vmem>>, vector<8x96xf32>
    tpu.vector_store %arg6[%c0_11, %c0_12], %9 {strides = array<i32>} : memref<8x96xf32, #tpu.memory_space<vmem>>, vector<8x96xf32>,
    %c0_13 = arith.constant 0 : index
    %c0_14 = arith.constant 0 : index
    %13 = vector.load %arg7[%c0_13, %c0_14] : memref<8x96xf32, #tpu.memory_space<vmem>>, vector<8x96xf32>
    tpu.vector_store %arg7[%c0_13, %c0_14], %11 {strides = array<i32>} : memref<8x96xf32, #tpu.memory_space<vmem>>, vector<8x96xf32>,
    return
  }
  func.func @transform_0(%arg0: i32) -> (i32, i32) {
    %c0_i32 = arith.constant 0 : i32
    %c0_i32_0 = arith.constant 0 : i32
    return %arg0, %c0_i32 : i32, i32
  }
  func.func @transform_1(%arg0: i32) -> (i32, i32) {
    %c0_i32 = arith.constant 0 : i32
    %c0_i32_0 = arith.constant 0 : i32
    return %arg0, %c0_i32 : i32, i32
  }
  func.func @transform_2(%arg0: i32) -> (i32, i32) {
    %c0_i32 = arith.constant 0 : i32
    %c0_i32_0 = arith.constant 0 : i32
    %c0_i32_1 = arith.constant 0 : i32
    return %c0_i32, %c0_i32_0 : i32, i32
  }
  func.func @transform_3(%arg0: i32) -> (i32, i32) {
    %c0_i32 = arith.constant 0 : i32
    %c0_i32_0 = arith.constant 0 : i32
    %c0_i32_1 = arith.constant 0 : i32
    return %c0_i32, %c0_i32_0 : i32, i32
  }
  func.func @transform_4(%arg0: i32) -> (i32, i32) {
    %c0_i32 = arith.constant 0 : i32
    %c0_i32_0 = arith.constant 0 : i32
    %c0_i32_1 = arith.constant 0 : i32
    return %c0_i32, %c0_i32_0 : i32, i32
  }
  func.func @transform_5(%arg0: i32) -> (i32, i32) {
    %c0_i32 = arith.constant 0 : i32
    %c0_i32_0 = arith.constant 0 : i32
    return %arg0, %c0_i32 : i32, i32
  }
  func.func @transform_6(%arg0: i32) -> (i32, i32) {
    %c0_i32 = arith.constant 0 : i32
    %c0_i32_0 = arith.constant 0 : i32
    return %arg0, %c0_i32 : i32, i32
  }
}

module attributes {stable_mosaic.version = 11 : i64} {
  func.func @_ffn_addnorm_kernel(%arg0: i32, %arg1: memref<8x32xf32, #tpu.memory_space<vmem>>, %arg2: memref<8x32xf32, #tpu.memory_space<vmem>>, %arg3: memref<32x32xf32, #tpu.memory_space<vmem>>, %arg4: memref<32x32xf32, #tpu.memory_space<vmem>>, %arg5: memref<32x32xf32, #tpu.memory_space<vmem>>, %arg6: memref<1x32xf32, #tpu.memory_space<vmem>>, %arg7: memref<1x32xf32, #tpu.memory_space<vmem>>, %arg8: memref<32x32xf32, #tpu.memory_space<vmem>>, %arg9: memref<32x32xf32, #tpu.memory_space<vmem>>, %arg10: memref<32x32xf32, #tpu.memory_space<vmem>>, %arg11: memref<1x32xf32, #tpu.memory_space<vmem>>, %arg12: memref<1x32xf32, #tpu.memory_space<vmem>>, %arg13: memref<1x32xf32, #tpu.memory_space<vmem>>, %arg14: memref<1x32xf32, #tpu.memory_space<vmem>>, %arg15: memref<1x32xf32, #tpu.memory_space<vmem>>, %arg16: memref<1x32xf32, #tpu.memory_space<vmem>>, %arg17: memref<1x32xf32, #tpu.memory_space<vmem>>, %arg18: memref<8x32xf32, #tpu.memory_space<vmem>>, %arg19: memref<8x32xf32, #tpu.memory_space<vmem>>) attributes {dimension_semantics = [#tpu.dimension_semantics<parallel>], iteration_bounds = array<i64: 2>, scalar_prefetch = 0 : i64, scratch_operands = 0 : i64, tpu.core_type = #tpu.core_type<tc>, window_params = [{transform_indices = @transform_0, window_bounds = array<i64: 8, 32>}, {transform_indices = @transform_1, window_bounds = array<i64: 8, 32>}, {pipeline_mode = #tpu.pipeline_mode<synchronous>, transform_indices = @transform_2, window_bounds = array<i64: 32, 32>}, {pipeline_mode = #tpu.pipeline_mode<synchronous>, transform_indices = @transform_3, window_bounds = array<i64: 32, 32>}, {pipeline_mode = #tpu.pipeline_mode<synchronous>, transform_indices = @transform_4, window_bounds = array<i64: 32, 32>}, {pipeline_mode = #tpu.pipeline_mode<synchronous>, transform_indices = @transform_5, window_bounds = array<i64: 1, 32>}, {pipeline_mode = #tpu.pipeline_mode<synchronous>, transform_indices = @transform_6, window_bounds = array<i64: 1, 32>}, {pipeline_mode = #tpu.pipeline_mode<synchronous>, transform_indices = @transform_7, window_bounds = array<i64: 32, 32>}, {pipeline_mode = #tpu.pipeline_mode<synchronous>, transform_indices = @transform_8, window_bounds = array<i64: 32, 32>}, {pipeline_mode = #tpu.pipeline_mode<synchronous>, transform_indices = @transform_9, window_bounds = array<i64: 32, 32>}, {pipeline_mode = #tpu.pipeline_mode<synchronous>, transform_indices = @transform_10, window_bounds = array<i64: 1, 32>}, {pipeline_mode = #tpu.pipeline_mode<synchronous>, transform_indices = @transform_11, window_bounds = array<i64: 1, 32>}, {pipeline_mode = #tpu.pipeline_mode<synchronous>, transform_indices = @transform_12, window_bounds = array<i64: 1, 32>}, {pipeline_mode = #tpu.pipeline_mode<synchronous>, transform_indices = @transform_13, window_bounds = array<i64: 1, 32>}, {pipeline_mode = #tpu.pipeline_mode<synchronous>, transform_indices = @transform_14, window_bounds = array<i64: 1, 32>}, {pipeline_mode = #tpu.pipeline_mode<synchronous>, transform_indices = @transform_15, window_bounds = array<i64: 1, 32>}, {pipeline_mode = #tpu.pipeline_mode<synchronous>, transform_indices = @transform_16, window_bounds = array<i64: 1, 32>}, {transform_indices = @transform_17, window_bounds = array<i64: 8, 32>}, {transform_indices = @transform_18, window_bounds = array<i64: 8, 32>}]} {
    %c0 = arith.constant 0 : index
    %c0_0 = arith.constant 0 : index
    %0 = vector.load %arg1[%c0, %c0_0] : memref<8x32xf32, #tpu.memory_space<vmem>>, vector<8x32xf32>
    %c0_1 = arith.constant 0 : index
    %c0_2 = arith.constant 0 : index
    %1 = vector.load %arg2[%c0_1, %c0_2] : memref<8x32xf32, #tpu.memory_space<vmem>>, vector<8x32xf32>
    %c0_3 = arith.constant 0 : index
    %c0_4 = arith.constant 0 : index
    %2 = vector.load %arg3[%c0_3, %c0_4] : memref<32x32xf32, #tpu.memory_space<vmem>>, vector<32x32xf32>
    %cst = arith.constant dense<0.000000e+00> : vector<8x32xf32>
    %3 = tpu.matmul %0, %2, %cst {dimension_numbers = #tpu.dot_dimension_numbers<[1], [0], [0], [1], [0, 0, 1, 1], [], []>} : vector<8x32xf32>, vector<32x32xf32>, vector<8x32xf32> -> vector<8x32xf32>
    %c0_5 = arith.constant 0 : index
    %c0_6 = arith.constant 0 : index
    %4 = vector.load %arg4[%c0_5, %c0_6] : memref<32x32xf32, #tpu.memory_space<vmem>>, vector<32x32xf32>
    %cst_7 = arith.constant dense<0.000000e+00> : vector<8x32xf32>
    %5 = tpu.matmul %1, %4, %cst_7 {dimension_numbers = #tpu.dot_dimension_numbers<[1], [0], [0], [1], [0, 0, 1, 1], [], []>} : vector<8x32xf32>, vector<32x32xf32>, vector<8x32xf32> -> vector<8x32xf32>
    %6 = arith.addf %0, %1 : vector<8x32xf32>
    %c0_8 = arith.constant 0 : index
    %c0_9 = arith.constant 0 : index
    %7 = vector.load %arg5[%c0_8, %c0_9] : memref<32x32xf32, #tpu.memory_space<vmem>>, vector<32x32xf32>
    %cst_10 = arith.constant dense<0.000000e+00> : vector<8x32xf32>
    %8 = tpu.matmul %6, %7, %cst_10 {dimension_numbers = #tpu.dot_dimension_numbers<[1], [0], [0], [1], [0, 0, 1, 1], [], []>} : vector<8x32xf32>, vector<32x32xf32>, vector<8x32xf32> -> vector<8x32xf32>
    %9 = arith.subf %3, %5 : vector<8x32xf32>
    %10 = arith.subf %8, %3 : vector<8x32xf32>
    %11 = arith.subf %10, %5 : vector<8x32xf32>
    %c0_11 = arith.constant 0 : index
    %c0_12 = arith.constant 0 : index
    %12 = vector.load %arg6[%c0_11, %c0_12] : memref<1x32xf32, #tpu.memory_space<vmem>>, vector<1x32xf32>
    %13 = vector.broadcast %12 : vector<1x32xf32> to vector<8x32xf32>
    %14 = arith.addf %9, %13 : vector<8x32xf32>
    %cst_13 = arith.constant 0.000000e+00 : f32
    %15 = vector.broadcast %cst_13 : f32 to vector<8x32xf32>
    %16 = arith.maximumf %14, %15 : vector<8x32xf32>
    %c0_14 = arith.constant 0 : index
    %c0_15 = arith.constant 0 : index
    %17 = vector.load %arg7[%c0_14, %c0_15] : memref<1x32xf32, #tpu.memory_space<vmem>>, vector<1x32xf32>
    %18 = vector.broadcast %17 : vector<1x32xf32> to vector<8x32xf32>
    %19 = arith.addf %11, %18 : vector<8x32xf32>
    %cst_16 = arith.constant 0.000000e+00 : f32
    %20 = vector.broadcast %cst_16 : f32 to vector<8x32xf32>
    %21 = arith.maximumf %19, %20 : vector<8x32xf32>
    %c0_17 = arith.constant 0 : index
    %c0_18 = arith.constant 0 : index
    %22 = vector.load %arg8[%c0_17, %c0_18] : memref<32x32xf32, #tpu.memory_space<vmem>>, vector<32x32xf32>
    %cst_19 = arith.constant dense<0.000000e+00> : vector<8x32xf32>
    %23 = tpu.matmul %16, %22, %cst_19 {dimension_numbers = #tpu.dot_dimension_numbers<[1], [0], [0], [1], [0, 0, 1, 1], [], []>} : vector<8x32xf32>, vector<32x32xf32>, vector<8x32xf32> -> vector<8x32xf32>
    %c0_20 = arith.constant 0 : index
    %c0_21 = arith.constant 0 : index
    %24 = vector.load %arg9[%c0_20, %c0_21] : memref<32x32xf32, #tpu.memory_space<vmem>>, vector<32x32xf32>
    %cst_22 = arith.constant dense<0.000000e+00> : vector<8x32xf32>
    %25 = tpu.matmul %21, %24, %cst_22 {dimension_numbers = #tpu.dot_dimension_numbers<[1], [0], [0], [1], [0, 0, 1, 1], [], []>} : vector<8x32xf32>, vector<32x32xf32>, vector<8x32xf32> -> vector<8x32xf32>
    %26 = arith.addf %16, %21 : vector<8x32xf32>
    %c0_23 = arith.constant 0 : index
    %c0_24 = arith.constant 0 : index
    %27 = vector.load %arg10[%c0_23, %c0_24] : memref<32x32xf32, #tpu.memory_space<vmem>>, vector<32x32xf32>
    %cst_25 = arith.constant dense<0.000000e+00> : vector<8x32xf32>
    %28 = tpu.matmul %26, %27, %cst_25 {dimension_numbers = #tpu.dot_dimension_numbers<[1], [0], [0], [1], [0, 0, 1, 1], [], []>} : vector<8x32xf32>, vector<32x32xf32>, vector<8x32xf32> -> vector<8x32xf32>
    %29 = arith.subf %23, %25 : vector<8x32xf32>
    %30 = arith.subf %28, %23 : vector<8x32xf32>
    %31 = arith.subf %30, %25 : vector<8x32xf32>
    %c0_26 = arith.constant 0 : index
    %c0_27 = arith.constant 0 : index
    %32 = vector.load %arg11[%c0_26, %c0_27] : memref<1x32xf32, #tpu.memory_space<vmem>>, vector<1x32xf32>
    %33 = vector.broadcast %32 : vector<1x32xf32> to vector<8x32xf32>
    %34 = arith.addf %29, %33 : vector<8x32xf32>
    %c0_28 = arith.constant 0 : index
    %c0_29 = arith.constant 0 : index
    %35 = vector.load %arg12[%c0_28, %c0_29] : memref<1x32xf32, #tpu.memory_space<vmem>>, vector<1x32xf32>
    %36 = vector.broadcast %35 : vector<1x32xf32> to vector<8x32xf32>
    %37 = arith.addf %31, %36 : vector<8x32xf32>
    %38 = arith.addf %0, %34 : vector<8x32xf32>
    %39 = arith.addf %1, %37 : vector<8x32xf32>
    %c0_30 = arith.constant 0 : index
    %c0_31 = arith.constant 0 : index
    %40 = vector.load %arg13[%c0_30, %c0_31] : memref<1x32xf32, #tpu.memory_space<vmem>>, vector<1x32xf32>
    %c0_32 = arith.constant 0 : index
    %c0_33 = arith.constant 0 : index
    %41 = vector.load %arg14[%c0_32, %c0_33] : memref<1x32xf32, #tpu.memory_space<vmem>>, vector<1x32xf32>
    %c0_34 = arith.constant 0 : index
    %c0_35 = arith.constant 0 : index
    %42 = vector.load %arg15[%c0_34, %c0_35] : memref<1x32xf32, #tpu.memory_space<vmem>>, vector<1x32xf32>
    %c0_36 = arith.constant 0 : index
    %c0_37 = arith.constant 0 : index
    %43 = vector.load %arg16[%c0_36, %c0_37] : memref<1x32xf32, #tpu.memory_space<vmem>>, vector<1x32xf32>
    %c0_38 = arith.constant 0 : index
    %c0_39 = arith.constant 0 : index
    %44 = vector.load %arg17[%c0_38, %c0_39] : memref<1x32xf32, #tpu.memory_space<vmem>>, vector<1x32xf32>
    %cst_40 = arith.constant dense<0.000000e+00> : vector<8xf32>
    %45 = vector.multi_reduction <add>, %38, %cst_40 [1] : vector<8x32xf32> to vector<8xf32>
    %46 = vector.shape_cast %45 : vector<8xf32> to vector<8x1xf32>
    %cst_41 = arith.constant 3.200000e+01 : f32
    %47 = vector.broadcast %cst_41 : f32 to vector<8x1xf32>
    %48 = arith.divf %46, %47 : vector<8x1xf32>
    %cst_42 = arith.constant dense<0.000000e+00> : vector<8xf32>
    %49 = vector.multi_reduction <add>, %39, %cst_42 [1] : vector<8x32xf32> to vector<8xf32>
    %50 = vector.shape_cast %49 : vector<8xf32> to vector<8x1xf32>
    %cst_43 = arith.constant 3.200000e+01 : f32
    %51 = vector.broadcast %cst_43 : f32 to vector<8x1xf32>
    %52 = arith.divf %50, %51 : vector<8x1xf32>
    %53 = vector.broadcast %48 : vector<8x1xf32> to vector<8x32xf32>
    %54 = arith.subf %38, %53 : vector<8x32xf32>
    %55 = vector.broadcast %52 : vector<8x1xf32> to vector<8x32xf32>
    %56 = arith.subf %39, %55 : vector<8x32xf32>
    %57 = arith.mulf %54, %54 : vector<8x32xf32>
    %cst_44 = arith.constant dense<0.000000e+00> : vector<8xf32>
    %58 = vector.multi_reduction <add>, %57, %cst_44 [1] : vector<8x32xf32> to vector<8xf32>
    %59 = vector.shape_cast %58 : vector<8xf32> to vector<8x1xf32>
    %60 = arith.mulf %56, %56 : vector<8x32xf32>
    %cst_45 = arith.constant dense<0.000000e+00> : vector<8xf32>
    %61 = vector.multi_reduction <add>, %60, %cst_45 [1] : vector<8x32xf32> to vector<8xf32>
    %62 = vector.shape_cast %61 : vector<8xf32> to vector<8x1xf32>
    %63 = arith.addf %59, %62 : vector<8x1xf32>
    %cst_46 = arith.constant 0.0322580636 : f32
    %64 = vector.broadcast %cst_46 : f32 to vector<8x1xf32>
    %65 = arith.mulf %63, %64 : vector<8x1xf32>
    %cst_47 = arith.constant 9.99999971E-10 : f32
    %66 = vector.broadcast %cst_47 : f32 to vector<8x1xf32>
    %67 = arith.addf %65, %66 : vector<8x1xf32>
    %68 = math.rsqrt %67 : vector<8x1xf32>
    %69 = vector.broadcast %68 : vector<8x1xf32> to vector<8x32xf32>
    %70 = arith.mulf %54, %69 : vector<8x32xf32>
    %71 = vector.broadcast %68 : vector<8x1xf32> to vector<8x32xf32>
    %72 = arith.mulf %56, %71 : vector<8x32xf32>
    %73 = vector.broadcast %40 : vector<1x32xf32> to vector<8x32xf32>
    %74 = arith.mulf %70, %73 : vector<8x32xf32>
    %75 = vector.broadcast %42 : vector<1x32xf32> to vector<8x32xf32>
    %76 = arith.mulf %72, %75 : vector<8x32xf32>
    %77 = arith.addf %74, %76 : vector<8x32xf32>
    %78 = vector.broadcast %43 : vector<1x32xf32> to vector<8x32xf32>
    %79 = arith.addf %77, %78 : vector<8x32xf32>
    %80 = vector.broadcast %42 : vector<1x32xf32> to vector<8x32xf32>
    %81 = arith.mulf %70, %80 : vector<8x32xf32>
    %82 = vector.broadcast %41 : vector<1x32xf32> to vector<8x32xf32>
    %83 = arith.mulf %72, %82 : vector<8x32xf32>
    %84 = arith.addf %81, %83 : vector<8x32xf32>
    %85 = vector.broadcast %44 : vector<1x32xf32> to vector<8x32xf32>
    %86 = arith.addf %84, %85 : vector<8x32xf32>
    %c0_48 = arith.constant 0 : index
    %c0_49 = arith.constant 0 : index
    %87 = vector.load %arg18[%c0_48, %c0_49] : memref<8x32xf32, #tpu.memory_space<vmem>>, vector<8x32xf32>
    tpu.vector_store %arg18[%c0_48, %c0_49], %79 {strides = array<i32>} : memref<8x32xf32, #tpu.memory_space<vmem>>, vector<8x32xf32>,
    %c0_50 = arith.constant 0 : index
    %c0_51 = arith.constant 0 : index
    %88 = vector.load %arg19[%c0_50, %c0_51] : memref<8x32xf32, #tpu.memory_space<vmem>>, vector<8x32xf32>
    tpu.vector_store %arg19[%c0_50, %c0_51], %86 {strides = array<i32>} : memref<8x32xf32, #tpu.memory_space<vmem>>, vector<8x32xf32>,
    return
  }
  func.func @transform_0(%arg0: i32) -> (i32, i32) {
    %c0_i32 = arith.constant 0 : i32
    %c0_i32_0 = arith.constant 0 : i32
    return %arg0, %c0_i32 : i32, i32
  }
  func.func @transform_1(%arg0: i32) -> (i32, i32) {
    %c0_i32 = arith.constant 0 : i32
    %c0_i32_0 = arith.constant 0 : i32
    return %arg0, %c0_i32 : i32, i32
  }
  func.func @transform_2(%arg0: i32) -> (i32, i32) {
    %c0_i32 = arith.constant 0 : i32
    %c0_i32_0 = arith.constant 0 : i32
    %c0_i32_1 = arith.constant 0 : i32
    return %c0_i32, %c0_i32_0 : i32, i32
  }
  func.func @transform_3(%arg0: i32) -> (i32, i32) {
    %c0_i32 = arith.constant 0 : i32
    %c0_i32_0 = arith.constant 0 : i32
    %c0_i32_1 = arith.constant 0 : i32
    return %c0_i32, %c0_i32_0 : i32, i32
  }
  func.func @transform_4(%arg0: i32) -> (i32, i32) {
    %c0_i32 = arith.constant 0 : i32
    %c0_i32_0 = arith.constant 0 : i32
    %c0_i32_1 = arith.constant 0 : i32
    return %c0_i32, %c0_i32_0 : i32, i32
  }
  func.func @transform_5(%arg0: i32) -> (i32, i32) {
    %c0_i32 = arith.constant 0 : i32
    %c0_i32_0 = arith.constant 0 : i32
    %c0_i32_1 = arith.constant 0 : i32
    return %c0_i32, %c0_i32_0 : i32, i32
  }
  func.func @transform_6(%arg0: i32) -> (i32, i32) {
    %c0_i32 = arith.constant 0 : i32
    %c0_i32_0 = arith.constant 0 : i32
    %c0_i32_1 = arith.constant 0 : i32
    return %c0_i32, %c0_i32_0 : i32, i32
  }
  func.func @transform_7(%arg0: i32) -> (i32, i32) {
    %c0_i32 = arith.constant 0 : i32
    %c0_i32_0 = arith.constant 0 : i32
    %c0_i32_1 = arith.constant 0 : i32
    return %c0_i32, %c0_i32_0 : i32, i32
  }
  func.func @transform_8(%arg0: i32) -> (i32, i32) {
    %c0_i32 = arith.constant 0 : i32
    %c0_i32_0 = arith.constant 0 : i32
    %c0_i32_1 = arith.constant 0 : i32
    return %c0_i32, %c0_i32_0 : i32, i32
  }
  func.func @transform_9(%arg0: i32) -> (i32, i32) {
    %c0_i32 = arith.constant 0 : i32
    %c0_i32_0 = arith.constant 0 : i32
    %c0_i32_1 = arith.constant 0 : i32
    return %c0_i32, %c0_i32_0 : i32, i32
  }
  func.func @transform_10(%arg0: i32) -> (i32, i32) {
    %c0_i32 = arith.constant 0 : i32
    %c0_i32_0 = arith.constant 0 : i32
    %c0_i32_1 = arith.constant 0 : i32
    return %c0_i32, %c0_i32_0 : i32, i32
  }
  func.func @transform_11(%arg0: i32) -> (i32, i32) {
    %c0_i32 = arith.constant 0 : i32
    %c0_i32_0 = arith.constant 0 : i32
    %c0_i32_1 = arith.constant 0 : i32
    return %c0_i32, %c0_i32_0 : i32, i32
  }
  func.func @transform_12(%arg0: i32) -> (i32, i32) {
    %c0_i32 = arith.constant 0 : i32
    %c0_i32_0 = arith.constant 0 : i32
    %c0_i32_1 = arith.constant 0 : i32
    return %c0_i32, %c0_i32_0 : i32, i32
  }
  func.func @transform_13(%arg0: i32) -> (i32, i32) {
    %c0_i32 = arith.constant 0 : i32
    %c0_i32_0 = arith.constant 0 : i32
    %c0_i32_1 = arith.constant 0 : i32
    return %c0_i32, %c0_i32_0 : i32, i32
  }
  func.func @transform_14(%arg0: i32) -> (i32, i32) {
    %c0_i32 = arith.constant 0 : i32
    %c0_i32_0 = arith.constant 0 : i32
    %c0_i32_1 = arith.constant 0 : i32
    return %c0_i32, %c0_i32_0 : i32, i32
  }
  func.func @transform_15(%arg0: i32) -> (i32, i32) {
    %c0_i32 = arith.constant 0 : i32
    %c0_i32_0 = arith.constant 0 : i32
    %c0_i32_1 = arith.constant 0 : i32
    return %c0_i32, %c0_i32_0 : i32, i32
  }
  func.func @transform_16(%arg0: i32) -> (i32, i32) {
    %c0_i32 = arith.constant 0 : i32
    %c0_i32_0 = arith.constant 0 : i32
    %c0_i32_1 = arith.constant 0 : i32
    return %c0_i32, %c0_i32_0 : i32, i32
  }
  func.func @transform_17(%arg0: i32) -> (i32, i32) {
    %c0_i32 = arith.constant 0 : i32
    %c0_i32_0 = arith.constant 0 : i32
    return %arg0, %c0_i32 : i32, i32
  }
  func.func @transform_18(%arg0: i32) -> (i32, i32) {
    %c0_i32 = arith.constant 0 : i32
    %c0_i32_0 = arith.constant 0 : i32
    return %arg0, %c0_i32 : i32, i32
  }
}

module attributes {stable_mosaic.version = 11 : i64} {
  func.func @_proj_addnorm_kernel(%arg0: i32, %arg1: memref<8x32xf32, #tpu.memory_space<vmem>>, %arg2: memref<8x32xf32, #tpu.memory_space<vmem>>, %arg3: memref<8x32xf32, #tpu.memory_space<vmem>>, %arg4: memref<8x32xf32, #tpu.memory_space<vmem>>, %arg5: memref<32x32xf32, #tpu.memory_space<vmem>>, %arg6: memref<32x32xf32, #tpu.memory_space<vmem>>, %arg7: memref<32x32xf32, #tpu.memory_space<vmem>>, %arg8: memref<1x32xf32, #tpu.memory_space<vmem>>, %arg9: memref<1x32xf32, #tpu.memory_space<vmem>>, %arg10: memref<1x32xf32, #tpu.memory_space<vmem>>, %arg11: memref<1x32xf32, #tpu.memory_space<vmem>>, %arg12: memref<1x32xf32, #tpu.memory_space<vmem>>, %arg13: memref<8x32xf32, #tpu.memory_space<vmem>>, %arg14: memref<8x32xf32, #tpu.memory_space<vmem>>) attributes {dimension_semantics = [#tpu.dimension_semantics<parallel>], iteration_bounds = array<i64: 2>, scalar_prefetch = 0 : i64, scratch_operands = 0 : i64, tpu.core_type = #tpu.core_type<tc>, window_params = [{transform_indices = @transform_0, window_bounds = array<i64: 8, 32>}, {transform_indices = @transform_1, window_bounds = array<i64: 8, 32>}, {transform_indices = @transform_2, window_bounds = array<i64: 8, 32>}, {transform_indices = @transform_3, window_bounds = array<i64: 8, 32>}, {pipeline_mode = #tpu.pipeline_mode<synchronous>, transform_indices = @transform_4, window_bounds = array<i64: 32, 32>}, {pipeline_mode = #tpu.pipeline_mode<synchronous>, transform_indices = @transform_5, window_bounds = array<i64: 32, 32>}, {pipeline_mode = #tpu.pipeline_mode<synchronous>, transform_indices = @transform_6, window_bounds = array<i64: 32, 32>}, {pipeline_mode = #tpu.pipeline_mode<synchronous>, transform_indices = @transform_7, window_bounds = array<i64: 1, 32>}, {pipeline_mode = #tpu.pipeline_mode<synchronous>, transform_indices = @transform_8, window_bounds = array<i64: 1, 32>}, {pipeline_mode = #tpu.pipeline_mode<synchronous>, transform_indices = @transform_9, window_bounds = array<i64: 1, 32>}, {pipeline_mode = #tpu.pipeline_mode<synchronous>, transform_indices = @transform_10, window_bounds = array<i64: 1, 32>}, {pipeline_mode = #tpu.pipeline_mode<synchronous>, transform_indices = @transform_11, window_bounds = array<i64: 1, 32>}, {transform_indices = @transform_12, window_bounds = array<i64: 8, 32>}, {transform_indices = @transform_13, window_bounds = array<i64: 8, 32>}]} {
    %c0 = arith.constant 0 : index
    %c0_0 = arith.constant 0 : index
    %0 = vector.load %arg1[%c0, %c0_0] : memref<8x32xf32, #tpu.memory_space<vmem>>, vector<8x32xf32>
    %c0_1 = arith.constant 0 : index
    %c0_2 = arith.constant 0 : index
    %1 = vector.load %arg2[%c0_1, %c0_2] : memref<8x32xf32, #tpu.memory_space<vmem>>, vector<8x32xf32>
    %c0_3 = arith.constant 0 : index
    %c0_4 = arith.constant 0 : index
    %2 = vector.load %arg5[%c0_3, %c0_4] : memref<32x32xf32, #tpu.memory_space<vmem>>, vector<32x32xf32>
    %cst = arith.constant dense<0.000000e+00> : vector<8x32xf32>
    %3 = tpu.matmul %0, %2, %cst {dimension_numbers = #tpu.dot_dimension_numbers<[1], [0], [0], [1], [0, 0, 1, 1], [], []>} : vector<8x32xf32>, vector<32x32xf32>, vector<8x32xf32> -> vector<8x32xf32>
    %c0_5 = arith.constant 0 : index
    %c0_6 = arith.constant 0 : index
    %4 = vector.load %arg6[%c0_5, %c0_6] : memref<32x32xf32, #tpu.memory_space<vmem>>, vector<32x32xf32>
    %cst_7 = arith.constant dense<0.000000e+00> : vector<8x32xf32>
    %5 = tpu.matmul %1, %4, %cst_7 {dimension_numbers = #tpu.dot_dimension_numbers<[1], [0], [0], [1], [0, 0, 1, 1], [], []>} : vector<8x32xf32>, vector<32x32xf32>, vector<8x32xf32> -> vector<8x32xf32>
    %6 = arith.addf %0, %1 : vector<8x32xf32>
    %c0_8 = arith.constant 0 : index
    %c0_9 = arith.constant 0 : index
    %7 = vector.load %arg7[%c0_8, %c0_9] : memref<32x32xf32, #tpu.memory_space<vmem>>, vector<32x32xf32>
    %cst_10 = arith.constant dense<0.000000e+00> : vector<8x32xf32>
    %8 = tpu.matmul %6, %7, %cst_10 {dimension_numbers = #tpu.dot_dimension_numbers<[1], [0], [0], [1], [0, 0, 1, 1], [], []>} : vector<8x32xf32>, vector<32x32xf32>, vector<8x32xf32> -> vector<8x32xf32>
    %9 = arith.subf %3, %5 : vector<8x32xf32>
    %10 = arith.subf %8, %3 : vector<8x32xf32>
    %11 = arith.subf %10, %5 : vector<8x32xf32>
    %c0_11 = arith.constant 0 : index
    %c0_12 = arith.constant 0 : index
    %12 = vector.load %arg3[%c0_11, %c0_12] : memref<8x32xf32, #tpu.memory_space<vmem>>, vector<8x32xf32>
    %13 = arith.addf %12, %9 : vector<8x32xf32>
    %c0_13 = arith.constant 0 : index
    %c0_14 = arith.constant 0 : index
    %14 = vector.load %arg4[%c0_13, %c0_14] : memref<8x32xf32, #tpu.memory_space<vmem>>, vector<8x32xf32>
    %15 = arith.addf %14, %11 : vector<8x32xf32>
    %c0_15 = arith.constant 0 : index
    %c0_16 = arith.constant 0 : index
    %16 = vector.load %arg8[%c0_15, %c0_16] : memref<1x32xf32, #tpu.memory_space<vmem>>, vector<1x32xf32>
    %c0_17 = arith.constant 0 : index
    %c0_18 = arith.constant 0 : index
    %17 = vector.load %arg9[%c0_17, %c0_18] : memref<1x32xf32, #tpu.memory_space<vmem>>, vector<1x32xf32>
    %c0_19 = arith.constant 0 : index
    %c0_20 = arith.constant 0 : index
    %18 = vector.load %arg10[%c0_19, %c0_20] : memref<1x32xf32, #tpu.memory_space<vmem>>, vector<1x32xf32>
    %c0_21 = arith.constant 0 : index
    %c0_22 = arith.constant 0 : index
    %19 = vector.load %arg11[%c0_21, %c0_22] : memref<1x32xf32, #tpu.memory_space<vmem>>, vector<1x32xf32>
    %c0_23 = arith.constant 0 : index
    %c0_24 = arith.constant 0 : index
    %20 = vector.load %arg12[%c0_23, %c0_24] : memref<1x32xf32, #tpu.memory_space<vmem>>, vector<1x32xf32>
    %cst_25 = arith.constant dense<0.000000e+00> : vector<8xf32>
    %21 = vector.multi_reduction <add>, %13, %cst_25 [1] : vector<8x32xf32> to vector<8xf32>
    %22 = vector.shape_cast %21 : vector<8xf32> to vector<8x1xf32>
    %cst_26 = arith.constant 3.200000e+01 : f32
    %23 = vector.broadcast %cst_26 : f32 to vector<8x1xf32>
    %24 = arith.divf %22, %23 : vector<8x1xf32>
    %cst_27 = arith.constant dense<0.000000e+00> : vector<8xf32>
    %25 = vector.multi_reduction <add>, %15, %cst_27 [1] : vector<8x32xf32> to vector<8xf32>
    %26 = vector.shape_cast %25 : vector<8xf32> to vector<8x1xf32>
    %cst_28 = arith.constant 3.200000e+01 : f32
    %27 = vector.broadcast %cst_28 : f32 to vector<8x1xf32>
    %28 = arith.divf %26, %27 : vector<8x1xf32>
    %29 = vector.broadcast %24 : vector<8x1xf32> to vector<8x32xf32>
    %30 = arith.subf %13, %29 : vector<8x32xf32>
    %31 = vector.broadcast %28 : vector<8x1xf32> to vector<8x32xf32>
    %32 = arith.subf %15, %31 : vector<8x32xf32>
    %33 = arith.mulf %30, %30 : vector<8x32xf32>
    %cst_29 = arith.constant dense<0.000000e+00> : vector<8xf32>
    %34 = vector.multi_reduction <add>, %33, %cst_29 [1] : vector<8x32xf32> to vector<8xf32>
    %35 = vector.shape_cast %34 : vector<8xf32> to vector<8x1xf32>
    %36 = arith.mulf %32, %32 : vector<8x32xf32>
    %cst_30 = arith.constant dense<0.000000e+00> : vector<8xf32>
    %37 = vector.multi_reduction <add>, %36, %cst_30 [1] : vector<8x32xf32> to vector<8xf32>
    %38 = vector.shape_cast %37 : vector<8xf32> to vector<8x1xf32>
    %39 = arith.addf %35, %38 : vector<8x1xf32>
    %cst_31 = arith.constant 0.0322580636 : f32
    %40 = vector.broadcast %cst_31 : f32 to vector<8x1xf32>
    %41 = arith.mulf %39, %40 : vector<8x1xf32>
    %cst_32 = arith.constant 9.99999971E-10 : f32
    %42 = vector.broadcast %cst_32 : f32 to vector<8x1xf32>
    %43 = arith.addf %41, %42 : vector<8x1xf32>
    %44 = math.rsqrt %43 : vector<8x1xf32>
    %45 = vector.broadcast %44 : vector<8x1xf32> to vector<8x32xf32>
    %46 = arith.mulf %30, %45 : vector<8x32xf32>
    %47 = vector.broadcast %44 : vector<8x1xf32> to vector<8x32xf32>
    %48 = arith.mulf %32, %47 : vector<8x32xf32>
    %49 = vector.broadcast %16 : vector<1x32xf32> to vector<8x32xf32>
    %50 = arith.mulf %46, %49 : vector<8x32xf32>
    %51 = vector.broadcast %18 : vector<1x32xf32> to vector<8x32xf32>
    %52 = arith.mulf %48, %51 : vector<8x32xf32>
    %53 = arith.addf %50, %52 : vector<8x32xf32>
    %54 = vector.broadcast %19 : vector<1x32xf32> to vector<8x32xf32>
    %55 = arith.addf %53, %54 : vector<8x32xf32>
    %56 = vector.broadcast %18 : vector<1x32xf32> to vector<8x32xf32>
    %57 = arith.mulf %46, %56 : vector<8x32xf32>
    %58 = vector.broadcast %17 : vector<1x32xf32> to vector<8x32xf32>
    %59 = arith.mulf %48, %58 : vector<8x32xf32>
    %60 = arith.addf %57, %59 : vector<8x32xf32>
    %61 = vector.broadcast %20 : vector<1x32xf32> to vector<8x32xf32>
    %62 = arith.addf %60, %61 : vector<8x32xf32>
    %c0_33 = arith.constant 0 : index
    %c0_34 = arith.constant 0 : index
    %63 = vector.load %arg13[%c0_33, %c0_34] : memref<8x32xf32, #tpu.memory_space<vmem>>, vector<8x32xf32>
    tpu.vector_store %arg13[%c0_33, %c0_34], %55 {strides = array<i32>} : memref<8x32xf32, #tpu.memory_space<vmem>>, vector<8x32xf32>,
    %c0_35 = arith.constant 0 : index
    %c0_36 = arith.constant 0 : index
    %64 = vector.load %arg14[%c0_35, %c0_36] : memref<8x32xf32, #tpu.memory_space<vmem>>, vector<8x32xf32>
    tpu.vector_store %arg14[%c0_35, %c0_36], %62 {strides = array<i32>} : memref<8x32xf32, #tpu.memory_space<vmem>>, vector<8x32xf32>,
    return
  }
  func.func @transform_0(%arg0: i32) -> (i32, i32) {
    %c0_i32 = arith.constant 0 : i32
    %c0_i32_0 = arith.constant 0 : i32
    return %arg0, %c0_i32 : i32, i32
  }
  func.func @transform_1(%arg0: i32) -> (i32, i32) {
    %c0_i32 = arith.constant 0 : i32
    %c0_i32_0 = arith.constant 0 : i32
    return %arg0, %c0_i32 : i32, i32
  }
  func.func @transform_2(%arg0: i32) -> (i32, i32) {
    %c0_i32 = arith.constant 0 : i32
    %c0_i32_0 = arith.constant 0 : i32
    return %arg0, %c0_i32 : i32, i32
  }
  func.func @transform_3(%arg0: i32) -> (i32, i32) {
    %c0_i32 = arith.constant 0 : i32
    %c0_i32_0 = arith.constant 0 : i32
    return %arg0, %c0_i32 : i32, i32
  }
  func.func @transform_4(%arg0: i32) -> (i32, i32) {
    %c0_i32 = arith.constant 0 : i32
    %c0_i32_0 = arith.constant 0 : i32
    %c0_i32_1 = arith.constant 0 : i32
    return %c0_i32, %c0_i32_0 : i32, i32
  }
  func.func @transform_5(%arg0: i32) -> (i32, i32) {
    %c0_i32 = arith.constant 0 : i32
    %c0_i32_0 = arith.constant 0 : i32
    %c0_i32_1 = arith.constant 0 : i32
    return %c0_i32, %c0_i32_0 : i32, i32
  }
  func.func @transform_6(%arg0: i32) -> (i32, i32) {
    %c0_i32 = arith.constant 0 : i32
    %c0_i32_0 = arith.constant 0 : i32
    %c0_i32_1 = arith.constant 0 : i32
    return %c0_i32, %c0_i32_0 : i32, i32
  }
  func.func @transform_7(%arg0: i32) -> (i32, i32) {
    %c0_i32 = arith.constant 0 : i32
    %c0_i32_0 = arith.constant 0 : i32
    %c0_i32_1 = arith.constant 0 : i32
    return %c0_i32, %c0_i32_0 : i32, i32
  }
  func.func @transform_8(%arg0: i32) -> (i32, i32) {
    %c0_i32 = arith.constant 0 : i32
    %c0_i32_0 = arith.constant 0 : i32
    %c0_i32_1 = arith.constant 0 : i32
    return %c0_i32, %c0_i32_0 : i32, i32
  }
  func.func @transform_9(%arg0: i32) -> (i32, i32) {
    %c0_i32 = arith.constant 0 : i32
    %c0_i32_0 = arith.constant 0 : i32
    %c0_i32_1 = arith.constant 0 : i32
    return %c0_i32, %c0_i32_0 : i32, i32
  }
  func.func @transform_10(%arg0: i32) -> (i32, i32) {
    %c0_i32 = arith.constant 0 : i32
    %c0_i32_0 = arith.constant 0 : i32
    %c0_i32_1 = arith.constant 0 : i32
    return %c0_i32, %c0_i32_0 : i32, i32
  }
  func.func @transform_11(%arg0: i32) -> (i32, i32) {
    %c0_i32 = arith.constant 0 : i32
    %c0_i32_0 = arith.constant 0 : i32
    %c0_i32_1 = arith.constant 0 : i32
    return %c0_i32, %c0_i32_0 : i32, i32
  }
  func.func @transform_12(%arg0: i32) -> (i32, i32) {
    %c0_i32 = arith.constant 0 : i32
    %c0_i32_0 = arith.constant 0 : i32
    return %arg0, %c0_i32 : i32, i32
  }
  func.func @transform_13(%arg0: i32) -> (i32, i32) {
    %c0_i32 = arith.constant 0 : i32
    %c0_i32_0 = arith.constant 0 : i32
    return %arg0, %c0_i32 : i32, i32
  }
}

</mosaic_0001>

<bundles_post_ra>
// kernel: pallas_forward.12
= control target key start
LH: loop header
LB: loop body
LE: loop exit
PB: predicated region body
PF: predicated region fallthrough
CT: control target
= control target key end

     0   :  { %19 = vsyncpa [#allocation3], 0  ;;  %s974_s25 = smov 0   ;;  %s1062_s0 = inlined_call_operand.vmem [shape: f32[16,32], index: 0, kind: input, shape index: {}]   ;;  %s1063_s1 = inlined_call_operand.vmem [shape: f32[16,32], index: 1, kind: input, shape index: {}]   ;;  %s1064_s2 = inlined_call_operand.vmem [shape: f32[16,32], index: 2, kind: input, shape index: {}]   ;;  %s1065_s3 = inlined_call_operand.vmem [shape: f32[16,32], index: 3, kind: input, shape index: {}]   ;;  %s1066_s4 = inlined_call_operand.vmem [shape: f32[32,32], index: 4, kind: input, shape index: {}]   ;;  %s1067_s5 = inlined_call_operand.vmem [shape: f32[32,32], index: 5, kind: input, shape index: {}]   ;;  %s1068_s6 = inlined_call_operand.hbm [shape: f32[32,32], index: 6, kind: input, shape index: {}]   ;;  %s1069_s7 = inlined_call_operand.vmem [shape: f32[1,32], index: 7, kind: input, shape index: {}]   ;;  %s1070_s8 = inlined_call_operand.vmem [shape: f32[1,32], index: 8, kind: input, shape index: {}]   ;;  %s1071_s9 = inlined_call_operand.vmem [shape: f32[1,32], index: 9, kind: input, shape index: {}]   ;;  %s1072_s10 = inlined_call_operand.vmem [shape: f32[1,32], index: 10, kind: input, shape index: {}]   ;;  %s1073_s11 = inlined_call_operand.vmem [shape: f32[1,32], index: 11, kind: input, shape index: {}]   ;;  %s1074_s12 = inlined_call_operand.vmem [shape: f32[16,32], index: 12, kind: output, shape index: {0}]   ;;  %s1075_s13 = inlined_call_operand.vmem [shape: f32[16,32], index: 13, kind: output, shape index: {1}]  }
   0x1 LB: > { %s371_s28 = sshll.u32 %s1068_s6, 4  ;;  %s809_s29 = sadd.s32 4294967295, %s898_s25   ;;  %s898_s25 = sphi %s974_s25, %s25_s25   ;;  %s372_s28 = int_to_ptr.hbm [resolvable:$true] %s371_s28 }
   0x2   : > { %p811_p0 = scmp.ge.s32.totalorder %s898_s25, 1  ;;  %p354_p1 = scmp.lt.s32.totalorder %s898_s25, 3 }
   0x3   : > { %p835_p2 = scmp.eq.s32.totalorder %s809_s29, 0  ;;  %s900_s30 = smov [#allocation2]  }
   0x4   : > { %p355_p3 = pnand %p811_p0, %p354_p1  ;;  %s373_s14 = sshll.u32 %s900_s30, 4  ;;  %s374_s14 = int_to_ptr.vmem [resolvable:$true] %s373_s14 }
   0x5   : > { %s901_s15 = smov 128   ;;  %s902_s16 = smov 8  }
   0x6   : > { %p831_p4 = pneg %p355_p3  ;;  %432 = sbr.rel (%p355_p3) target bundleno = 434 (0x1b2), region = 68 }
   0x8   : > { %p832_p5 = pnand %p835_p2, %p831_p4 }
   0xa   : > { %834 = dma.hbm_to_vmem [thread:$0]  (!%p832_p5), %s372_s28, 512, %s374_s14, [#allocation3], %s901_s15, %s901_s15, %s902_s16  }
   0xb   : > { %893 = dma.done.wait (%p835_p2), [#allocation3], 512  }
   0xc   : > { %895 = vsyncadd (%p835_p2), [#allocation3], 4294966784  ;;  %p491_p6 = scmp.lt.s32.totalorder %s809_s29, 1  ;;  %v520_v0 = vld [vmem:[%s1066_s4 + $0x18] sm:$0xff]  ;;  %v519_v3 = vld [vmem:[%s1066_s4 + $0x10] sm:$0xff]  ;;  %vm521_vm0 = vcmask 261120  }
   0xd   : > { %v548_v1 = vld [vmem:[%s1067_s5 + $0x18] sm:$0xff]  ;;  %537 = vmatpush.msra.mxu0 %v520_v0  ;;  %v547_v4 = vld [vmem:[%s1067_s5 + $0x10] sm:$0xff]  ;;  %v518_v6 = vld [vmem:[%s1066_s4 + $0x8] sm:$0xff]  ;;  %v903_v27 = vmov 32.0  }
   0xe   : > { %s1077_s29 = smov (!%p491_p6, %s809_s29), 1  ;;  %v576_v2 = vld [vmem:[#allocation2 + $0x18] sm:$0xff]  ;;  %564 = vmatpush.msra.mxu1 %v548_v1  ;;  %v575_v5 = vld [vmem:[#allocation2 + $0x10] sm:$0xff]  ;;  %v546_v7 = vld [vmem:[%s1067_s5 + $0x8] sm:$0xff]  ;;  %854 = vrcp.f32 %v903_v27 }
   0xf   : > { %s985_s17 = sshll.u32 %s1077_s29, 3  ;;  %592 = vmatpush.msra.mxu2 %v576_v2  ;;  %v574_v8 = vld [vmem:[#allocation2 + $0x8] sm:$0xff]  ;;  %538 = vmatpush.msra.mxu0 %v519_v3  ;;  %v517_v9 = vld [vmem:[%s1066_s4] sm:$0xff] }
  0x10   : > { %s494_s29 = scalar_lea.vmem %s1062_s0, %s985_s17  ;;  %s498_s15 = scalar_lea.vmem %s1063_s1, %s985_s17  ;;  %565 = vmatpush.msra.mxu1 %v547_v4  ;;  %v545_v10 = vld [vmem:[%s1067_s5] sm:$0xff] }
  0x11   : > { %v573_v11 = vld [vmem:[#allocation2] sm:$0xff]  ;;  %593 = vmatpush.msra.mxu2 %v575_v5  ;;  %539 = vmatpush.msra.mxu0 %v518_v6  ;;  %s502_s28 = scalar_lea.vmem %s1064_s2, %s985_s17  ;;  %s506_s14 = scalar_lea.vmem %s1065_s3, %s985_s17 }
  0x12   : > { %v515_v12 = vld [vmem:[%s494_s29] sm:$0xff]  ;;  %566 = vmatpush.msra.mxu1 %v546_v7  ;;  %s510_s29 = scalar_lea.vmem %s1074_s12, %s985_s17 }
  0x13   : > { %v516_v13 = vld [vmem:[%s498_s15] sm:$0xff]  ;;  %594 = vmatpush.msra.mxu2 %v574_v8  ;;  %540 = vmatpush.msra.mxu0 %v517_v9  ;;  %s514_s15 = scalar_lea.vmem %s1075_s13, %s985_s17 }
  0x14   : > { %v572_v14 = vadd.f32 %v516_v13, %v515_v12  ;;  %567 = vmatpush.msra.mxu1 %v545_v10  ;;  %822 = vmatmul.msk.f32.vlgmr.msra.gmra.mxu0 %vm521_vm0, %v515_v12  ;;  %v603_v17 = vld [vmem:[%s502_s28] sm:$0xff]  ;;  %v855_v28 = vpop.eup %854 }
  0x15   : > { %595 = vmatpush.msra.mxu2 %v573_v11  ;;  %823 = vmatmul.msk.f32.vlgmr.msra.gmra.mxu1 %vm521_vm0, %v516_v13  ;;  %v605_v23 = vld [vmem:[%s506_s14] sm:$0xff]  ;;  %v616_v29 = vmul.f32 32.0, %v855_v28  ;;  %vm620_vm1 = vweird.f32 %v855_v28 }
  0x16   : > { %824 = vmatmul.msk.f32.vlgmr.msra.gmra.mxu2 %vm521_vm0, %v572_v14  ;;  %v849_v54 = vld [vmem:[%s1069_s7] ss:$0 sm:$0xff] }
  0x17   : > { %v617_v30 = vsub.f32 1.0, %v616_v29  ;;  %v850_v56 = vld [vmem:[%s1071_s9] ss:$0 sm:$0xff] }
  0x18   : > { %v852_v57 = vld [vmem:[%s1070_s8] ss:$0 sm:$0xff] }
  0x19   : > { %v618_v31 = vmul.f32 %v855_v28, %v617_v30  ;;  %v851_v61 = vld [vmem:[%s1072_s10] ss:$0 sm:$0xff] }
  0x1a   : > { %v853_v62 = vld [vmem:[%s1073_s11] ss:$0 sm:$0xff] }
  0x1b   : > { %v619_v32 = vadd.f32 %v855_v28, %v618_v31 }
  0x1d   : > { %v621_v33 = vsel %vm620_vm1, %v855_v28, %v619_v32 }
  0x91   : > { %v542_v15 = vpop.f32.mrf.mxu0 }
  0x92   : > { %v569_v16 = vpop.f32.mrf.mxu1 }
  0x93   : > { %v600_v18 = vsub.f32 %v542_v15, %v569_v16 }
  0x95   : > { %v604_v19 = vadd.f32 %v603_v17, %v600_v18 }
  0x97   : > { %v612_v20 = vsel %vm521_vm0, %v604_v19, 0.0 }
  0x98   : > { %613 = vadd.xlane.f32.xlu0 %v612_v20 }
  0x99   : > { %v597_v21 = vpop.f32.mrf.mxu2 }
  0x9a   : > { %v601_v22 = vsub.f32 %v597_v21, %v542_v15 }
  0x9c   : > { %v602_v24 = vsub.f32 %v601_v22, %v569_v16 }
  0x9e   : > { %v606_v25 = vadd.f32 %v605_v23, %v602_v24 }
  0xa0   : > { %v623_v26 = vsel %vm521_vm0, %v606_v25, 0.0 }
  0xa1   : > { %624 = vadd.xlane.f32.xlu0 %v623_v26 }
 0x10b   : > { %v614_v34 = vpop.xlane.xlu0 %613 }
 0x10c   : > { %v622_v35 = vmul.f32 %v621_v33, %v614_v34 }
 0x10e   : > { %v627_v36 = vsub.f32 %v604_v19, %v622_v35 }
 0x110   : > { %v629_v37 = vmul.f32 %v627_v36, %v627_v36 }
 0x112   : > { %v630_v38 = vsel %vm521_vm0, %v629_v37, 0.0 }
 0x113   : > { %631 = vadd.xlane.f32.xlu1 %v630_v38 }
 0x114   : > { %v625_v39 = vpop.xlane.xlu0 %624 }
 0x115   : > { %v626_v40 = vmul.f32 %v625_v39, %v621_v33 }
 0x117   : > { %v628_v41 = vsub.f32 %v606_v25, %v626_v40 }
 0x119   : > { %v633_v42 = vmul.f32 %v628_v41, %v628_v41 }
 0x11b   : > { %v634_v43 = vsel %vm521_vm0, %v633_v42, 0.0 }
 0x11c   : > { %635 = vadd.xlane.f32.xlu1 %v634_v43 }
 0x186   : > { %v632_v44 = vpop.xlane.xlu1 %631 }
 0x18f   : > { %v636_v45 = vpop.xlane.xlu1 %635 }
 0x190   : > { %v637_v46 = vadd.f32 %v636_v45, %v632_v44 }
 0x192   : > { %v638_v47 = vmul.f32 0.032258064, %v637_v46 }
 0x194   : > { %v639_v48 = vadd.f32 1e-09, %v638_v47 }
 0x196   : > { %856 = vrsqrt.f32 %v639_v48  ;;  %vm646_vm3 = vweird.f32 %v639_v48 }
 0x19c   : > { %v857_v49 = vpop.eup %856 }
 0x19d   : > { %v641_v50 = vmul.f32 %v857_v49, %v639_v48  ;;  %vm647_vm2 = vweird.f32 %v857_v49 }
 0x19e   : > { %vm648_vm4 = vmor %vm646_vm3, %vm647_vm2 }
 0x19f   : > { %v642_v51 = vmul.f32 %v857_v49, %v641_v50 }
 0x1a1   : > { %v643_v52 = vmul.f32 0.5, %v642_v51 }
 0x1a3   : > { %v644_v53 = vsub.f32 1.5, %v643_v52 }
 0x1a5   : > { %v645_v55 = vmul.f32 %v857_v49, %v644_v53 }
 0x1a7   : > { %v649_v58 = vsel %vm648_vm4, %v857_v49, %v645_v55 }
 0x1a8   : > { %v650_v59 = vmul.f32 %v649_v58, %v627_v36  ;;  %v651_v60 = vmul.f32 %v649_v58, %v628_v41 }
 0x1aa   : > { %v655_v63 = vmul.f32 %v849_v54, %v650_v59  ;;  %v659_v0 = vmul.f32 %v850_v56, %v651_v60  ;;  %v665_v1 = vmul.f32 %v850_v56, %v650_v59  ;;  %v669_v2 = vmul.f32 %v852_v57, %v651_v60 }
 0x1ac   : > { %v660_v3 = vadd.f32 %v659_v0, %v655_v63  ;;  %v670_v4 = vadd.f32 %v669_v2, %v665_v1 }
 0x1ae   : > { %v664_v5 = vadd.f32 %v851_v61, %v660_v3  ;;  %v674_v6 = vadd.f32 %v853_v62, %v670_v4 }
 0x1b0   : > { %675 = vst.msk [vmem:[%s510_s29] sm:$0xff] %vm521_vm0, %v664_v5 }
 0x1b1   : > { %676 = vst.msk [vmem:[%s514_s15] sm:$0xff] %vm521_vm0, %v674_v6 }
 0x1b2 PF: > { %s25_s25 = sadd.s32 1, %s898_s25  }
 0x1b3   : > { %p22_p7 = scmp.ge.s32.totalorder %s25_s25, 4  }
 0x1b5   :  { %24 = sbr.rel (!%p22_p7) target bundleno = 1 (0x1), region = 124 }
 0x1ba   :  { %710 = vsyncpa [#allocation3], 1 }
 0x1bb   :  { %712 = vsyncpa [#allocation3 + $0x1], 1 }

// kernel: pallas_forward.9
= control target key start
LH: loop header
LB: loop body
LE: loop exit
PB: predicated region body
PF: predicated region fallthrough
CT: control target
= control target key end

     0   :  { %s599_s18 = smov 0   ;;  %s601_s19 = smov 0   ;;  %s641_s0 = inlined_call_operand.vmem [shape: f32[2,8,32], index: 0, kind: input, shape index: {}]   ;;  %s642_s1 = inlined_call_operand.vmem [shape: f32[2,8,32], index: 1, kind: input, shape index: {}]   ;;  %s643_s2 = inlined_call_operand.vmem [shape: f32[8,32], index: 2, kind: input, shape index: {}]   ;;  %s644_s3 = inlined_call_operand.vmem [shape: f32[8,32], index: 3, kind: input, shape index: {}]   ;;  %s645_s4 = inlined_call_operand.vmem [shape: f32[2,8,32], index: 4, kind: output, shape index: {0}]   ;;  %s646_s5 = inlined_call_operand.vmem [shape: f32[2,8,32], index: 5, kind: output, shape index: {1}]  }
   0x1   :  { %s603_s20 = smov 0  }
   0x2 LB: > { %s28_s21 = sadd.s32 1, %s563_s19  ;;  %p514_p0 = scmp.ge.s32.totalorder %s567_s20, 1  ;;  %s567_s20 = sphi %s603_s20, %s16_s20   ;;  %s563_s19 = sphi %s601_s19, %s648_s19   ;;  %s559_s18 = sphi %s599_s18, %s647_s18  }
   0x3   : > { %p30_p1 = scmp.ge.s32.totalorder %s28_s21, 2  ;;  %p242_p2 = scmp.lt.s32.totalorder %s567_s20, 3 }
   0x5   : > { %s650_s21 = smov (%p30_p1, %s28_s21), 0  ;;  %p243_p3 = pnand %p514_p0, %p242_p2 }
   0x6   : > { %p296_p4 = scmp.lt.s32.totalorder (!%p243_p3), %s559_s18, 1 }
   0x7   : > { %246 = sbr.rel (%p243_p3) target bundleno = 25 (0x19), region = 36 }
   0xc   : > { %s652_s18 = smov (!%p296_p4, %s559_s18), 1  ;;  %v336_v0 = vld [vmem:[%s643_s2] sm:$0xff]  ;;  %vm341_vm0 = vcmask 261120  }
   0xd   : > { %s515_s22 = sshll.u32 %s652_s18, 3  ;;  %v337_v3 = vld [vmem:[%s644_s3] sm:$0xff] }
   0xe   : > { %s302_s25 = scalar_lea.vmem %s641_s0, %s515_s22  ;;  %s309_s28 = scalar_lea.vmem %s642_s1, %s515_s22 }
   0xf   : > { %v332_v1 = vld [vmem:[%s302_s25] sm:$0xff]  ;;  %s324_s10 = scalar_lea.vmem %s645_s4, %s515_s22  ;;  %s331_s13 = scalar_lea.vmem %s646_s5, %s515_s22 }
  0x10   : > { %v334_v2 = vld [vmem:[%s309_s28] sm:$0xff]  ;;  %v333_v4 = vmul.f32 5.656854, %v332_v1 }
  0x11   : > { %v335_v5 = vmul.f32 5.656854, %v334_v2 }
  0x12   : > { %v338_v6 = vmul.f32 %v336_v0, %v333_v4  ;;  %v343_v8 = vmul.f32 %v337_v3, %v333_v4 }
  0x13   : > { %v339_v7 = vmul.f32 %v337_v3, %v335_v5  ;;  %v344_v9 = vmul.f32 %v336_v0, %v335_v5 }
  0x15   : > { %v340_v10 = vsub.f32 %v338_v6, %v339_v7  ;;  %v345_v11 = vadd.f32 %v344_v9, %v343_v8 }
  0x17   : > { %342 = vst.msk [vmem:[%s324_s10] sm:$0xff] %vm341_vm0, %v340_v10 }
  0x18   : > { %346 = vst.msk [vmem:[%s331_s13] sm:$0xff] %vm341_vm0, %v345_v11 }
  0x19 PF: > { %s16_s20 = sadd.s32 1, %s567_s20   ;;  %s647_s18 = smov %s563_s19 }
  0x1a   : > { %p13_p5 = scmp.ge.s32.totalorder %s16_s20, 4   ;;  %s648_s19 = smov %s650_s21 }
  0x1c   :  { %15 = sbr.rel (!%p13_p5) target bundleno = 2 (0x2), region = 87 }

// kernel: pallas_forward.10
= control target key start
LH: loop header
LB: loop body
LE: loop exit
PB: predicated region body
PF: predicated region fallthrough
CT: control target
= control target key end

     0   :  { %s527_s21 = smov 0   ;;  %s592_s0 = inlined_call_operand.vmem [shape: f32[16,32], index: 0, kind: input, shape index: {}]   ;;  %s593_s1 = inlined_call_operand.vmem [shape: f32[16,32], index: 1, kind: input, shape index: {}]   ;;  %s594_s2 = inlined_call_operand.vmem [shape: f32[32,96], index: 2, kind: input, shape index: {}]   ;;  %s595_s3 = inlined_call_operand.vmem [shape: f32[32,96], index: 3, kind: input, shape index: {}]   ;;  %s596_s4 = inlined_call_operand.vmem [shape: f32[32,96], index: 4, kind: input, shape index: {}]   ;;  %s597_s5 = inlined_call_operand.vmem [shape: f32[16,96], index: 5, kind: output, shape index: {0}]   ;;  %s598_s6 = inlined_call_operand.vmem [shape: f32[16,96], index: 6, kind: output, shape index: {1}]  }
   0x1 LB: > { %s462_s22 = sadd.s32 4294967295, %s490_s21   ;;  %p466_p0 = scmp.ge.s32.totalorder %s490_s21, 1  ;;  %s490_s21 = sphi %s527_s21, %s17_s21  }
   0x2   : > { %p223_p1 = scmp.lt.s32.totalorder %s490_s21, 3 }
   0x4   : > { %p224_p2 = pnand %p466_p0, %p223_p1 }
   0x5   : > { %p259_p3 = scmp.lt.s32.totalorder (!%p224_p2), %s462_s22, 1 }
   0x6   : > { %227 = sbr.rel (%p224_p2) target bundleno = 158 (0x9e), region = 40 }
   0xb   : > { %v336_v0 = vld [vmem:[%s596_s4 + $0x18] sm:$0xff]  ;;  %v335_v1 = vld [vmem:[%s596_s4 + $0x10] sm:$0xff]  ;;  %v334_v4 = vld [vmem:[%s596_s4 + $0x8] sm:$0xff]  ;;  %s600_s22 = smov (!%p259_p3, %s462_s22), 1  ;;  %vm281_vm0 = vcmask 261120   ;;  %vm363_vm1 = vcmask 785408  }
   0xc   : > { %352 = vmatpush.msra.mxu2 %v336_v0  ;;  %v280_v2 = vld [vmem:[%s594_s2 + $0x18] sm:$0xff]  ;;  %v279_v5 = vld [vmem:[%s594_s2 + $0x10] sm:$0xff]  ;;  %v278_v7 = vld [vmem:[%s594_s2 + $0x8] sm:$0xff]  ;;  %s565_s19 = sshll.u32 %s600_s22, 3 }
   0xd   : > { %v308_v3 = vld [vmem:[%s595_s3 + $0x18] sm:$0xff]  ;;  %297 = vmatpush.msra.mxu0 %v280_v2  ;;  %v307_v6 = vld [vmem:[%s595_s3 + $0x10] sm:$0xff]  ;;  %v306_v8 = vld [vmem:[%s595_s3 + $0x8] sm:$0xff]  ;;  %s262_s24 = scalar_lea.vmem %s592_s0, %s565_s19  ;;  %s266_s27 = scalar_lea.vmem %s593_s1, %s565_s19 }
   0xe   : > { %324 = vmatpush.msra.mxu1 %v308_v3  ;;  %353 = vmatpush.msra.mxu2 %v335_v1  ;;  %v333_v9 = vld [vmem:[%s596_s4] sm:$0xff]  ;;  %s270_s9 = scalar_lea.vmem %s597_s5, %s565_s19  ;;  %s274_s12 = scalar_lea.vmem %s598_s6, %s565_s19 }
   0xf   : > { %298 = vmatpush.msra.mxu0 %v279_v5  ;;  %v277_v10 = vld [vmem:[%s594_s2] sm:$0xff] }
  0x10   : > { %325 = vmatpush.msra.mxu1 %v307_v6  ;;  %354 = vmatpush.msra.mxu2 %v334_v4  ;;  %v305_v11 = vld [vmem:[%s595_s3] sm:$0xff] }
  0x11   : > { %v275_v12 = vld [vmem:[%s262_s24] sm:$0xff]  ;;  %299 = vmatpush.msra.mxu0 %v278_v7 }
  0x12   : > { %v276_v13 = vld [vmem:[%s266_s27] sm:$0xff]  ;;  %326 = vmatpush.msra.mxu1 %v306_v8  ;;  %355 = vmatpush.msra.mxu2 %v333_v9 }
  0x13   : > { %v332_v14 = vadd.f32 %v276_v13, %v275_v12  ;;  %300 = vmatpush.msra.mxu0 %v277_v10 }
  0x14   : > { %327 = vmatpush.msra.mxu1 %v305_v11  ;;  %471 = vmatmul.msk.f32.vlgmr.msra.gmra.mxu0 %vm281_vm0, %v275_v12 }
  0x15   : > { %473 = vmatmul.msk.f32.vlgmr.msra.gmra.mxu2 %vm281_vm0, %v332_v14  ;;  %472 = vmatmul.msk.f32.vlgmr.msra.gmra.mxu1 %vm281_vm0, %v276_v13 }
  0x91   : > { %v302_v15 = vpop.f32.mrf.mxu0 }
  0x92   : > { %v329_v16 = vpop.f32.mrf.mxu1 }
  0x93   : > { %v360_v17 = vsub.f32 %v302_v15, %v329_v16 }
  0x95   : > { %364 = vst.msk [vmem:[%s270_s9] sm:$0xff] %vm363_vm1, %v360_v17 }
  0x98   : > { %v357_v18 = vpop.f32.mrf.mxu2 }
  0x99   : > { %v361_v19 = vsub.f32 %v357_v18, %v302_v15 }
  0x9b   : > { %v362_v20 = vsub.f32 %v361_v19, %v329_v16 }
  0x9d   : > { %365 = vst.msk [vmem:[%s274_s12] sm:$0xff] %vm363_vm1, %v362_v20 }
  0x9e PF: > { %s17_s21 = sadd.s32 1, %s490_s21  }
  0x9f   : > { %p14_p4 = scmp.ge.s32.totalorder %s17_s21, 4  }
  0xa1   :  { %16 = sbr.rel (!%p14_p4) target bundleno = 1 (0x1), region = 85 }

// kernel: pallas_forward.11
= control target key start
LH: loop header
LB: loop body
LE: loop exit
PB: predicated region body
PF: predicated region fallthrough
CT: control target
= control target key end

     0   :  { %s1065_s12 = smov 0   ;;  %s1204_s0 = inlined_call_operand.vmem [shape: f32[2,8,96], index: 0, kind: input, shape index: {}]   ;;  %s1205_s1 = inlined_call_operand.vmem [shape: f32[2,8,96], index: 1, kind: input, shape index: {}]   ;;  %s1206_s2 = inlined_call_operand.vmem [shape: f32[2,8,32], index: 2, kind: output, shape index: {0}]   ;;  %s1207_s3 = inlined_call_operand.vmem [shape: f32[2,8,32], index: 3, kind: output, shape index: {1}]  }
   0x1 LB: > { %s914_s13 = sadd.s32 4294967295, %s1029_s12   ;;  %p918_p0 = scmp.ge.s32.totalorder %s1029_s12, 1  ;;  %s1029_s12 = sphi %s1065_s12, %s14_s12  }
   0x2   : > { %p148_p1 = scmp.lt.s32.totalorder %s1029_s12, 3 }
   0x4   : > { %p149_p2 = pnand %p918_p0, %p148_p1 }
   0x5   : > { %p178_p3 = scmp.lt.s32.totalorder (!%p149_p2), %s914_s13, 1  ;;  %s1031_s18 = smov (!%p149_p2), 8  }
   0x6   : > { %152 = sbr.rel (%p149_p2) target bundleno = 970 (0x3ca), region = 28  ;;  %s1032_s19 = smov (!%p149_p2), 96  }
   0x7   : > { %s1033_s20 = smov (!%p149_p2), 88   ;;  %s1034_s24 = smov (!%p149_p2), 104  }
   0x8   : > { %s1035_s25 = smov (!%p149_p2), 120   ;;  %s1036_s26 = smov (!%p149_p2), 80  }
   0x9   : > { %s1037_s27 = smov (!%p149_p2), 112   ;;  %s1038_s28 = smov (!%p149_p2), 72  }
   0xa   : > { %s1039_s29 = smov (!%p149_p2), 64   ;;  %s1040_s30 = smov (!%p149_p2), 56  }
   0xb   : > { %s1209_s13 = smov (!%p178_p3, %s914_s13), 1  ;;  %vm200_vm0 = vcmask 64512   ;;  %vm220_vm1 = vcmask 130048   ;;  %s1041_s4 = smov 48   ;;  %vm798_vm2 = vcmask 195584   ;;  %vm800_vm3 = vcmask 261120  }
   0xc   : > { %s1073_s14 = sshll.u32 %s1209_s13, 3  ;;  %s1042_s5 = smov 40  }
   0xd   : > { %s185_s17 = scalar_lea.vmem %s1205_s1, %s1073_s14  ;;  %s181_s23 = scalar_lea.vmem %s1204_s0, %s1073_s14 }
   0xe   : > { %v1079_v0 = vld [vmem:[%s185_s17] sm:$0xff]  ;;  %s1043_s6 = smov 16   ;;  %s1044_s7 = smov 24  }
   0xf   : > { %197 = vrot.lane.b32.xlu1 %v1079_v0, %s1031_s18  ;;  %213 = vrot.lane.b32.xlu0 %v1079_v0, %s1032_s19  ;;  %v194_v1 = vld [vmem:[%s181_s23] sm:$0xff]  ;;  %v203_v2 = vsub.f32 0.0, %v1079_v0  ;;  %s189_s10 = scalar_lea.vmem %s1206_s2, %s1073_s14  ;;  %s193_s15 = scalar_lea.vmem %s1207_s3, %s1073_s14 }
  0x10   : > { %361 = vrot.lane.b32.xlu2 %v1079_v0, %s1033_s20 }
  0x11   : > { %v1109_v26 = vpack.i.bf16 %v203_v2, %v194_v1 }
  0x17   : > { %205 = vrot.lane.b32.xlu1 %v194_v1, %s1032_s19  ;;  %216 = vrot.lane.b32.xlu0 %v194_v1, %s1034_s24 }
  0x18   : > { %349 = vrot.lane.b32.xlu2 %v194_v1, %s1035_s25 }
  0x1f   : > { %508 = vrot.lane.b32.xlu1 %v1079_v0, %s1036_s26  ;;  %354 = vrot.lane.b32.xlu0 %v194_v1, %s1033_s20 }
  0x20   : > { %493 = vrot.lane.b32.xlu2 %v194_v1, %s1037_s27 }
  0x27   : > { %501 = vrot.lane.b32.xlu1 %v194_v1, %s1036_s26  ;;  %496 = vrot.lane.b32.xlu0 %v1079_v0, %s1035_s25 }
  0x28   : > { %652 = vrot.lane.b32.xlu2 %v1079_v0, %s1038_s28 }
  0x2f   : > { %209 = vrot.lane.b32.xlu1 %v203_v2, %s1034_s24  ;;  %640 = vrot.lane.b32.xlu0 %v1079_v0, %s1037_s27 }
  0x30   : > { %357 = vrot.lane.b32.xlu2 %v203_v2, %s1032_s19 }
  0x37   : > { %504 = vrot.lane.b32.xlu0 %v203_v2, %s1033_s20  ;;  %645 = vrot.lane.b32.xlu1 %v194_v1, %s1038_s28 }
  0x38   : > { %648 = vrot.lane.b32.xlu2 %v203_v2, %s1036_s26 }
  0x3f   : > { %972 = vrot.lane.b32.xlu0 %v1109_v26, %s1039_s29 }
  0x6a   : > { %v362_v3 = vpop.permute.xlu2 %361 }
  0x72   : > { %v350_v4 = vpop.permute.xlu2 %349 }
  0x73   : > { %v352_v14 = vsel %vm200_vm0, %v350_v4, %v1079_v0 }
  0x74   : > { %v353_v17 = vmul.f32 0.35355338, %v352_v14 }
  0x7a   : > { %v494_v13 = vpop.permute.xlu2 %493 }
  0x81   : > { %v198_v5 = vpop.permute.xlu1 %197  ;;  %v214_v6 = vpop.permute.xlu0 %213 }
  0x82   : > { %v201_v7 = vsel %vm200_vm0, %v194_v1, %v198_v5  ;;  %v653_v19 = vpop.permute.xlu2 %652 }
  0x83   : > { %v202_v10 = vmul.f32 0.35355338, %v201_v7 }
  0x89   : > { %v206_v8 = vpop.permute.xlu1 %205  ;;  %v217_v9 = vpop.permute.xlu0 %216 }
  0x8a   : > { %v219_v11 = vsel %vm200_vm0, %v214_v6, %v217_v9  ;;  %v364_v12 = vsel %vm200_vm0, %v362_v3, %v206_v8  ;;  %v358_v25 = vpop.permute.xlu2 %357 }
  0x8b   : > { %925 = vmatpush.xpose.msk.msra.mxu1 %vm220_vm1, %v219_v11 }
  0x8e   : > { %926 = vmatmul.msk.f32.vlgmr.msra.gmra.mxu1 %vm220_vm1, %v202_v10 }
  0x8f   : > { %931 = vmatpush.xpose.msk.msrb.mxu1 %vm220_vm1, %v364_v12 }
  0x91   : > { %v509_v15 = vpop.permute.xlu1 %508  ;;  %v355_v16 = vpop.permute.xlu0 %354 }
  0x92   : > { %v511_v18 = vsel %vm200_vm0, %v509_v15, %v355_v16  ;;  %v360_v29 = vsel %vm200_vm0, %v355_v16, %v358_v25  ;;  %v649_v33 = vpop.permute.xlu2 %648 }
  0x93   : > { %937 = vmatpush.xpose.msk.msra.mxu1 %vm220_vm1, %v511_v18 }
  0x96   : > { %932 = vmatmul.msk.f32.vlgmr.msrb.gmra.mxu1 %vm220_vm1, %v353_v17 }
  0x99   : > { %v502_v20 = vpop.permute.xlu1 %501  ;;  %v497_v21 = vpop.permute.xlu0 %496 }
  0x9a   : > { %v499_v22 = vsel %vm200_vm0, %v494_v13, %v497_v21  ;;  %v655_v23 = vsel %vm200_vm0, %v653_v19, %v502_v20 }
  0x9b   : > { %v500_v24 = vmul.f32 0.35355338, %v499_v22  ;;  %943 = vmatpush.xpose.msk.msrb.mxu1 %vm220_vm1, %v655_v23 }
  0x9e   : > { %938 = vmatmul.msk.f32.vlgmr.msra.gmra.mxu1 %vm220_vm1, %v500_v24 }
  0xa1   : > { %v210_v27 = vpop.permute.xlu1 %209  ;;  %v641_v28 = vpop.permute.xlu0 %640 }
  0xa2   : > { %v643_v30 = vsel %vm200_vm0, %v217_v9, %v641_v28  ;;  %v212_v31 = vsel %vm200_vm0, %v206_v8, %v210_v27 }
  0xa3   : > { %v644_v32 = vmul.f32 0.35355338, %v643_v30  ;;  %923 = vmatpush.xpose.msk.msra.mxu0 %vm220_vm1, %v212_v31 }
  0xa6   : > { %924 = vmatmul.msk.f32.vlgmr.msra.gmra.mxu0 %vm220_vm1, %v202_v10  ;;  %944 = vmatmul.msk.f32.vlgmr.msrb.gmra.mxu1 %vm220_vm1, %v644_v32 }
  0xa7   : > { %929 = vmatpush.xpose.msk.msrb.mxu0 %vm220_vm1, %v360_v29 }
  0xa9   : > { %v505_v34 = vpop.permute.xlu0 %504  ;;  %v646_v35 = vpop.permute.xlu1 %645 }
  0xaa   : > { %v507_v36 = vsel %vm200_vm0, %v502_v20, %v505_v34  ;;  %v651_v37 = vsel %vm200_vm0, %v646_v35, %v649_v33 }
  0xab   : > { %935 = vmatpush.xpose.msk.msra.mxu0 %vm220_vm1, %v507_v36 }
  0xae   : > { %930 = vmatmul.msk.f32.vlgmr.msrb.gmra.mxu0 %vm220_vm1, %v353_v17 }
  0xaf   : > { %941 = vmatpush.xpose.msk.msrb.mxu0 %vm220_vm1, %v651_v37 }
  0xb1   : > { %v973_v54 = vpop.permute.xlu0 %972 }
  0xb2   : > { %v974_v55 = vunpack.i.l.bf16 %v973_v54  ;;  %v975_v59 = vunpack.i.h.bf16 %v973_v54 }
  0xb4   : > { %343 = vmatpush.msra.mxu3 %v974_v55  ;;  %320 = vmatpush.msra.mxu2 %v975_v59 }
  0xb6   : > { %936 = vmatmul.msk.f32.vlgmr.msra.gmra.mxu0 %vm220_vm1, %v500_v24  ;;  %321 = vmatpush.msra.mxu2 %v974_v55 }
  0xbe   : > { %942 = vmatmul.msk.f32.vlgmr.msrb.gmra.mxu0 %vm220_vm1, %v644_v32 }
 0x10b   : > { %v267_v38 = vpop.f32.mrf.mxu1 }
 0x10c   : > { %v281_v39 = vsel %vm200_vm0, %v267_v38, -inf }
 0x10d   : > { %282 = vmax.xlane.f32.xlu0 %v281_v39 }
 0x113   : > { %v411_v40 = vpop.f32.mrf.mxu1 }
 0x114   : > { %v425_v41 = vsel %vm200_vm0, %v411_v40, -inf }
 0x115   : > { %426 = vmax.xlane.f32.xlu1 %v425_v41 }
 0x11b   : > { %v558_v42 = vpop.f32.mrf.mxu1 }
 0x11c   : > { %v572_v43 = vsel %vm200_vm0, %v558_v42, -inf }
 0x11d   : > { %573 = vmax.xlane.f32.xlu2 %v572_v43 }
 0x123   : > { %v244_v44 = vpop.f32.mrf.mxu0  ;;  %v1130_v45 = vpop.f32.mrf.mxu1 }
 0x124   : > { %v716_v46 = vsel %vm200_vm0, %v1130_v45, -inf  ;;  %v270_v47 = vsel %vm200_vm0, %v244_v44, -inf }
 0x125   : > { %717 = vmax.xlane.f32.xlu2 %v716_v46  ;;  %271 = vmax.xlane.f32.xlu0 %v270_v47 }
 0x12b   : > { %v388_v48 = vpop.f32.mrf.mxu0 }
 0x12c   : > { %v414_v53 = vsel %vm200_vm0, %v388_v48, -inf }
 0x12e   : > { %326 = vrot.lane.b32.xlu1 %v1079_v0, %s1039_s29 }
 0x133   : > { %v535_v49 = vpop.f32.mrf.mxu0 }
 0x134   : > { %v561_v50 = vsel %vm200_vm0, %v535_v49, -inf }
 0x135   : > { %562 = vmax.xlane.f32.xlu0 %v561_v50 }
 0x13b   : > { %v1138_v51 = vpop.f32.mrf.mxu0 }
 0x13c   : > { %v705_v52 = vsel %vm200_vm0, %v1138_v51, -inf }
 0x13d   : > { %706 = vmax.xlane.f32.xlu2 %v705_v52 }
 0x158   : > { %415 = vmax.xlane.f32.xlu1 %v414_v53 }
 0x180   : > { %v283_v56 = vpop.xlane.xlu0 %282 }
 0x181   : > { %v284_v57 = vsub.f32 %v267_v38, %v283_v56 }
 0x183   : > { %v285_v58 = vmul.f32 1.442695, %v284_v57 }
 0x185   : > { %991 = vpow2.f32 %v285_v58 }
 0x188   : > { %v427_v60 = vpop.xlane.xlu1 %426 }
 0x189   : > { %v428_v61 = vsub.f32 %v411_v40, %v427_v60 }
 0x18b   : > { %v992_v62 = vpop.eup %991  ;;  %v429_v63 = vmul.f32 1.442695, %v428_v61 }
 0x18c   : > { %v287_v1 = vsel %vm200_vm0, %v992_v62, 0.0 }
 0x18d   : > { %993 = vpow2.f32 %v429_v63  ;;  %288 = vadd.xlane.f32.xlu2 %v287_v1 }
 0x190   : > { %v574_v2 = vpop.xlane.xlu2 %573 }
 0x191   : > { %v575_v3 = vsub.f32 %v558_v42, %v574_v2 }
 0x193   : > { %v994_v4 = vpop.eup %993  ;;  %v576_v5 = vmul.f32 1.442695, %v575_v3 }
 0x194   : > { %v431_v6 = vsel %vm200_vm0, %v994_v4, 0.0 }
 0x195   : > { %995 = vpow2.f32 %v576_v5  ;;  %432 = vadd.xlane.f32.xlu1 %v431_v6 }
 0x198   : > { %v272_v7 = vpop.xlane.xlu0 %271  ;;  %v718_v17 = vpop.xlane.xlu2 %717 }
 0x199   : > { %v273_v8 = vsub.f32 %v244_v44, %v272_v7  ;;  %v719_v21 = vsub.f32 %v1130_v45, %v718_v17 }
 0x19b   : > { %v996_v9 = vpop.eup %995  ;;  %v274_v10 = vmul.f32 1.442695, %v273_v8  ;;  %v720_v23 = vmul.f32 1.442695, %v719_v21 }
 0x19c   : > { %v578_v11 = vsel %vm200_vm0, %v996_v9, 0.0 }
 0x19d   : > { %579 = vadd.xlane.f32.xlu0 %v578_v11  ;;  %997 = vpow2.f32 %v274_v10 }
 0x1a0   : > { %v327_v12 = vpop.permute.xlu1 %326 }
 0x1a1   : > { %344 = vmatpush.msra.mxu3 %v327_v12 }
 0x1a3   : > { %v1146_v13 = vpop.eup %997 }
 0x1a4   : > { %v276_v14 = vsel %vm200_vm0, %v1146_v13, 0.0 }
 0x1a5   : > { %277 = vadd.xlane.f32.xlu2 %v276_v14 }
 0x1a8   : > { %v563_v15 = vpop.xlane.xlu0 %562 }
 0x1a9   : > { %v564_v16 = vsub.f32 %v535_v49, %v563_v15 }
 0x1ab   : > { %v565_v20 = vmul.f32 1.442695, %v564_v16 }
 0x1b0   : > { %v707_v31 = vpop.xlane.xlu2 %706 }
 0x1b1   : > { %977 = vrot.lane.b32.xlu0 %v1109_v26, %s1040_s30  ;;  %v708_v39 = vsub.f32 %v1138_v51, %v707_v31 }
 0x1bd   : > { %982 = vrot.lane.b32.xlu2 %v1109_v26, %s1041_s4 }
 0x1c5   : > { %617 = vrot.lane.b32.xlu2 %v1079_v0, %s1041_s4 }
 0x1cb   : > { %v416_v18 = vpop.xlane.xlu1 %415 }
 0x1cc   : > { %v417_v19 = vsub.f32 %v388_v48, %v416_v18 }
 0x1cd   : > { %987 = vrot.lane.b32.xlu2 %v1109_v26, %s1042_s5  ;;  %v709_v26 = vmul.f32 1.442695, %v708_v39 }
 0x1ce   : > { %v418_v22 = vmul.f32 1.442695, %v417_v19 }
 0x1d0   : > { %999 = vpow2.f32 %v418_v22 }
 0x1d1   : > { %1001 = vpow2.f32 %v565_v20 }
 0x1d2   : > { %1003 = vpow2.f32 %v720_v23 }
 0x1d6   : > { %v1154_v24 = vpop.eup %999 }
 0x1d7   : > { %v1156_v25 = vpop.eup %1001  ;;  %v420_v27 = vsel %vm200_vm0, %v1154_v24, 0.0 }
 0x1d8   : > { %421 = vadd.xlane.f32.xlu1 %v420_v27  ;;  %v567_v28 = vsel %vm200_vm0, %v1156_v25, 0.0  ;;  %v1004_v29 = vpop.eup %1003 }
 0x1d9   : > { %v722_v30 = vsel %vm200_vm0, %v1004_v29, 0.0 }
 0x1db   : > { %568 = vadd.xlane.f32.xlu0 %v567_v28 }
 0x1e0   : > { %723 = vadd.xlane.f32.xlu1 %v722_v30 }
 0x1f9   : > { %470 = vrot.lane.b32.xlu1 %v1079_v0, %s1040_s30 }
 0x200   : > { %v289_v32 = vpop.xlane.xlu2 %288 }
 0x201   : > { %1005 = vrcp.f32 %v289_v32 }
 0x207   : > { %v1006_v33 = vpop.eup %1005 }
 0x208   : > { %v433_v34 = vpop.xlane.xlu1 %432  ;;  %v291_v35 = vmul.f32 %v1006_v33, %v992_v62 }
 0x209   : > { %1007 = vrcp.f32 %v433_v34 }
 0x20a   : > { %293 = vrot.lane.b32.xlu2 %v291_v35, %s1031_s18 }
 0x20f   : > { %v1008_v36 = vpop.eup %1007 }
 0x210   : > { %v580_v37 = vpop.xlane.xlu0 %579  ;;  %v435_v38 = vmul.f32 %v1008_v36, %v994_v4 }
 0x211   : > { %1009 = vrcp.f32 %v580_v37 }
 0x212   : > { %437 = vrot.lane.b32.xlu2 %v435_v38, %s1031_s18  ;;  %1011 = vpow2.f32 %v709_v26 }
 0x217   : > { %v1010_v40 = vpop.eup %1009 }
 0x218   : > { %v582_v41 = vmul.f32 %v1010_v40, %v996_v9  ;;  %v1012_v42 = vpop.eup %1011  ;;  %v278_v44 = vpop.xlane.xlu2 %277 }
 0x219   : > { %v711_v43 = vsel %vm200_vm0, %v1012_v42, 0.0 }
 0x21a   : > { %584 = vrot.lane.b32.xlu2 %v582_v41, %s1031_s18 }
 0x220   : > { %v983_v46 = vpop.permute.xlu2 %982 }
 0x221   : > { %v985_v55 = vunpack.i.h.bf16 %v983_v46  ;;  %v984_v59 = vunpack.i.l.bf16 %v983_v46 }
 0x222   : > { %761 = vrot.lane.b32.xlu2 %v1079_v0, %s1042_s5 }
 0x223   : > { %712 = vadd.xlane.f32.xlu1 %v711_v43  ;;  %v978_v45 = vpop.permute.xlu0 %977 }
 0x224   : > { %v980_v47 = vunpack.i.h.bf16 %v978_v45  ;;  %v979_v48 = vunpack.i.l.bf16 %v978_v45 }
 0x226   : > { %464 = vmatpush.msrb.mxu2 %v980_v47  ;;  %487 = vmatpush.msrb.mxu3 %v979_v48 }
 0x228   : > { %465 = vmatpush.msrb.mxu2 %v979_v48  ;;  %v618_v50 = vpop.permute.xlu2 %617 }
 0x230   : > { %v988_v53 = vpop.permute.xlu2 %987 }
 0x231   : > { %v990_v62 = vunpack.i.h.bf16 %v988_v53  ;;  %v989_v2 = vunpack.i.l.bf16 %v988_v53 }
 0x24b   : > { %v422_v49 = vpop.xlane.xlu1 %421 }
 0x24e   : > { %v569_v60 = vpop.xlane.xlu0 %568 }
 0x253   : > { %v724_v51 = vpop.xlane.xlu1 %723 }
 0x254   : > { %1013 = vrcp.f32 %v724_v51 }
 0x255   : > { %1015 = vrcp.f32 %v278_v44 }
 0x256   : > { %1017 = vrcp.f32 %v422_v49 }
 0x257   : > { %1019 = vrcp.f32 %v569_v60 }
 0x25a   : > { %v1014_v52 = vpop.eup %1013 }
 0x25b   : > { %v726_v54 = vmul.f32 %v1014_v52, %v1004_v29  ;;  %v1016_v0 = vpop.eup %1015 }
 0x25c   : > { %v280_v56 = vmul.f32 %v1016_v0, %v1146_v13  ;;  %v1018_v61 = vpop.eup %1017 }
 0x25d   : > { %728 = vrot.lane.b32.xlu0 %v726_v54, %s1031_s18  ;;  %v424_v1 = vmul.f32 %v1018_v61, %v1154_v24  ;;  %v1020_v5 = vpop.eup %1019 }
 0x25e   : > { %v571_v6 = vmul.f32 %v1020_v5, %v1156_v25 }
 0x264   : > { %v294_v57 = vpop.permute.xlu2 %293 }
 0x265   : > { %v296_v58 = vsel %vm200_vm0, %v280_v56, %v294_v57 }
 0x266   : > { %927 = vmatmul.msk.f32.vlgmr.msra.gmra.mxu2 %vm220_vm1, %v296_v58  ;;  %928 = vmatmul.msk.f32.vlgmr.msra.gmra.mxu3 %vm220_vm1, %v296_v58 }
 0x267   : > { %611 = vmatpush.msra.mxu2 %v985_v55 }
 0x269   : > { %612 = vmatpush.msra.mxu2 %v984_v59 }
 0x26b   : > { %v471_v63 = vpop.permute.xlu1 %470 }
 0x26c   : > { %v438_v3 = vpop.permute.xlu2 %437  ;;  %488 = vmatpush.msrb.mxu3 %v471_v63 }
 0x26d   : > { %v440_v4 = vsel %vm200_vm0, %v424_v1, %v438_v3 }
 0x26e   : > { %634 = vmatpush.msra.mxu3 %v984_v59  ;;  %933 = vmatmul.msk.f32.vlgmr.msrb.gmra.mxu2 %vm220_vm1, %v440_v4 }
 0x26f   : > { %934 = vmatmul.msk.f32.vlgmr.msrb.gmra.mxu3 %vm220_vm1, %v440_v4  ;;  %755 = vmatpush.msrb.mxu2 %v990_v62 }
 0x270   : > { %635 = vmatpush.msra.mxu3 %v618_v50 }
 0x271   : > { %756 = vmatpush.msrb.mxu2 %v989_v2 }
 0x272   : > { %778 = vmatpush.msrb.mxu3 %v989_v2 }
 0x274   : > { %v585_v7 = vpop.permute.xlu2 %584 }
 0x275   : > { %v587_v8 = vsel %vm200_vm0, %v571_v6, %v585_v7 }
 0x276   : > { %939 = vmatmul.msk.f32.vlgmr.msra.gmra.mxu2 %vm220_vm1, %v587_v8 }
 0x277   : > { %940 = vmatmul.msk.f32.vlgmr.msra.gmra.mxu3 %vm220_vm1, %v587_v8 }
 0x27c   : > { %v762_v9 = vpop.permute.xlu2 %761 }
 0x27d   : > { %779 = vmatpush.msrb.mxu3 %v762_v9 }
 0x296   : > { %v713_v10 = vpop.xlane.xlu1 %712 }
 0x297   : > { %1021 = vrcp.f32 %v713_v10 }
 0x29d   : > { %v1022_v11 = vpop.eup %1021 }
 0x29e   : > { %v715_v12 = vmul.f32 %v1022_v11, %v1012_v42 }
 0x2cf   : > { %v729_v13 = vpop.permute.xlu0 %728 }
 0x2d0   : > { %v731_v14 = vsel %vm200_vm0, %v715_v12, %v729_v13 }
 0x2d1   : > { %945 = vmatmul.msk.f32.vlgmr.msrb.gmra.mxu2 %vm220_vm1, %v731_v14  ;;  %946 = vmatmul.msk.f32.vlgmr.msrb.gmra.mxu3 %vm220_vm1, %v731_v14 }
 0x2e9   : > { %v323_v15 = vpop.f32.mrf.mxu2  ;;  %v346_v16 = vpop.f32.mrf.mxu3 }
 0x2f1   : > { %v467_v17 = vpop.f32.mrf.mxu2 }
 0x2f2   : > { %v490_v18 = vpop.f32.mrf.mxu3  ;;  %785 = vrot.lane.b32.xlu2 %v467_v17, %s1031_s18 }
 0x2f3   : > { %803 = vrot.lane.b32.xlu1 %v490_v18, %s1031_s18 }
 0x2f9   : > { %v614_v19 = vpop.f32.mrf.mxu2 }
 0x2fa   : > { %v637_v20 = vpop.f32.mrf.mxu3  ;;  %789 = vrot.lane.b32.xlu2 %v614_v19, %s1043_s6 }
 0x2fb   : > { %807 = vrot.lane.b32.xlu0 %v637_v20, %s1043_s6 }
 0x34c   : > { %v786_v23 = vpop.permute.xlu2 %785 }
 0x34d   : > { %v796_v25 = vsel %vm200_vm0, %v323_v15, %v786_v23 }
 0x354   : > { %v781_v21 = vpop.f32.mrf.mxu3  ;;  %v758_v22 = vpop.f32.mrf.mxu2 }
 0x355   : > { %811 = vrot.lane.b32.xlu0 %v781_v21, %s1044_s7  ;;  %793 = vrot.lane.b32.xlu2 %v758_v22, %s1044_s7  ;;  %v790_v24 = vpop.permute.xlu2 %789 }
 0x356   : > { %v797_v27 = vsel %vm220_vm1, %v796_v25, %v790_v24 }
 0x365   : > { %v804_v31 = vpop.permute.xlu1 %803 }
 0x366   : > { %v814_v32 = vsel %vm200_vm0, %v346_v16, %v804_v31 }
 0x36d   : > { %v808_v30 = vpop.permute.xlu0 %807 }
 0x36e   : > { %v815_v33 = vsel %vm220_vm1, %v814_v32, %v808_v30 }
 0x3af   : > { %v794_v28 = vpop.permute.xlu2 %793 }
 0x3b0   : > { %v799_v29 = vsel %vm798_vm2, %v797_v27, %v794_v28 }
 0x3b1   : > { %801 = vst.msk [vmem:[%s189_s10] sm:$0xff] %vm800_vm3, %v799_v29 }
 0x3c7   : > { %v812_v34 = vpop.permute.xlu0 %811 }
 0x3c8   : > { %v816_v35 = vsel %vm798_vm2, %v815_v33, %v812_v34 }
 0x3c9   : > { %817 = vst.msk [vmem:[%s193_s15] sm:$0xff] %vm800_vm3, %v816_v35 }
 0x3ca PF: > { %s14_s12 = sadd.s32 1, %s1029_s12  }
 0x3cb   : > { %p11_p4 = scmp.ge.s32.totalorder %s14_s12, 4  }
 0x3cd   :  { %13 = sbr.rel (!%p11_p4) target bundleno = 1 (0x1), region = 73 }

// kernel: pallas_forward.14
= control target key start
LH: loop header
LB: loop body
LE: loop exit
PB: predicated region body
PF: predicated region fallthrough
CT: control target
= control target key end

     0   :  { %12 = vsyncpa [#allocation3], 0  ;;  %s742_s0 = inlined_call_operand.vmem [shape: f32[16,32], index: 0, kind: input, shape index: {}]   ;;  %s743_s1 = inlined_call_operand.vmem [shape: f32[16,32], index: 1, kind: input, shape index: {}]   ;;  %s744_s2 = inlined_call_operand.vmem [shape: f32[32,96], index: 2, kind: input, shape index: {}]   ;;  %s745_s3 = inlined_call_operand.hbm [shape: f32[32,96], index: 3, kind: input, shape index: {}]   ;;  %s746_s4 = inlined_call_operand.hbm [shape: f32[32,96], index: 4, kind: input, shape index: {}]   ;;  %s747_s5 = inlined_call_operand.vmem [shape: f32[16,96], index: 5, kind: output, shape index: {0}]   ;;  %s748_s6 = inlined_call_operand.vmem [shape: f32[16,96], index: 6, kind: output, shape index: {1}]  }
   0x1   :  { %13 = vsyncpa [#allocation5], 0  ;;  %s682_s21 = smov 0  }
   0x2 LB: > { %s205_s24 = sshll.u32 %s745_s3, 4  ;;  %s518_s25 = sadd.s32 4294967295, %s641_s21   ;;  %s641_s21 = sphi %s682_s21, %s19_s21   ;;  %s206_s24 = int_to_ptr.hbm [resolvable:$true] %s205_s24 }
   0x3   : > { %p520_p0 = scmp.ge.s32.totalorder %s641_s21, 1  ;;  %p191_p1 = scmp.lt.s32.totalorder %s641_s21, 3 }
   0x4   : > { %p551_p2 = scmp.eq.s32.totalorder %s518_s25, 0  ;;  %s643_s27 = smov [#allocation2]  }
   0x5   : > { %p693_p3 = pnand %p520_p0, %p191_p1  ;;  %s207_s28 = sshll.u32 %s643_s27, 4  ;;  %s208_s28 = int_to_ptr.vmem [resolvable:$true] %s207_s28 }
   0x6   : > { %s219_s7 = sshll.u32 %s746_s4, 4  ;;  %s644_s8 = smov [#allocation4]   ;;  %s220_s7 = int_to_ptr.hbm [resolvable:$true] %s219_s7 }
   0x7   : > { %p544_p4 = pneg %p693_p3  ;;  %s221_s9 = sshll.u32 %s644_s8, 4  ;;  %s222_s9 = int_to_ptr.vmem [resolvable:$true] %s221_s9 }
   0x8   : > { %s645_s10 = smov 128   ;;  %s646_s11 = smov 8  }
   0x9   : > { %p545_p5 = pnand %p551_p2, %p544_p4  ;;  %251 = sbr.rel (%p693_p3) target bundleno = 163 (0xa3), region = 40 }
   0xb   : > { %547 = dma.hbm_to_vmem [thread:$0]  (!%p545_p5), %s206_s24, 512, %s208_s28, [#allocation3], %s645_s10, %s645_s10, %s646_s11  }
   0xc   : > { %550 = dma.hbm_to_vmem [thread:$0]  (!%p545_p5), %s220_s7, 512, %s222_s9, [#allocation5], %s645_s10, %s645_s10, %s646_s11  }
   0xe   : > { %632 = dma.done.wait (%p551_p2), [#allocation3], 512  }
   0xf   : > { %634 = vsyncadd (%p551_p2), [#allocation3], 4294966784 }
  0x10   : > { %636 = dma.done.wait (%p551_p2), [#allocation5], 512  }
  0x11   : > { %638 = vsyncadd (%p551_p2), [#allocation5], 4294966784  ;;  %p293_p6 = scmp.lt.s32.totalorder %s518_s25, 1  ;;  %v370_v0 = vld [vmem:[#allocation4 + $0x18] sm:$0xff]  ;;  %v369_v1 = vld [vmem:[#allocation4 + $0x10] sm:$0xff]  ;;  %vm315_vm0 = vcmask 261120  }
  0x12   : > { %386 = vmatpush.msra.mxu2 %v370_v0  ;;  %v368_v2 = vld [vmem:[#allocation4 + $0x8] sm:$0xff]  ;;  %v314_v3 = vld [vmem:[%s744_s2 + $0x18] sm:$0xff]  ;;  %v313_v7 = vld [vmem:[%s744_s2 + $0x10] sm:$0xff]  ;;  %vm397_vm1 = vcmask 785408  }
  0x13   : > { %s751_s25 = smov (!%p293_p6, %s518_s25), 1  ;;  %v342_v4 = vld [vmem:[#allocation2 + $0x18] sm:$0xff]  ;;  %331 = vmatpush.msra.mxu0 %v314_v3  ;;  %v341_v8 = vld [vmem:[#allocation2 + $0x10] sm:$0xff]  ;;  %v312_v9 = vld [vmem:[%s744_s2 + $0x8] sm:$0xff] }
  0x14   : > { %s709_s12 = sshll.u32 %s751_s25, 3  ;;  %358 = vmatpush.msra.mxu1 %v342_v4  ;;  %387 = vmatpush.msra.mxu2 %v369_v1  ;;  %v340_v10 = vld [vmem:[#allocation2 + $0x8] sm:$0xff]  ;;  %v367_v11 = vld [vmem:[#allocation4] sm:$0xff] }
  0x15   : > { %s296_s15 = scalar_lea.vmem %s742_s0, %s709_s12  ;;  %s300_s18 = scalar_lea.vmem %s743_s1, %s709_s12  ;;  %332 = vmatpush.msra.mxu0 %v313_v7  ;;  %v311_v13 = vld [vmem:[%s744_s2] sm:$0xff] }
  0x16   : > { %v309_v5 = vld [vmem:[%s296_s15] sm:$0xff]  ;;  %359 = vmatpush.msra.mxu1 %v341_v8  ;;  %388 = vmatpush.msra.mxu2 %v368_v2  ;;  %s304_s30 = scalar_lea.vmem %s747_s5, %s709_s12  ;;  %s308_s9 = scalar_lea.vmem %s748_s6, %s709_s12 }
  0x17   : > { %v310_v6 = vld [vmem:[%s300_s18] sm:$0xff]  ;;  %333 = vmatpush.msra.mxu0 %v312_v9 }
  0x18   : > { %v366_v12 = vadd.f32 %v310_v6, %v309_v5  ;;  %360 = vmatpush.msra.mxu1 %v340_v10  ;;  %v339_v14 = vld [vmem:[#allocation2] sm:$0xff]  ;;  %389 = vmatpush.msra.mxu2 %v367_v11 }
  0x19   : > { %334 = vmatpush.msra.mxu0 %v311_v13 }
  0x1a   : > { %533 = vmatmul.msk.f32.vlgmr.msra.gmra.mxu2 %vm315_vm0, %v366_v12  ;;  %361 = vmatpush.msra.mxu1 %v339_v14 }
  0x1b   : > { %531 = vmatmul.msk.f32.vlgmr.msra.gmra.mxu0 %vm315_vm0, %v309_v5  ;;  %532 = vmatmul.msk.f32.vlgmr.msra.gmra.mxu1 %vm315_vm0, %v310_v6 }
  0x98   : > { %v336_v15 = vpop.f32.mrf.mxu0  ;;  %v363_v16 = vpop.f32.mrf.mxu1 }
  0x99   : > { %v394_v17 = vsub.f32 %v336_v15, %v363_v16 }
  0x9b   : > { %398 = vst.msk [vmem:[%s304_s30] sm:$0xff] %vm397_vm1, %v394_v17 }
  0x9d   : > { %v391_v18 = vpop.f32.mrf.mxu2 }
  0x9e   : > { %v395_v19 = vsub.f32 %v391_v18, %v336_v15 }
  0xa0   : > { %v396_v20 = vsub.f32 %v395_v19, %v363_v16 }
  0xa2   : > { %399 = vst.msk [vmem:[%s308_s9] sm:$0xff] %vm397_vm1, %v396_v20 }
  0xa3 PF: > { %s19_s21 = sadd.s32 1, %s641_s21  }
  0xa4   : > { %p16_p7 = scmp.ge.s32.totalorder %s19_s21, 4  }
  0xa6   :  { %18 = sbr.rel (!%p16_p7) target bundleno = 2 (0x2), region = 94 }
  0xab   :  { %433 = vsyncpa [#allocation3], 1 }
  0xac   :  { %435 = vsyncpa [#allocation3 + $0x1], 1 }
  0xad   :  { %436 = vsyncpa [#allocation5], 1 }

// kernel: pallas_forward.13
= control target key start
LH: loop header
LB: loop body
LE: loop exit
PB: predicated region body
PF: predicated region fallthrough
CT: control target
= control target key end

     0   :  { %s1687_s0 = inlined_call_operand.vmem [shape: f32[16,32], index: 0, kind: input, shape index: {}]   ;;  %s1688_s1 = inlined_call_operand.vmem [shape: f32[16,32], index: 1, kind: input, shape index: {}]   ;;  %s1689_s2 = inlined_call_operand.hbm [shape: f32[32,32], index: 2, kind: input, shape index: {}]   ;;  %s1690_s3 = inlined_call_operand.hbm [shape: f32[32,32], index: 3, kind: input, shape index: {}]   ;;  %s1691_s4 = inlined_call_operand.hbm [shape: f32[32,32], index: 4, kind: input, shape index: {}]   ;;  %s1692_s5 = inlined_call_operand.vmem [shape: f32[1,32], index: 5, kind: input, shape index: {}]   ;;  %s1693_s6 = inlined_call_operand.vmem [shape: f32[1,32], index: 6, kind: input, shape index: {}]   ;;  %s1694_s7 = inlined_call_operand.hbm [shape: f32[32,32], index: 7, kind: input, shape index: {}]   ;;  %s1695_s8 = inlined_call_operand.hbm [shape: f32[32,32], index: 8, kind: input, shape index: {}]   ;;  %s1696_s9 = inlined_call_operand.hbm [shape: f32[32,32], index: 9, kind: input, shape index: {}]   ;;  %s1697_s10 = inlined_call_operand.vmem [shape: f32[1,32], index: 10, kind: input, shape index: {}]   ;;  %s1698_s11 = inlined_call_operand.vmem [shape: f32[1,32], index: 11, kind: input, shape index: {}]   ;;  %s1699_s12 = inlined_call_operand.vmem [shape: f32[1,32], index: 12, kind: input, shape index: {}]   ;;  %s1700_s13 = inlined_call_operand.vmem [shape: f32[1,32], index: 13, kind: input, shape index: {}]   ;;  %s1701_s14 = inlined_call_operand.vmem [shape: f32[1,32], index: 14, kind: input, shape index: {}]   ;;  %s1702_s15 = inlined_call_operand.vmem [shape: f32[1,32], index: 15, kind: input, shape index: {}]   ;;  %s1703_s16 = inlined_call_operand.vmem [shape: f32[1,32], index: 16, kind: input, shape index: {}]   ;;  %s1704_s17 = inlined_call_operand.vmem [shape: f32[16,32], index: 17, kind: output, shape index: {0}]   ;;  %s1705_s18 = inlined_call_operand.vmem [shape: f32[16,32], index: 18, kind: output, shape index: {1}]  }
   0x1   :  { %1707 = sst [smem:[#allocation17_spill]] %s1687_s0 }
   0x2   :  { %1708 = sst [smem:[#allocation18_spill]] %s1688_s1 }
   0x3   :  { %1709 = sst [smem:[#allocation19_spill]] %s1689_s2 }
   0x4   :  { %1710 = sst [smem:[#allocation20_spill]] %s1690_s3 }
   0x5   :  { %1711 = sst [smem:[#allocation21_spill]] %s1694_s7 }
   0x6   :  { %1712 = sst [smem:[#allocation22_spill]] %s1705_s18 }
   0x7   :  { %24 = vsyncpa [#allocation3], 0 }
   0x8   :  { %25 = vsyncpa [#allocation5], 0 }
   0x9   :  { %26 = vsyncpa [#allocation8], 0 }
   0xa   :  { %27 = vsyncpa [#allocation11], 0  ;;  %s1544_s27 = smov 0  }
   0xb LB: > { %1713 = sst [smem:[#allocation16_spill]] %s1438_s27  ;;  %s1550_s28 = sadd.s32 4294967295, %s1438_s27   ;;  %s1438_s27 = sphi %s1544_s27, %s33_s27  }
   0xc   : > { %p1124_p0 = scmp.ge.s32.totalorder %s1438_s27, 1  ;;  %p457_p1 = scmp.lt.s32.totalorder %s1438_s27, 3 }
   0xd   : > { %p1194_p2 = scmp.eq.s32.totalorder %s1550_s28, 0  ;;  %s1714_s3 = sld [smem:[#allocation20_spill]] }
   0xe   : > { %p1558_p3 = pnand %p1124_p0, %p457_p1  ;;  %s1716_s7 = sld [smem:[#allocation21_spill]] }
   0xf   : > { %s1440_s22 = smov [#allocation4]   ;;  %s1441_s24 = smov [#allocation7]  }
  0x10   : > { %p1175_p4 = pneg %p1558_p3  ;;  %s484_s2 = sshll.u32 %s1440_s22, 4  ;;  %s485_s2 = int_to_ptr.vmem [resolvable:$true] %s484_s2 }
  0x11   : > { %s518_s25 = sshll.u32 %s1441_s24, 4  ;;  %s1718_s30 = sld [smem:[#allocation19_spill]]  ;;  %s519_s25 = int_to_ptr.vmem [resolvable:$true] %s518_s25 }
  0x12   : > { %p1569_p5 = pnand %p1194_p2, %p1175_p4  ;;  %s1442_s20 = smov 128  }
  0x13   : > { %s482_s0 = sshll.u32 %s1714_s3, 4  ;;  %s1443_s22 = smov 8   ;;  %s483_s0 = int_to_ptr.hbm [resolvable:$true] %s482_s0 }
  0x14   : > { %s516_s21 = sshll.u32 %s1716_s7, 4  ;;  %s1444_s3 = smov [#allocation2]   ;;  %s517_s21 = int_to_ptr.hbm [resolvable:$true] %s516_s21 }
  0x15   : > { %1181 = dma.hbm_to_vmem [thread:$0]  (!%p1569_p5), %s483_s0, 512, %s485_s2, [#allocation5], %s1442_s20, %s1442_s20, %s1443_s22  }
  0x16   : > { %1187 = dma.hbm_to_vmem [thread:$0]  (!%p1569_p5), %s517_s21, 512, %s519_s25, [#allocation8], %s1442_s20, %s1442_s20, %s1443_s22  }
  0x17   : > { %s468_s1 = sshll.u32 %s1718_s30, 4  ;;  %s470_s7 = sshll.u32 %s1444_s3, 4  ;;  %s469_s1 = int_to_ptr.hbm [resolvable:$true] %s468_s1  ;;  %s471_s7 = int_to_ptr.vmem [resolvable:$true] %s470_s7 }
  0x18   : > { %s496_s24 = sshll.u32 %s1691_s4, 4  ;;  %s530_s30 = sshll.u32 %s1695_s8, 4  ;;  %s497_s24 = int_to_ptr.hbm [resolvable:$true] %s496_s24  ;;  %s531_s30 = int_to_ptr.hbm [resolvable:$true] %s530_s30 }
  0x19   : > { %1178 = dma.hbm_to_vmem [thread:$0]  (!%p1569_p5), %s469_s1, 512, %s471_s7, [#allocation3], %s1442_s20, %s1442_s20, %s1443_s22  }
  0x1a   : > { %s1445_s0 = smov [#allocation6]   ;;  %s1446_s3 = smov [#allocation9]  }
  0x1b   : > { %s498_s2 = sshll.u32 %s1445_s0, 4  ;;  %s532_s21 = sshll.u32 %s1446_s3, 4  ;;  %s499_s2 = int_to_ptr.vmem [resolvable:$true] %s498_s2  ;;  %s533_s21 = int_to_ptr.vmem [resolvable:$true] %s532_s21 }
  0x1c   : > { %1184 = dma.hbm_to_vmem [thread:$0]  (!%p1569_p5), %s497_s24, 512, %s499_s2, [#allocation5], %s1442_s20, %s1442_s20, %s1443_s22  }
  0x1d   : > { %s544_s27 = sshll.u32 %s1696_s9, 4  ;;  %s1447_s7 = smov [#allocation10]   ;;  %s545_s27 = int_to_ptr.hbm [resolvable:$true] %s544_s27 }
  0x1e   : > { %1190 = dma.hbm_to_vmem [thread:$0]  (!%p1569_p5), %s531_s30, 512, %s533_s21, [#allocation8], %s1442_s20, %s1442_s20, %s1443_s22  }
  0x1f   : > { %s546_s1 = sshll.u32 %s1447_s7, 4  ;;  %597 = sbr.rel (%p1558_p3) target bundleno = 608 (0x260), region = 88  ;;  %s547_s1 = int_to_ptr.vmem [resolvable:$true] %s546_s1 }
  0x20   : > { %1193 = dma.hbm_to_vmem [thread:$0]  (!%p1569_p5), %s545_s27, 512, %s547_s1, [#allocation11], %s1442_s20, %s1442_s20, %s1443_s22  }
  0x24   : > { %1421 = dma.done.wait (%p1194_p2), [#allocation3], 512  }
  0x25   : > { %1423 = vsyncadd (%p1194_p2), [#allocation3], 4294966784 }
  0x26   : > { %1425 = dma.done.wait (%p1194_p2), [#allocation5], 1024  }
  0x27   : > { %1427 = vsyncadd (%p1194_p2), [#allocation5], 4294966272 }
  0x28   : > { %1429 = dma.done.wait (%p1194_p2), [#allocation8], 1024  }
  0x29   : > { %1431 = vsyncadd (%p1194_p2), [#allocation8], 4294966272 }
  0x2a   : > { %1433 = dma.done.wait (%p1194_p2), [#allocation11], 512  }
  0x2b   : > { %1435 = vsyncadd (%p1194_p2), [#allocation11], 4294966784  ;;  %p683_p6 = scmp.lt.s32.totalorder %s1550_s28, 1  ;;  %v760_v0 = vld [vmem:[#allocation6 + $0x18] sm:$0xff]  ;;  %s1719_s22 = sld [smem:[#allocation17_spill]]  ;;  %v759_v3 = vld [vmem:[#allocation6 + $0x10] sm:$0xff] }
  0x2c   : > { %v704_v1 = vld [vmem:[#allocation2 + $0x18] sm:$0xff]  ;;  %s1720_s30 = sld [smem:[#allocation18_spill]]  ;;  %776 = vmatpush.msra.mxu2 %v760_v0  ;;  %v703_v4 = vld [vmem:[#allocation2 + $0x10] sm:$0xff]  ;;  %v758_v6 = vld [vmem:[#allocation6 + $0x8] sm:$0xff]  ;;  %vm705_vm0 = vcmask 261120   ;;  %v1448_v54 = vmov 32.0  }
  0x2d   : > { %s1724_s28 = smov (!%p683_p6, %s1550_s28), 1  ;;  %v732_v2 = vld [vmem:[#allocation4 + $0x18] sm:$0xff]  ;;  %721 = vmatpush.msra.mxu0 %v704_v1  ;;  %v731_v5 = vld [vmem:[#allocation4 + $0x10] sm:$0xff]  ;;  %v702_v7 = vld [vmem:[#allocation2 + $0x8] sm:$0xff]  ;;  %1232 = vrcp.f32 %v1448_v54  ;;  %s1721_s27 = sld [smem:[#allocation22_spill]] }
  0x2e   : > { %s1617_s19 = sshll.u32 %s1724_s28, 3  ;;  %748 = vmatpush.msra.mxu1 %v732_v2  ;;  %v730_v8 = vld [vmem:[#allocation4 + $0x8] sm:$0xff]  ;;  %777 = vmatpush.msra.mxu2 %v759_v3  ;;  %v757_v9 = vld [vmem:[#allocation6] sm:$0xff]  ;;  %v802_v15 = vld [vmem:[#allocation7 + $0x18] sm:$0xff] }
  0x2f   : > { %722 = vmatpush.msra.mxu0 %v703_v4  ;;  %v701_v13 = vld [vmem:[#allocation2] sm:$0xff]  ;;  %818 = vmatpush.msra.mxu3 %v802_v15  ;;  %v801_v16 = vld [vmem:[#allocation7 + $0x10] sm:$0xff]  ;;  %v800_v17 = vld [vmem:[#allocation7 + $0x8] sm:$0xff]  ;;  %s694_s21 = scalar_lea.vmem %s1704_s17, %s1617_s19 }
  0x30   : > { %749 = vmatpush.msra.mxu1 %v731_v5  ;;  %v729_v14 = vld [vmem:[#allocation4] sm:$0xff]  ;;  %778 = vmatpush.msra.mxu2 %v758_v6  ;;  %v829_v18 = vld [vmem:[#allocation9 + $0x18] sm:$0xff]  ;;  %v828_v20 = vld [vmem:[#allocation9 + $0x10] sm:$0xff] }
  0x31   : > { %s686_s24 = scalar_lea.vmem %s1719_s22, %s1617_s19  ;;  %723 = vmatpush.msra.mxu0 %v702_v7  ;;  %819 = vmatpush.msra.mxu3 %v801_v16  ;;  %v799_v19 = vld [vmem:[#allocation7] sm:$0xff]  ;;  %v857_v21 = vld [vmem:[#allocation10 + $0x18] sm:$0xff]  ;;  %v827_v22 = vld [vmem:[#allocation9 + $0x8] sm:$0xff] }
  0x32   : > { %s690_s0 = scalar_lea.vmem %s1720_s30, %s1617_s19  ;;  %v1627_v10 = vld [vmem:[%s686_s24] sm:$0xff]  ;;  %750 = vmatpush.msra.mxu1 %v730_v8  ;;  %779 = vmatpush.msra.mxu2 %v757_v9  ;;  %v856_v23 = vld [vmem:[#allocation10 + $0x10] sm:$0xff]  ;;  %v855_v25 = vld [vmem:[#allocation10 + $0x8] sm:$0xff] }
  0x33   : > { %v1629_v11 = vld [vmem:[%s690_s0] sm:$0xff]  ;;  %724 = vmatpush.msra.mxu0 %v701_v13  ;;  %820 = vmatpush.msra.mxu3 %v800_v17  ;;  %v1233_v55 = vpop.eup %1232  ;;  %s698_s7 = scalar_lea.vmem %s1721_s27, %s1617_s19 }
  0x34   : > { %v756_v12 = vadd.f32 %v1629_v11, %v1627_v10  ;;  %751 = vmatpush.msra.mxu1 %v729_v14  ;;  %1143 = vmatmul.msk.f32.vlgmr.msra.gmra.mxu0 %vm705_vm0, %v1627_v10  ;;  %v826_v24 = vld [vmem:[#allocation9] sm:$0xff]  ;;  %v905_v56 = vmul.f32 32.0, %v1233_v55  ;;  %vm909_vm1 = vweird.f32 %v1233_v55 }
  0x35   : > { %1144 = vmatmul.msk.f32.vlgmr.msra.gmra.mxu1 %vm705_vm0, %v1629_v11  ;;  %845 = vmatpush.msrb.mxu0 %v829_v18  ;;  %v854_v26 = vld [vmem:[#allocation10] sm:$0xff] }
  0x36   : > { %1145 = vmatmul.msk.f32.vlgmr.msra.gmra.mxu2 %vm705_vm0, %v756_v12  ;;  %821 = vmatpush.msra.mxu3 %v799_v19  ;;  %v1223_v27 = vld [vmem:[%s1692_s5] ss:$0 sm:$0xff]  ;;  %v906_v57 = vsub.f32 1.0, %v905_v56 }
  0x37   : > { %846 = vmatpush.msrb.mxu0 %v828_v20  ;;  %873 = vmatpush.msrb.mxu1 %v857_v21  ;;  %v1224_v35 = vld [vmem:[%s1693_s6] ss:$0 sm:$0xff] }
  0x38   : > { %v1225_v41 = vld [vmem:[%s1697_s10] ss:$0 sm:$0xff]  ;;  %v907_v58 = vmul.f32 %v1233_v55, %v906_v57 }
  0x39   : > { %847 = vmatpush.msrb.mxu0 %v827_v22  ;;  %874 = vmatpush.msrb.mxu1 %v856_v23  ;;  %v1226_v47 = vld [vmem:[%s1698_s11] ss:$0 sm:$0xff] }
  0x3a   : > { %v908_v59 = vadd.f32 %v1233_v55, %v907_v58  ;;  %v1227_v17 = vld [vmem:[%s1699_s12] ss:$0 sm:$0xff] }
  0x3b   : > { %848 = vmatpush.msrb.mxu0 %v826_v24  ;;  %875 = vmatpush.msrb.mxu1 %v855_v25  ;;  %v1228_v19 = vld [vmem:[%s1701_s14] ss:$0 sm:$0xff] }
  0x3c   : > { %v910_v60 = vsel %vm909_vm1, %v1233_v55, %v908_v59  ;;  %v1230_v20 = vld [vmem:[%s1700_s13] ss:$0 sm:$0xff] }
  0x3d   : > { %876 = vmatpush.msrb.mxu1 %v854_v26  ;;  %v1229_v24 = vld [vmem:[%s1702_s15] ss:$0 sm:$0xff] }
  0x3e   : > { %v1231_v25 = vld [vmem:[%s1703_s16] ss:$0 sm:$0xff] }
  0xb1   : > { %v726_v28 = vpop.f32.mrf.mxu0 }
  0xb2   : > { %v753_v29 = vpop.f32.mrf.mxu1 }
  0xb3   : > { %v784_v30 = vsub.f32 %v726_v28, %v753_v29 }
  0xb5   : > { %v791_v31 = vadd.f32 %v1223_v27, %v784_v30 }
  0xb7   : > { %v792_v33 = vmax.f32 %v791_v31, 0.0 }
  0xb9   : > { %v781_v32 = vpop.f32.mrf.mxu2  ;;  %1146 = vmatmul.msk.f32.vlgmr.msra.gmra.mxu3 %vm705_vm0, %v792_v33 }
  0xba   : > { %v785_v34 = vsub.f32 %v781_v32, %v726_v28 }
  0xbc   : > { %v786_v36 = vsub.f32 %v785_v34, %v753_v29 }
  0xbe   : > { %v797_v37 = vadd.f32 %v1224_v35, %v786_v36 }
  0xc0   : > { %v798_v38 = vmax.f32 %v797_v37, 0.0 }
  0xc2   : > { %v853_v39 = vadd.f32 %v798_v38, %v792_v33  ;;  %1147 = vmatmul.msk.f32.vlgmr.msrb.gmra.mxu0 %vm705_vm0, %v798_v38 }
  0xc4   : > { %1148 = vmatmul.msk.f32.vlgmr.msrb.gmra.mxu1 %vm705_vm0, %v853_v39 }
 0x13c   : > { %v823_v40 = vpop.f32.mrf.mxu3 }
 0x13f   : > { %v850_v42 = vpop.f32.mrf.mxu0 }
 0x140   : > { %v881_v43 = vsub.f32 %v823_v40, %v850_v42 }
 0x141   : > { %v878_v44 = vpop.f32.mrf.mxu1 }
 0x142   : > { %v888_v45 = vadd.f32 %v1225_v41, %v881_v43  ;;  %v882_v46 = vsub.f32 %v878_v44, %v823_v40 }
 0x144   : > { %v883_v48 = vsub.f32 %v882_v46, %v850_v42  ;;  %v894_v49 = vadd.f32 %v888_v45, %v1627_v10 }
 0x146   : > { %v901_v50 = vsel %vm705_vm0, %v894_v49, 0.0  ;;  %v893_v51 = vadd.f32 %v1226_v47, %v883_v48 }
 0x147   : > { %902 = vadd.xlane.f32.xlu0 %v901_v50 }
 0x148   : > { %v895_v52 = vadd.f32 %v893_v51, %v1629_v11 }
 0x14a   : > { %v912_v53 = vsel %vm705_vm0, %v895_v52, 0.0 }
 0x14f   : > { %913 = vadd.xlane.f32.xlu0 %v912_v53 }
 0x1ba   : > { %v903_v61 = vpop.xlane.xlu0 %902 }
 0x1bb   : > { %v911_v62 = vmul.f32 %v910_v60, %v903_v61 }
 0x1bd   : > { %v916_v63 = vsub.f32 %v894_v49, %v911_v62 }
 0x1bf   : > { %v918_v0 = vmul.f32 %v916_v63, %v916_v63 }
 0x1c1   : > { %v919_v1 = vsel %vm705_vm0, %v918_v0, 0.0 }
 0x1c2   : > { %920 = vadd.xlane.f32.xlu1 %v919_v1  ;;  %v914_v2 = vpop.xlane.xlu0 %913 }
 0x1c3   : > { %v915_v3 = vmul.f32 %v914_v2, %v910_v60 }
 0x1c5   : > { %v917_v4 = vsub.f32 %v895_v52, %v915_v3 }
 0x1c7   : > { %v922_v5 = vmul.f32 %v917_v4, %v917_v4 }
 0x1c9   : > { %v923_v6 = vsel %vm705_vm0, %v922_v5, 0.0 }
 0x1ca   : > { %924 = vadd.xlane.f32.xlu1 %v923_v6 }
 0x235   : > { %v921_v7 = vpop.xlane.xlu1 %920 }
 0x23d   : > { %v925_v8 = vpop.xlane.xlu1 %924 }
 0x23e   : > { %v926_v9 = vadd.f32 %v925_v8, %v921_v7 }
 0x240   : > { %v927_v10 = vmul.f32 0.032258064, %v926_v9 }
 0x242   : > { %v928_v11 = vadd.f32 1e-09, %v927_v10 }
 0x244   : > { %1234 = vrsqrt.f32 %v928_v11  ;;  %vm935_vm3 = vweird.f32 %v928_v11 }
 0x24a   : > { %v1235_v12 = vpop.eup %1234 }
 0x24b   : > { %v930_v13 = vmul.f32 %v1235_v12, %v928_v11  ;;  %vm936_vm2 = vweird.f32 %v1235_v12 }
 0x24c   : > { %vm937_vm4 = vmor %vm935_vm3, %vm936_vm2 }
 0x24d   : > { %v931_v14 = vmul.f32 %v1235_v12, %v930_v13 }
 0x24f   : > { %v932_v15 = vmul.f32 0.5, %v931_v14 }
 0x251   : > { %v933_v16 = vsub.f32 1.5, %v932_v15 }
 0x253   : > { %v934_v18 = vmul.f32 %v1235_v12, %v933_v16 }
 0x255   : > { %v938_v21 = vsel %vm937_vm4, %v1235_v12, %v934_v18 }
 0x256   : > { %v939_v22 = vmul.f32 %v938_v21, %v916_v63  ;;  %v940_v23 = vmul.f32 %v938_v21, %v917_v4 }
 0x258   : > { %v944_v26 = vmul.f32 %v1227_v17, %v939_v22  ;;  %v948_v27 = vmul.f32 %v1228_v19, %v940_v23  ;;  %v954_v28 = vmul.f32 %v1228_v19, %v939_v22  ;;  %v958_v29 = vmul.f32 %v1230_v20, %v940_v23 }
 0x25a   : > { %v949_v30 = vadd.f32 %v948_v27, %v944_v26  ;;  %v959_v31 = vadd.f32 %v958_v29, %v954_v28 }
 0x25c   : > { %v953_v32 = vadd.f32 %v1229_v24, %v949_v30  ;;  %v963_v33 = vadd.f32 %v1231_v25, %v959_v31 }
 0x25e   : > { %964 = vst.msk [vmem:[%s694_s21] sm:$0xff] %vm705_vm0, %v953_v32 }
 0x25f   : > { %965 = vst.msk [vmem:[%s698_s7] sm:$0xff] %vm705_vm0, %v963_v33 }
 0x260 PF: > { %s1722_s1 = sld [smem:[#allocation16_spill]] }
 0x266   : > { %s33_s27 = sadd.s32 1, %s1722_s1  }
 0x267   : > { %p30_p7 = scmp.ge.s32.totalorder %s33_s27, 4  }
 0x269   :  { %32 = sbr.rel (!%p30_p7) target bundleno = 11 (0xb), region = 158 }
 0x26e   :  { %999 = vsyncpa [#allocation3], 1 }
 0x26f   :  { %1001 = vsyncpa [#allocation3 + $0x1], 1 }
 0x270   :  { %1002 = vsyncpa [#allocation5], 1 }
 0x271   :  { %1003 = vsyncpa [#allocation8], 1 }
 0x272   :  { %1004 = vsyncpa [#allocation11], 1 }

// kernel: pallas_forward.16
= control target key start
LH: loop header
LB: loop body
LE: loop exit
PB: predicated region body
PF: predicated region fallthrough
CT: control target
= control target key end

     0   :  { %19 = vsyncpa [#allocation3], 0  ;;  %s1209_s0 = inlined_call_operand.vmem [shape: f32[16,32], index: 0, kind: input, shape index: {}]   ;;  %s1210_s1 = inlined_call_operand.vmem [shape: f32[16,32], index: 1, kind: input, shape index: {}]   ;;  %s1211_s2 = inlined_call_operand.vmem [shape: f32[16,32], index: 2, kind: input, shape index: {}]   ;;  %s1212_s3 = inlined_call_operand.vmem [shape: f32[16,32], index: 3, kind: input, shape index: {}]   ;;  %s1213_s4 = inlined_call_operand.hbm [shape: f32[32,32], index: 4, kind: input, shape index: {}]   ;;  %s1214_s5 = inlined_call_operand.hbm [shape: f32[32,32], index: 5, kind: input, shape index: {}]   ;;  %s1215_s6 = inlined_call_operand.hbm [shape: f32[32,32], index: 6, kind: input, shape index: {}]   ;;  %s1216_s7 = inlined_call_operand.vmem [shape: f32[1,32], index: 7, kind: input, shape index: {}]   ;;  %s1217_s8 = inlined_call_operand.vmem [shape: f32[1,32], index: 8, kind: input, shape index: {}]   ;;  %s1218_s9 = inlined_call_operand.vmem [shape: f32[1,32], index: 9, kind: input, shape index: {}]   ;;  %s1219_s10 = inlined_call_operand.vmem [shape: f32[1,32], index: 10, kind: input, shape index: {}]   ;;  %s1220_s11 = inlined_call_operand.vmem [shape: f32[1,32], index: 11, kind: input, shape index: {}]   ;;  %s1221_s12 = inlined_call_operand.vmem [shape: f32[16,32], index: 12, kind: output, shape index: {0}]   ;;  %s1222_s13 = inlined_call_operand.vmem [shape: f32[16,32], index: 13, kind: output, shape index: {1}]  }
   0x1   :  { %20 = vsyncpa [#allocation5], 0  ;;  %s1116_s25 = smov 0  }
   0x2 LB: > { %s1122_s26 = sadd.s32 4294967295, %s1038_s25   ;;  %p863_p0 = scmp.ge.s32.totalorder %s1038_s25, 1  ;;  %s1038_s25 = sphi %s1116_s25, %s26_s25  }
   0x3   : > { %p355_p1 = scmp.lt.s32.totalorder %s1038_s25, 3  ;;  %p905_p2 = scmp.eq.s32.totalorder %s1122_s26, 0 }
   0x4   : > { %s380_s29 = sshll.u32 %s1214_s5, 4  ;;  %s366_s16 = sshll.u32 %s1213_s4, 4  ;;  %s381_s29 = int_to_ptr.hbm [resolvable:$true] %s380_s29  ;;  %s367_s16 = int_to_ptr.hbm [resolvable:$true] %s366_s16 }
   0x5   : > { %p1130_p3 = pnand %p863_p0, %p355_p1  ;;  %s1040_s17 = smov [#allocation4]  }
   0x6   : > { %s382_s18 = sshll.u32 %s1040_s17, 4  ;;  %s1041_s19 = smov [#allocation2]   ;;  %s383_s18 = int_to_ptr.vmem [resolvable:$true] %s382_s18 }
   0x7   : > { %p895_p4 = pneg %p1130_p3  ;;  %s368_s20 = sshll.u32 %s1041_s19, 4  ;;  %s369_s20 = int_to_ptr.vmem [resolvable:$true] %s368_s20 }
   0x8   : > { %s394_s23 = sshll.u32 %s1215_s6, 4  ;;  %s1042_s24 = smov 128   ;;  %s395_s23 = int_to_ptr.hbm [resolvable:$true] %s394_s23 }
   0x9   : > { %p896_p5 = pnand %p905_p2, %p895_p4  ;;  %s1043_s27 = smov 8  }
   0xa   : > { %s1044_s28 = smov [#allocation6]   ;;  %455 = sbr.rel (%p1130_p3) target bundleno = 440 (0x1b8), region = 68 }
   0xb   : > { %901 = dma.hbm_to_vmem [thread:$0]  (!%p896_p5), %s381_s29, 512, %s383_s18, [#allocation5], %s1042_s24, %s1042_s24, %s1043_s27  }
   0xc   : > { %898 = dma.hbm_to_vmem [thread:$0]  (!%p896_p5), %s367_s16, 512, %s369_s20, [#allocation3], %s1042_s24, %s1042_s24, %s1043_s27  }
   0xd   : > { %s396_s14 = sshll.u32 %s1044_s28, 4  ;;  %s397_s14 = int_to_ptr.vmem [resolvable:$true] %s396_s14 }
   0xe   : > { %904 = dma.hbm_to_vmem [thread:$0]  (!%p896_p5), %s395_s23, 512, %s397_s14, [#allocation5], %s1042_s24, %s1042_s24, %s1043_s27  }
   0xf   : > { %1029 = dma.done.wait (%p905_p2), [#allocation3], 512  }
  0x10   : > { %1031 = vsyncadd (%p905_p2), [#allocation3], 4294966784 }
  0x11   : > { %1033 = dma.done.wait (%p905_p2), [#allocation5], 1024  }
  0x12   : > { %1035 = vsyncadd (%p905_p2), [#allocation5], 4294966272  ;;  %p524_p6 = scmp.lt.s32.totalorder %s1122_s26, 1  ;;  %v553_v0 = vld [vmem:[#allocation2 + $0x18] sm:$0xff]  ;;  %v552_v3 = vld [vmem:[#allocation2 + $0x10] sm:$0xff]  ;;  %vm554_vm0 = vcmask 261120  }
  0x13   : > { %v581_v1 = vld [vmem:[#allocation4 + $0x18] sm:$0xff]  ;;  %570 = vmatpush.msra.mxu0 %v553_v0  ;;  %v580_v4 = vld [vmem:[#allocation4 + $0x10] sm:$0xff]  ;;  %v551_v6 = vld [vmem:[#allocation2 + $0x8] sm:$0xff]  ;;  %v1045_v27 = vmov 32.0  }
  0x14   : > { %s1225_s26 = smov (!%p524_p6, %s1122_s26), 1  ;;  %v609_v2 = vld [vmem:[#allocation6 + $0x18] sm:$0xff]  ;;  %597 = vmatpush.msra.mxu1 %v581_v1  ;;  %v608_v5 = vld [vmem:[#allocation6 + $0x10] sm:$0xff]  ;;  %v579_v7 = vld [vmem:[#allocation4 + $0x8] sm:$0xff]  ;;  %930 = vrcp.f32 %v1045_v27 }
  0x15   : > { %s1156_s29 = sshll.u32 %s1225_s26, 3  ;;  %625 = vmatpush.msra.mxu2 %v609_v2  ;;  %v607_v8 = vld [vmem:[#allocation6 + $0x8] sm:$0xff]  ;;  %571 = vmatpush.msra.mxu0 %v552_v3  ;;  %v550_v9 = vld [vmem:[#allocation2] sm:$0xff] }
  0x16   : > { %s527_s16 = scalar_lea.vmem %s1209_s0, %s1156_s29  ;;  %s531_s19 = scalar_lea.vmem %s1210_s1, %s1156_s29  ;;  %598 = vmatpush.msra.mxu1 %v580_v4  ;;  %v578_v10 = vld [vmem:[#allocation4] sm:$0xff] }
  0x17   : > { %v606_v11 = vld [vmem:[#allocation6] sm:$0xff]  ;;  %626 = vmatpush.msra.mxu2 %v608_v5  ;;  %572 = vmatpush.msra.mxu0 %v551_v6  ;;  %s535_s21 = scalar_lea.vmem %s1211_s2, %s1156_s29  ;;  %s539_s24 = scalar_lea.vmem %s1212_s3, %s1156_s29 }
  0x18   : > { %v548_v12 = vld [vmem:[%s527_s16] sm:$0xff]  ;;  %599 = vmatpush.msra.mxu1 %v579_v7  ;;  %s543_s22 = scalar_lea.vmem %s1221_s12, %s1156_s29  ;;  %s547_s27 = scalar_lea.vmem %s1222_s13, %s1156_s29 }
  0x19   : > { %v549_v13 = vld [vmem:[%s531_s19] sm:$0xff]  ;;  %627 = vmatpush.msra.mxu2 %v607_v8  ;;  %573 = vmatpush.msra.mxu0 %v550_v9 }
  0x1a   : > { %v605_v14 = vadd.f32 %v549_v13, %v548_v12  ;;  %600 = vmatpush.msra.mxu1 %v578_v10  ;;  %878 = vmatmul.msk.f32.vlgmr.msra.gmra.mxu0 %vm554_vm0, %v548_v12  ;;  %v636_v17 = vld [vmem:[%s535_s21] sm:$0xff]  ;;  %v931_v28 = vpop.eup %930 }
  0x1b   : > { %628 = vmatpush.msra.mxu2 %v606_v11  ;;  %879 = vmatmul.msk.f32.vlgmr.msra.gmra.mxu1 %vm554_vm0, %v549_v13  ;;  %v638_v23 = vld [vmem:[%s539_s24] sm:$0xff]  ;;  %v649_v29 = vmul.f32 32.0, %v931_v28  ;;  %vm653_vm1 = vweird.f32 %v931_v28 }
  0x1c   : > { %880 = vmatmul.msk.f32.vlgmr.msra.gmra.mxu2 %vm554_vm0, %v605_v14  ;;  %v925_v54 = vld [vmem:[%s1216_s7] ss:$0 sm:$0xff] }
  0x1d   : > { %v650_v30 = vsub.f32 1.0, %v649_v29  ;;  %v926_v56 = vld [vmem:[%s1218_s9] ss:$0 sm:$0xff] }
  0x1e   : > { %v928_v57 = vld [vmem:[%s1217_s8] ss:$0 sm:$0xff] }
  0x1f   : > { %v651_v31 = vmul.f32 %v931_v28, %v650_v30  ;;  %v927_v61 = vld [vmem:[%s1219_s10] ss:$0 sm:$0xff] }
  0x20   : > { %v929_v62 = vld [vmem:[%s1220_s11] ss:$0 sm:$0xff] }
  0x21   : > { %v652_v32 = vadd.f32 %v931_v28, %v651_v31 }
  0x23   : > { %v654_v33 = vsel %vm653_vm1, %v931_v28, %v652_v32 }
  0x97   : > { %v575_v15 = vpop.f32.mrf.mxu0 }
  0x98   : > { %v602_v16 = vpop.f32.mrf.mxu1 }
  0x99   : > { %v633_v18 = vsub.f32 %v575_v15, %v602_v16 }
  0x9b   : > { %v637_v19 = vadd.f32 %v636_v17, %v633_v18 }
  0x9d   : > { %v645_v20 = vsel %vm554_vm0, %v637_v19, 0.0 }
  0x9e   : > { %646 = vadd.xlane.f32.xlu0 %v645_v20 }
  0x9f   : > { %v630_v21 = vpop.f32.mrf.mxu2 }
  0xa0   : > { %v634_v22 = vsub.f32 %v630_v21, %v575_v15 }
  0xa2   : > { %v635_v24 = vsub.f32 %v634_v22, %v602_v16 }
  0xa4   : > { %v639_v25 = vadd.f32 %v638_v23, %v635_v24 }
  0xa6   : > { %v656_v26 = vsel %vm554_vm0, %v639_v25, 0.0 }
  0xa7   : > { %657 = vadd.xlane.f32.xlu0 %v656_v26 }
 0x111   : > { %v647_v34 = vpop.xlane.xlu0 %646 }
 0x112   : > { %v655_v35 = vmul.f32 %v654_v33, %v647_v34 }
 0x114   : > { %v660_v36 = vsub.f32 %v637_v19, %v655_v35 }
 0x116   : > { %v662_v37 = vmul.f32 %v660_v36, %v660_v36 }
 0x118   : > { %v663_v38 = vsel %vm554_vm0, %v662_v37, 0.0 }
 0x119   : > { %664 = vadd.xlane.f32.xlu1 %v663_v38 }
 0x11a   : > { %v658_v39 = vpop.xlane.xlu0 %657 }
 0x11b   : > { %v659_v40 = vmul.f32 %v658_v39, %v654_v33 }
 0x11d   : > { %v661_v41 = vsub.f32 %v639_v25, %v659_v40 }
 0x11f   : > { %v666_v42 = vmul.f32 %v661_v41, %v661_v41 }
 0x121   : > { %v667_v43 = vsel %vm554_vm0, %v666_v42, 0.0 }
 0x122   : > { %668 = vadd.xlane.f32.xlu1 %v667_v43 }
 0x18c   : > { %v665_v44 = vpop.xlane.xlu1 %664 }
 0x195   : > { %v669_v45 = vpop.xlane.xlu1 %668 }
 0x196   : > { %v670_v46 = vadd.f32 %v669_v45, %v665_v44 }
 0x198   : > { %v671_v47 = vmul.f32 0.032258064, %v670_v46 }
 0x19a   : > { %v672_v48 = vadd.f32 1e-09, %v671_v47 }
 0x19c   : > { %932 = vrsqrt.f32 %v672_v48  ;;  %vm679_vm3 = vweird.f32 %v672_v48 }
 0x1a2   : > { %v933_v49 = vpop.eup %932 }
 0x1a3   : > { %v674_v50 = vmul.f32 %v933_v49, %v672_v48  ;;  %vm680_vm2 = vweird.f32 %v933_v49 }
 0x1a4   : > { %vm681_vm4 = vmor %vm679_vm3, %vm680_vm2 }
 0x1a5   : > { %v675_v51 = vmul.f32 %v933_v49, %v674_v50 }
 0x1a7   : > { %v676_v52 = vmul.f32 0.5, %v675_v51 }
 0x1a9   : > { %v677_v53 = vsub.f32 1.5, %v676_v52 }
 0x1ab   : > { %v678_v55 = vmul.f32 %v933_v49, %v677_v53 }
 0x1ad   : > { %v682_v58 = vsel %vm681_vm4, %v933_v49, %v678_v55 }
 0x1ae   : > { %v683_v59 = vmul.f32 %v682_v58, %v660_v36  ;;  %v684_v60 = vmul.f32 %v682_v58, %v661_v41 }
 0x1b0   : > { %v688_v63 = vmul.f32 %v925_v54, %v683_v59  ;;  %v692_v0 = vmul.f32 %v926_v56, %v684_v60  ;;  %v698_v1 = vmul.f32 %v926_v56, %v683_v59  ;;  %v702_v2 = vmul.f32 %v928_v57, %v684_v60 }
 0x1b2   : > { %v693_v3 = vadd.f32 %v692_v0, %v688_v63  ;;  %v703_v4 = vadd.f32 %v702_v2, %v698_v1 }
 0x1b4   : > { %v697_v5 = vadd.f32 %v927_v61, %v693_v3  ;;  %v707_v6 = vadd.f32 %v929_v62, %v703_v4 }
 0x1b6   : > { %708 = vst.msk [vmem:[%s543_s22] sm:$0xff] %vm554_vm0, %v697_v5 }
 0x1b7   : > { %709 = vst.msk [vmem:[%s547_s27] sm:$0xff] %vm554_vm0, %v707_v6 }
 0x1b8 PF: > { %s26_s25 = sadd.s32 1, %s1038_s25  }
 0x1b9   : > { %p23_p7 = scmp.ge.s32.totalorder %s26_s25, 4  }
 0x1bb   :  { %25 = sbr.rel (!%p23_p7) target bundleno = 2 (0x2), region = 132 }
 0x1c0   :  { %743 = vsyncpa [#allocation3], 1 }
 0x1c1   :  { %745 = vsyncpa [#allocation3 + $0x1], 1 }
 0x1c2   :  { %746 = vsyncpa [#allocation5], 1 }

</bundles_post_ra>
